<compile_context>
chip_gen: v5e
topology: v5e:2x2
jax: 0.10.0
libtpu: 0.0.40
codegen_flags: <defaults>
</compile_context>

<pallas_src>
import functools

import numpy as np
import jax
import jax.numpy as jnp
from jax.experimental import pallas as pl
from jax.experimental.pallas import tpu as pltpu

BN_EPS = 1e-5
BN_SCALE = float(1.0 / np.sqrt(1.0 + BN_EPS))
VMEM_LIMIT = 48 * 1024 * 1024  # safe on v7x (64 MiB physical), > default 32 MiB scoped


def _pair(v):
    return (v, v) if isinstance(v, int) else tuple(v)


def _ru(x, m):
    return (x + m - 1) // m * m


def _pick_tile(padded, candidates=(512, 384, 256, 128), prefer_multi=False):
    """Pick the largest candidate tile that evenly divides `padded` (a multiple of 128).
    If prefer_multi, try to keep >=2 blocks along this axis (megacore on v7x)."""
    for c in candidates:
        if padded % c == 0:
            if prefer_multi and padded // c < 2 and padded > 128:
                continue
            return c
    return 128


# ----------------------------- Pallas kernels ------------------------------

def _mm_bias_kernel(a_ref, b_ref, c_ref, o_ref, acc_ref, *, relu):
    """out = act(A @ B + bias); bf16 operands, f32 accumulation on the MXU."""
    @pl.when(pl.program_id(2) == 0)
    def _():
        acc_ref[...] = jnp.zeros_like(acc_ref)

    acc_ref[...] += jnp.dot(a_ref[...], b_ref[...],
                            preferred_element_type=jnp.float32)

    @pl.when(pl.program_id(2) == pl.num_programs(2) - 1)
    def _():
        y = acc_ref[...] + c_ref[...]
        if relu:
            y = jnp.maximum(y, 0.0)
        o_ref[...] = y.astype(o_ref.dtype)


def matmul_bias(a, b, bias, relu, out_dtype=jnp.float32):
    """act((a @ b) + bias) with per-output-column bias, via a tiled Pallas MXU matmul.
    Operands are cast to bf16 (f32 accumulation); tiles are chosen per-shape."""
    M, K = a.shape
    _, N = b.shape
    Mp, Kp, Np = _ru(M, 128), _ru(K, 128), _ru(N, 128)

    tm = _pick_tile(Mp, (512, 256, 128))
    tn = _pick_tile(Np, (512, 384, 256, 128), prefer_multi=(Mp // tm < 2))
    tk = _pick_tile(Kp, (512, 384, 256, 128))

    a_p = jnp.pad(a.astype(jnp.bfloat16), ((0, Mp - M), (0, Kp - K)))
    b_p = jnp.pad(b.astype(jnp.bfloat16), ((0, Kp - K), (0, Np - N)))
    c_p = jnp.pad(bias.astype(jnp.float32).reshape(1, -1), ((0, 0), (0, Np - N)))

    kernel = functools.partial(_mm_bias_kernel, relu=relu)
    out = pl.pallas_call(
        kernel,
        out_shape=jax.ShapeDtypeStruct((Mp, Np), out_dtype),
        grid_spec=pltpu.PrefetchScalarGridSpec(
            num_scalar_prefetch=0,
            grid=(Mp // tm, Np // tn, Kp // tk),
            in_specs=[
                pl.BlockSpec((tm, tk), lambda i, j, k: (i, k)),
                pl.BlockSpec((tk, tn), lambda i, j, k: (k, j)),
                pl.BlockSpec((1, tn), lambda i, j, k: (0, j)),
            ],
            out_specs=pl.BlockSpec((tm, tn), lambda i, j, k: (i, j)),
            scratch_shapes=[pltpu.VMEM((tm, tn), jnp.float32)],
        ),
        compiler_params=pltpu.CompilerParams(
            dimension_semantics=("parallel", "parallel", "arbitrary"),
            vmem_limit_bytes=VMEM_LIMIT),
    )(a_p, b_p, c_p)
    return out[:M, :N]


def _maxpool_kernel(x_ref, o_ref):
    o_ref[...] = jnp.max(x_ref[...], axis=0)


def maxpool2d(x, k, stride):
    """NHWC max pool with nn.MaxPool2d(k, stride) (padding=0) semantics."""
    # TODO(synk): window taps are still stacked into a (k*k, M, C) HBM array (strided
    # shifted windows are not expressible with a plain BlockSpec index_map).
    N, H, W, C = x.shape
    oh = (H - k) // stride + 1
    ow = (W - k) // stride + 1
    cols = []
    for i in range(k):
        for j in range(k):
            cols.append(x[:, i:i + (oh - 1) * stride + 1:stride,
                          j:j + (ow - 1) * stride + 1:stride, :])
    M = N * oh * ow
    stacked = jnp.stack(cols, axis=0).reshape(k * k, M, C)
    Mp, Cp = _ru(M, 128), _ru(C, 128)
    tm = _pick_tile(Mp, (256, 128))
    tc = _pick_tile(Cp, (512, 384, 256, 128))
    stacked = jnp.pad(stacked, ((0, 0), (0, Mp - M), (0, Cp - C)))
    out = pl.pallas_call(
        _maxpool_kernel,
        out_shape=jax.ShapeDtypeStruct((Mp, Cp), jnp.float32),
        grid_spec=pltpu.PrefetchScalarGridSpec(
            num_scalar_prefetch=0,
            grid=(Mp // tm, Cp // tc),
            in_specs=[pl.BlockSpec((k * k, tm, tc), lambda i, j: (0, i, j))],
            out_specs=pl.BlockSpec((tm, tc), lambda i, j: (i, j)),
        ),
        compiler_params=pltpu.CompilerParams(
            dimension_semantics=("parallel", "parallel"),
            vmem_limit_bytes=VMEM_LIMIT),
    )(stacked)
    return out[:M, :C].reshape(N, oh, ow, C)


# --------------------------- conv via im2col + matmul -----------------------

def _im2col(x, kh, kw, sh, sw, ph, pw):
    # TODO(synk): im2col is still materialized in HBM (fusing the window gather into
    # the matmul K grid axis needs manual DMA of strided slices); bf16 intermediates
    # halve its traffic.
    if ph or pw:
        x = jnp.pad(x, ((0, 0), (ph, ph), (pw, pw), (0, 0)))
    N, H, W, C = x.shape
    oh = (H - kh) // sh + 1
    ow = (W - kw) // sw + 1
    cols = []
    for i in range(kh):
        for j in range(kw):
            cols.append(x[:, i:i + (oh - 1) * sh + 1:sh,
                          j:j + (ow - 1) * sw + 1:sw, :])
    patches = jnp.concatenate(cols, axis=-1)
    return patches.reshape(N * oh * ow, kh * kw * C), oh, ow


def conv2d(x, p, out_dtype=jnp.float32):
    w = p['w']                      # (KH, KW, Cin, Cout), BN scale already folded in
    kh, kw, cin, cout = w.shape
    sh, sw = p['stride']
    ph, pw = p['padding']
    N = x.shape[0]
    if kh == 1 and kw == 1 and sh == 1 and sw == 1 and ph == 0 and pw == 0:
        patches = x.reshape(-1, cin)
        oh, ow = x.shape[1], x.shape[2]
    else:
        patches, oh, ow = _im2col(x, kh, kw, sh, sw, ph, pw)
    y = matmul_bias(patches, w.reshape(kh * kw * cin, cout),
                    p['bias'], relu=p['relu'], out_dtype=out_dtype)
    return y.reshape(N, oh, ow, cout)


# ------------------------------ parameter init ------------------------------

class KeyGen:
    def __init__(self, key):
        self._key = key

    def __call__(self):
        self._key, sub = jax.random.split(self._key)
        return sub


def init_basic(kg, cin, cout, ksize, stride=1, padding=0):
    # BasicConv2d: Conv2d(bias=False) + BN (inference stats, folded into w) + ReLU
    kh, kw = _pair(ksize)
    fan_out = cout * kh * kw
    w = jax.random.normal(kg(), (kh, kw, cin, cout), jnp.float32) * np.sqrt(2.0 / fan_out)
    w = w * BN_SCALE  # fold BN scale (gamma=1, var=1) into the weights
    return dict(w=w,
                bias=jnp.zeros((cout,), jnp.float32),
                stride=_pair(stride), padding=_pair(padding), relu=True)


def init_reduction_b(kg, cin):
    # The three parallel cin->256 1x1 convs are fused into a single cin->768 conv
    # (output channel order: [branch3x3a | branch3x3b | branch3x3stack]).
    a0 = init_basic(kg, cin, 256, 1)
    b0 = init_basic(kg, cin, 256, 1)
    s0 = init_basic(kg, cin, 256, 1)
    fused = dict(
        w=jnp.concatenate([a0['w'], b0['w'], s0['w']], axis=-1),
        bias=jnp.concatenate([a0['bias'], b0['bias'], s0['bias']]),
        stride=(1, 1), padding=(0, 0), relu=True)
    return dict(
        fused1x1=fused,
        a1=init_basic(kg, 256, 384, 3, 2, 0),
        b1=init_basic(kg, 256, 288, 3, 2, 0),
        s1=init_basic(kg, 256, 288, 3, 1, 1),
        s2=init_basic(kg, 288, 320, 3, 2, 0),
    )


def apply_reduction_b(x, p):
    pool = maxpool2d(x, 3, 2)                              # branchpool
    y = conv2d(x, p['fused1x1'], out_dtype=jnp.bfloat16)   # fused 1x1 convs, (N,H,W,768)
    ya = y[..., 0:256]
    yb = y[..., 256:512]
    ys = y[..., 512:768]
    out_a = conv2d(ya, p['a1'], out_dtype=jnp.float32)     # branch3x3a: 3x3 s2 -> 384
    out_b = conv2d(yb, p['b1'], out_dtype=jnp.float32)     # branch3x3b: 3x3 s2 -> 288
    ys = conv2d(ys, p['s1'], out_dtype=jnp.bfloat16)       # branch3x3stack: 3x3 s1 p1 -> 288
    out_s = conv2d(ys, p['s2'], out_dtype=jnp.float32)     #                 3x3 s2    -> 320
    return jnp.concatenate([pool, out_a, out_b, out_s], axis=-1)


def forward(params, x_nchw):
    # NCHW (PyTorch) -> NHWC internal layout -> NCHW output (matches torch.cat(dim=1))
    x = jnp.transpose(x_nchw.astype(jnp.float32), (0, 2, 3, 1))
    y = apply_reduction_b(x, params)
    return jnp.transpose(y, (0, 3, 1, 2))


if __name__ == "__main__":
    key = jax.random.PRNGKey(0)
    xkey, pkey = jax.random.split(key)

    # Small shapes consistent with ReductionB: batch=2, in_channels=64, spatial=17.
    CIN = 64
    x = jax.random.normal(xkey, (2, CIN, 17, 17), jnp.float32)

    kg = KeyGen(pkey)
    params = init_reduction_b(kg, CIN)

    fwd = jax.jit(lambda inp: forward(params, inp))
    out = fwd(x)
    out = jax.block_until_ready(out)
    assert out.shape == (2, CIN + 384 + 288 + 320, 8, 8), out.shape
    assert bool(jnp.all(jnp.isfinite(out)))
    print("KERNEL_OK")
</pallas_src>

<mosaic_0001>
module attributes {stable_mosaic.version = 11 : i64} {
  func.func @_mm_bias_kernel(%arg0: i32, %arg1: i32, %arg2: i32, %arg3: memref<128x128xbf16, #tpu.memory_space<vmem>>, %arg4: memref<128x384xbf16, #tpu.memory_space<vmem>>, %arg5: memref<1x384xf32, #tpu.memory_space<vmem>>, %arg6: memref<128x384xbf16, #tpu.memory_space<vmem>>, %arg7: memref<128x384xf32, #tpu.memory_space<vmem>>) attributes {dimension_semantics = [#tpu.dimension_semantics<parallel>, #tpu.dimension_semantics<parallel>, #tpu.dimension_semantics<arbitrary>], iteration_bounds = array<i64: 5, 2, 1>, scalar_prefetch = 0 : i64, scratch_operands = 1 : i64, tpu.core_type = #tpu.core_type<tc>, window_params = [{transform_indices = @transform_0, window_bounds = array<i64: 128, 128>}, {transform_indices = @transform_1, window_bounds = array<i64: 128, 384>}, {transform_indices = @transform_2, window_bounds = array<i64: 1, 384>}, {transform_indices = @transform_3, window_bounds = array<i64: 128, 384>}]} {
    %c0_i32 = arith.constant 0 : i32
    %0 = arith.cmpi eq, %arg2, %c0_i32 : i32
    %1 = arith.extui %0 : i1 to i32
    %c0_i32_0 = arith.constant 0 : i32
    %2 = arith.cmpi ne, %1, %c0_i32_0 : i32
    scf.if %2 {
      %cst_10 = arith.constant 0.000000e+00 : f32
      %12 = vector.broadcast %cst_10 : f32 to vector<128x384xf32>
      %c0_11 = arith.constant 0 : index
      %c0_12 = arith.constant 0 : index
      %13 = vector.load %arg7[%c0_11, %c0_12] : memref<128x384xf32, #tpu.memory_space<vmem>>, vector<128x384xf32>
      tpu.vector_store %arg7[%c0_11, %c0_12], %12 {strides = array<i32>} : memref<128x384xf32, #tpu.memory_space<vmem>>, vector<128x384xf32>,
    } else {
    }
    %c0 = arith.constant 0 : index
    %c0_1 = arith.constant 0 : index
    %3 = vector.load %arg7[%c0, %c0_1] : memref<128x384xf32, #tpu.memory_space<vmem>>, vector<128x384xf32>
    %c0_2 = arith.constant 0 : index
    %c0_3 = arith.constant 0 : index
    %4 = vector.load %arg3[%c0_2, %c0_3] : memref<128x128xbf16, #tpu.memory_space<vmem>>, vector<128x128xbf16>
    %c0_4 = arith.constant 0 : index
    %c0_5 = arith.constant 0 : index
    %5 = vector.load %arg4[%c0_4, %c0_5] : memref<128x384xbf16, #tpu.memory_space<vmem>>, vector<128x384xbf16>
    %cst = arith.constant dense<0.000000e+00> : vector<128x384xf32>
    %6 = tpu.matmul %4, %5, %cst {dimension_numbers = #tpu.dot_dimension_numbers<[1], [0], [0], [1], [0, 0, 1, 1], [], []>} : vector<128x128xbf16>, vector<128x384xbf16>, vector<128x384xf32> -> vector<128x384xf32>
    %7 = arith.addf %3, %6 : vector<128x384xf32>
    %c0_6 = arith.constant 0 : index
    %c0_7 = arith.constant 0 : index
    %8 = vector.load %arg7[%c0_6, %c0_7] : memref<128x384xf32, #tpu.memory_space<vmem>>, vector<128x384xf32>
    tpu.vector_store %arg7[%c0_6, %c0_7], %7 {strides = array<i32>} : memref<128x384xf32, #tpu.memory_space<vmem>>, vector<128x384xf32>,
    %c0_i32_8 = arith.constant 0 : i32
    %9 = arith.cmpi eq, %arg2, %c0_i32_8 : i32
    %10 = arith.extui %9 : i1 to i32
    %c0_i32_9 = arith.constant 0 : i32
    %11 = arith.cmpi ne, %10, %c0_i32_9 : i32
    scf.if %11 {
      %c0_10 = arith.constant 0 : index
      %c0_11 = arith.constant 0 : index
      %12 = vector.load %arg7[%c0_10, %c0_11] : memref<128x384xf32, #tpu.memory_space<vmem>>, vector<128x384xf32>
      %c0_12 = arith.constant 0 : index
      %c0_13 = arith.constant 0 : index
      %13 = vector.load %arg5[%c0_12, %c0_13] : memref<1x384xf32, #tpu.memory_space<vmem>>, vector<1x384xf32>
      %14 = vector.broadcast %13 : vector<1x384xf32> to vector<128x384xf32>
      %15 = arith.addf %12, %14 : vector<128x384xf32>
      %cst_14 = arith.constant 0.000000e+00 : f32
      %16 = vector.broadcast %cst_14 : f32 to vector<128x384xf32>
      %17 = arith.maximumf %15, %16 : vector<128x384xf32>
      %18 = arith.truncf %17 : vector<128x384xf32> to vector<128x384xbf16>
      %c0_15 = arith.constant 0 : index
      %c0_16 = arith.constant 0 : index
      %19 = vector.load %arg6[%c0_15, %c0_16] : memref<128x384xbf16, #tpu.memory_space<vmem>>, vector<128x384xbf16>
      tpu.vector_store %arg6[%c0_15, %c0_16], %18 {strides = array<i32>} : memref<128x384xbf16, #tpu.memory_space<vmem>>, vector<128x384xbf16>,
    } else {
    }
    return
  }
  func.func @transform_0(%arg0: i32, %arg1: i32, %arg2: i32) -> (i32, i32) {
    %c0_i32 = arith.constant 0 : i32
    return %arg0, %arg2 : i32, i32
  }
  func.func @transform_1(%arg0: i32, %arg1: i32, %arg2: i32) -> (i32, i32) {
    %c0_i32 = arith.constant 0 : i32
    return %arg2, %arg1 : i32, i32
  }
  func.func @transform_2(%arg0: i32, %arg1: i32, %arg2: i32) -> (i32, i32) {
    %c0_i32 = arith.constant 0 : i32
    %c0_i32_0 = arith.constant 0 : i32
    return %c0_i32, %arg1 : i32, i32
  }
  func.func @transform_3(%arg0: i32, %arg1: i32, %arg2: i32) -> (i32, i32) {
    %c0_i32 = arith.constant 0 : i32
    return %arg0, %arg1 : i32, i32
  }
}

module attributes {stable_mosaic.version = 11 : i64} {
  func.func @_mm_bias_kernel(%arg0: i32, %arg1: i32, %arg2: i32, %arg3: memref<128x384xbf16, #tpu.memory_space<vmem>>, %arg4: memref<384x384xbf16, #tpu.memory_space<vmem>>, %arg5: memref<1x384xf32, #tpu.memory_space<vmem>>, %arg6: memref<128x384xbf16, #tpu.memory_space<vmem>>, %arg7: memref<128x384xf32, #tpu.memory_space<vmem>>) attributes {dimension_semantics = [#tpu.dimension_semantics<parallel>, #tpu.dimension_semantics<parallel>, #tpu.dimension_semantics<arbitrary>], iteration_bounds = array<i64: 5, 1, 6>, scalar_prefetch = 0 : i64, scratch_operands = 1 : i64, tpu.core_type = #tpu.core_type<tc>, window_params = [{transform_indices = @transform_0, window_bounds = array<i64: 128, 384>}, {transform_indices = @transform_1, window_bounds = array<i64: 384, 384>}, {transform_indices = @transform_2, window_bounds = array<i64: 1, 384>}, {transform_indices = @transform_3, window_bounds = array<i64: 128, 384>}]} {
    %c0_i32 = arith.constant 0 : i32
    %0 = arith.cmpi eq, %arg2, %c0_i32 : i32
    %1 = arith.extui %0 : i1 to i32
    %c0_i32_0 = arith.constant 0 : i32
    %2 = arith.cmpi ne, %1, %c0_i32_0 : i32
    scf.if %2 {
      %cst_9 = arith.constant 0.000000e+00 : f32
      %12 = vector.broadcast %cst_9 : f32 to vector<128x384xf32>
      %c0_10 = arith.constant 0 : index
      %c0_11 = arith.constant 0 : index
      %13 = vector.load %arg7[%c0_10, %c0_11] : memref<128x384xf32, #tpu.memory_space<vmem>>, vector<128x384xf32>
      tpu.vector_store %arg7[%c0_10, %c0_11], %12 {strides = array<i32>} : memref<128x384xf32, #tpu.memory_space<vmem>>, vector<128x384xf32>,
    } else {
    }
    %c0 = arith.constant 0 : index
    %c0_1 = arith.constant 0 : index
    %3 = vector.load %arg7[%c0, %c0_1] : memref<128x384xf32, #tpu.memory_space<vmem>>, vector<128x384xf32>
    %c0_2 = arith.constant 0 : index
    %c0_3 = arith.constant 0 : index
    %4 = vector.load %arg3[%c0_2, %c0_3] : memref<128x384xbf16, #tpu.memory_space<vmem>>, vector<128x384xbf16>
    %c0_4 = arith.constant 0 : index
    %c0_5 = arith.constant 0 : index
    %5 = vector.load %arg4[%c0_4, %c0_5] : memref<384x384xbf16, #tpu.memory_space<vmem>>, vector<384x384xbf16>
    %cst = arith.constant dense<0.000000e+00> : vector<128x384xf32>
    %6 = tpu.matmul %4, %5, %cst {dimension_numbers = #tpu.dot_dimension_numbers<[1], [0], [0], [1], [0, 0, 1, 1], [], []>} : vector<128x384xbf16>, vector<384x384xbf16>, vector<128x384xf32> -> vector<128x384xf32>
    %7 = arith.addf %3, %6 : vector<128x384xf32>
    %c0_6 = arith.constant 0 : index
    %c0_7 = arith.constant 0 : index
    %8 = vector.load %arg7[%c0_6, %c0_7] : memref<128x384xf32, #tpu.memory_space<vmem>>, vector<128x384xf32>
    tpu.vector_store %arg7[%c0_6, %c0_7], %7 {strides = array<i32>} : memref<128x384xf32, #tpu.memory_space<vmem>>, vector<128x384xf32>,
    %c5_i32 = arith.constant 5 : i32
    %9 = arith.cmpi eq, %arg2, %c5_i32 : i32
    %10 = arith.extui %9 : i1 to i32
    %c0_i32_8 = arith.constant 0 : i32
    %11 = arith.cmpi ne, %10, %c0_i32_8 : i32
    scf.if %11 {
      %c0_9 = arith.constant 0 : index
      %c0_10 = arith.constant 0 : index
      %12 = vector.load %arg7[%c0_9, %c0_10] : memref<128x384xf32, #tpu.memory_space<vmem>>, vector<128x384xf32>
      %c0_11 = arith.constant 0 : index
      %c0_12 = arith.constant 0 : index
      %13 = vector.load %arg5[%c0_11, %c0_12] : memref<1x384xf32, #tpu.memory_space<vmem>>, vector<1x384xf32>
      %14 = vector.broadcast %13 : vector<1x384xf32> to vector<128x384xf32>
      %15 = arith.addf %12, %14 : vector<128x384xf32>
      %cst_13 = arith.constant 0.000000e+00 : f32
      %16 = vector.broadcast %cst_13 : f32 to vector<128x384xf32>
      %17 = arith.maximumf %15, %16 : vector<128x384xf32>
      %18 = arith.truncf %17 : vector<128x384xf32> to vector<128x384xbf16>
      %c0_14 = arith.constant 0 : index
      %c0_15 = arith.constant 0 : index
      %19 = vector.load %arg6[%c0_14, %c0_15] : memref<128x384xbf16, #tpu.memory_space<vmem>>, vector<128x384xbf16>
      tpu.vector_store %arg6[%c0_14, %c0_15], %18 {strides = array<i32>} : memref<128x384xbf16, #tpu.memory_space<vmem>>, vector<128x384xbf16>,
    } else {
    }
    return
  }
  func.func @transform_0(%arg0: i32, %arg1: i32, %arg2: i32) -> (i32, i32) {
    %c0_i32 = arith.constant 0 : i32
    return %arg0, %arg2 : i32, i32
  }
  func.func @transform_1(%arg0: i32, %arg1: i32, %arg2: i32) -> (i32, i32) {
    %c0_i32 = arith.constant 0 : i32
    return %arg2, %arg1 : i32, i32
  }
  func.func @transform_2(%arg0: i32, %arg1: i32, %arg2: i32) -> (i32, i32) {
    %c0_i32 = arith.constant 0 : i32
    %c0_i32_0 = arith.constant 0 : i32
    return %c0_i32, %arg1 : i32, i32
  }
  func.func @transform_3(%arg0: i32, %arg1: i32, %arg2: i32) -> (i32, i32) {
    %c0_i32 = arith.constant 0 : i32
    return %arg0, %arg1 : i32, i32
  }
}

module attributes {stable_mosaic.version = 11 : i64} {
  func.func @_mm_bias_kernel(%arg0: i32, %arg1: i32, %arg2: i32, %arg3: memref<128x384xbf16, #tpu.memory_space<vmem>>, %arg4: memref<384x128xbf16, #tpu.memory_space<vmem>>, %arg5: memref<1x128xf32, #tpu.memory_space<vmem>>, %arg6: memref<128x128xf32, #tpu.memory_space<vmem>>, %arg7: memref<128x128xf32, #tpu.memory_space<vmem>>) attributes {dimension_semantics = [#tpu.dimension_semantics<parallel>, #tpu.dimension_semantics<parallel>, #tpu.dimension_semantics<arbitrary>], iteration_bounds = array<i64: 1, 3, 7>, scalar_prefetch = 0 : i64, scratch_operands = 1 : i64, tpu.core_type = #tpu.core_type<tc>, window_params = [{transform_indices = @transform_0, window_bounds = array<i64: 128, 384>}, {transform_indices = @transform_1, window_bounds = array<i64: 384, 128>}, {transform_indices = @transform_2, window_bounds = array<i64: 1, 128>}, {transform_indices = @transform_3, window_bounds = array<i64: 128, 128>}]} {
    %c0_i32 = arith.constant 0 : i32
    %0 = arith.cmpi eq, %arg2, %c0_i32 : i32
    %1 = arith.extui %0 : i1 to i32
    %c0_i32_0 = arith.constant 0 : i32
    %2 = arith.cmpi ne, %1, %c0_i32_0 : i32
    scf.if %2 {
      %cst_9 = arith.constant 0.000000e+00 : f32
      %12 = vector.broadcast %cst_9 : f32 to vector<128x128xf32>
      %c0_10 = arith.constant 0 : index
      %c0_11 = arith.constant 0 : index
      %13 = vector.load %arg7[%c0_10, %c0_11] : memref<128x128xf32, #tpu.memory_space<vmem>>, vector<128x128xf32>
      tpu.vector_store %arg7[%c0_10, %c0_11], %12 {strides = array<i32>} : memref<128x128xf32, #tpu.memory_space<vmem>>, vector<128x128xf32>,
    } else {
    }
    %c0 = arith.constant 0 : index
    %c0_1 = arith.constant 0 : index
    %3 = vector.load %arg7[%c0, %c0_1] : memref<128x128xf32, #tpu.memory_space<vmem>>, vector<128x128xf32>
    %c0_2 = arith.constant 0 : index
    %c0_3 = arith.constant 0 : index
    %4 = vector.load %arg3[%c0_2, %c0_3] : memref<128x384xbf16, #tpu.memory_space<vmem>>, vector<128x384xbf16>
    %c0_4 = arith.constant 0 : index
    %c0_5 = arith.constant 0 : index
    %5 = vector.load %arg4[%c0_4, %c0_5] : memref<384x128xbf16, #tpu.memory_space<vmem>>, vector<384x128xbf16>
    %cst = arith.constant dense<0.000000e+00> : vector<128x128xf32>
    %6 = tpu.matmul %4, %5, %cst {dimension_numbers = #tpu.dot_dimension_numbers<[1], [0], [0], [1], [0, 0, 1, 1], [], []>} : vector<128x384xbf16>, vector<384x128xbf16>, vector<128x128xf32> -> vector<128x128xf32>
    %7 = arith.addf %3, %6 : vector<128x128xf32>
    %c0_6 = arith.constant 0 : index
    %c0_7 = arith.constant 0 : index
    %8 = vector.load %arg7[%c0_6, %c0_7] : memref<128x128xf32, #tpu.memory_space<vmem>>, vector<128x128xf32>
    tpu.vector_store %arg7[%c0_6, %c0_7], %7 {strides = array<i32>} : memref<128x128xf32, #tpu.memory_space<vmem>>, vector<128x128xf32>,
    %c6_i32 = arith.constant 6 : i32
    %9 = arith.cmpi eq, %arg2, %c6_i32 : i32
    %10 = arith.extui %9 : i1 to i32
    %c0_i32_8 = arith.constant 0 : i32
    %11 = arith.cmpi ne, %10, %c0_i32_8 : i32
    scf.if %11 {
      %c0_9 = arith.constant 0 : index
      %c0_10 = arith.constant 0 : index
      %12 = vector.load %arg7[%c0_9, %c0_10] : memref<128x128xf32, #tpu.memory_space<vmem>>, vector<128x128xf32>
      %c0_11 = arith.constant 0 : index
      %c0_12 = arith.constant 0 : index
      %13 = vector.load %arg5[%c0_11, %c0_12] : memref<1x128xf32, #tpu.memory_space<vmem>>, vector<1x128xf32>
      %14 = vector.broadcast %13 : vector<1x128xf32> to vector<128x128xf32>
      %15 = arith.addf %12, %14 : vector<128x128xf32>
      %cst_13 = arith.constant 0.000000e+00 : f32
      %16 = vector.broadcast %cst_13 : f32 to vector<128x128xf32>
      %17 = arith.maximumf %15, %16 : vector<128x128xf32>
      %c0_14 = arith.constant 0 : index
      %c0_15 = arith.constant 0 : index
      %18 = vector.load %arg6[%c0_14, %c0_15] : memref<128x128xf32, #tpu.memory_space<vmem>>, vector<128x128xf32>
      tpu.vector_store %arg6[%c0_14, %c0_15], %17 {strides = array<i32>} : memref<128x128xf32, #tpu.memory_space<vmem>>, vector<128x128xf32>,
    } else {
    }
    return
  }
  func.func @transform_0(%arg0: i32, %arg1: i32, %arg2: i32) -> (i32, i32) {
    %c0_i32 = arith.constant 0 : i32
    return %arg0, %arg2 : i32, i32
  }
  func.func @transform_1(%arg0: i32, %arg1: i32, %arg2: i32) -> (i32, i32) {
    %c0_i32 = arith.constant 0 : i32
    return %arg2, %arg1 : i32, i32
  }
  func.func @transform_2(%arg0: i32, %arg1: i32, %arg2: i32) -> (i32, i32) {
    %c0_i32 = arith.constant 0 : i32
    %c0_i32_0 = arith.constant 0 : i32
    return %c0_i32, %arg1 : i32, i32
  }
  func.func @transform_3(%arg0: i32, %arg1: i32, %arg2: i32) -> (i32, i32) {
    %c0_i32 = arith.constant 0 : i32
    return %arg0, %arg1 : i32, i32
  }
}

module attributes {stable_mosaic.version = 11 : i64} {
  func.func @_mm_bias_kernel(%arg0: i32, %arg1: i32, %arg2: i32, %arg3: memref<128x384xbf16, #tpu.memory_space<vmem>>, %arg4: memref<384x128xbf16, #tpu.memory_space<vmem>>, %arg5: memref<1x128xf32, #tpu.memory_space<vmem>>, %arg6: memref<128x128xf32, #tpu.memory_space<vmem>>, %arg7: memref<128x128xf32, #tpu.memory_space<vmem>>) attributes {dimension_semantics = [#tpu.dimension_semantics<parallel>, #tpu.dimension_semantics<parallel>, #tpu.dimension_semantics<arbitrary>], iteration_bounds = array<i64: 1, 3, 6>, scalar_prefetch = 0 : i64, scratch_operands = 1 : i64, tpu.core_type = #tpu.core_type<tc>, window_params = [{transform_indices = @transform_0, window_bounds = array<i64: 128, 384>}, {transform_indices = @transform_1, window_bounds = array<i64: 384, 128>}, {transform_indices = @transform_2, window_bounds = array<i64: 1, 128>}, {transform_indices = @transform_3, window_bounds = array<i64: 128, 128>}]} {
    %c0_i32 = arith.constant 0 : i32
    %0 = arith.cmpi eq, %arg2, %c0_i32 : i32
    %1 = arith.extui %0 : i1 to i32
    %c0_i32_0 = arith.constant 0 : i32
    %2 = arith.cmpi ne, %1, %c0_i32_0 : i32
    scf.if %2 {
      %cst_9 = arith.constant 0.000000e+00 : f32
      %12 = vector.broadcast %cst_9 : f32 to vector<128x128xf32>
      %c0_10 = arith.constant 0 : index
      %c0_11 = arith.constant 0 : index
      %13 = vector.load %arg7[%c0_10, %c0_11] : memref<128x128xf32, #tpu.memory_space<vmem>>, vector<128x128xf32>
      tpu.vector_store %arg7[%c0_10, %c0_11], %12 {strides = array<i32>} : memref<128x128xf32, #tpu.memory_space<vmem>>, vector<128x128xf32>,
    } else {
    }
    %c0 = arith.constant 0 : index
    %c0_1 = arith.constant 0 : index
    %3 = vector.load %arg7[%c0, %c0_1] : memref<128x128xf32, #tpu.memory_space<vmem>>, vector<128x128xf32>
    %c0_2 = arith.constant 0 : index
    %c0_3 = arith.constant 0 : index
    %4 = vector.load %arg3[%c0_2, %c0_3] : memref<128x384xbf16, #tpu.memory_space<vmem>>, vector<128x384xbf16>
    %c0_4 = arith.constant 0 : index
    %c0_5 = arith.constant 0 : index
    %5 = vector.load %arg4[%c0_4, %c0_5] : memref<384x128xbf16, #tpu.memory_space<vmem>>, vector<384x128xbf16>
    %cst = arith.constant dense<0.000000e+00> : vector<128x128xf32>
    %6 = tpu.matmul %4, %5, %cst {dimension_numbers = #tpu.dot_dimension_numbers<[1], [0], [0], [1], [0, 0, 1, 1], [], []>} : vector<128x384xbf16>, vector<384x128xbf16>, vector<128x128xf32> -> vector<128x128xf32>
    %7 = arith.addf %3, %6 : vector<128x128xf32>
    %c0_6 = arith.constant 0 : index
    %c0_7 = arith.constant 0 : index
    %8 = vector.load %arg7[%c0_6, %c0_7] : memref<128x128xf32, #tpu.memory_space<vmem>>, vector<128x128xf32>
    tpu.vector_store %arg7[%c0_6, %c0_7], %7 {strides = array<i32>} : memref<128x128xf32, #tpu.memory_space<vmem>>, vector<128x128xf32>,
    %c5_i32 = arith.constant 5 : i32
    %9 = arith.cmpi eq, %arg2, %c5_i32 : i32
    %10 = arith.extui %9 : i1 to i32
    %c0_i32_8 = arith.constant 0 : i32
    %11 = arith.cmpi ne, %10, %c0_i32_8 : i32
    scf.if %11 {
      %c0_9 = arith.constant 0 : index
      %c0_10 = arith.constant 0 : index
      %12 = vector.load %arg7[%c0_9, %c0_10] : memref<128x128xf32, #tpu.memory_space<vmem>>, vector<128x128xf32>
      %c0_11 = arith.constant 0 : index
      %c0_12 = arith.constant 0 : index
      %13 = vector.load %arg5[%c0_11, %c0_12] : memref<1x128xf32, #tpu.memory_space<vmem>>, vector<1x128xf32>
      %14 = vector.broadcast %13 : vector<1x128xf32> to vector<128x128xf32>
      %15 = arith.addf %12, %14 : vector<128x128xf32>
      %cst_13 = arith.constant 0.000000e+00 : f32
      %16 = vector.broadcast %cst_13 : f32 to vector<128x128xf32>
      %17 = arith.maximumf %15, %16 : vector<128x128xf32>
      %c0_14 = arith.constant 0 : index
      %c0_15 = arith.constant 0 : index
      %18 = vector.load %arg6[%c0_14, %c0_15] : memref<128x128xf32, #tpu.memory_space<vmem>>, vector<128x128xf32>
      tpu.vector_store %arg6[%c0_14, %c0_15], %17 {strides = array<i32>} : memref<128x128xf32, #tpu.memory_space<vmem>>, vector<128x128xf32>,
    } else {
    }
    return
  }
  func.func @transform_0(%arg0: i32, %arg1: i32, %arg2: i32) -> (i32, i32) {
    %c0_i32 = arith.constant 0 : i32
    return %arg0, %arg2 : i32, i32
  }
  func.func @transform_1(%arg0: i32, %arg1: i32, %arg2: i32) -> (i32, i32) {
    %c0_i32 = arith.constant 0 : i32
    return %arg2, %arg1 : i32, i32
  }
  func.func @transform_2(%arg0: i32, %arg1: i32, %arg2: i32) -> (i32, i32) {
    %c0_i32 = arith.constant 0 : i32
    %c0_i32_0 = arith.constant 0 : i32
    return %c0_i32, %arg1 : i32, i32
  }
  func.func @transform_3(%arg0: i32, %arg1: i32, %arg2: i32) -> (i32, i32) {
    %c0_i32 = arith.constant 0 : i32
    return %arg0, %arg1 : i32, i32
  }
}

module attributes {stable_mosaic.version = 11 : i64} {
  func.func @_maxpool_kernel(%arg0: i32, %arg1: i32, %arg2: memref<9x128x128xf32, #tpu.memory_space<vmem>>, %arg3: memref<128x128xf32, #tpu.memory_space<vmem>>) attributes {dimension_semantics = [#tpu.dimension_semantics<parallel>, #tpu.dimension_semantics<parallel>], iteration_bounds = array<i64: 1, 1>, scalar_prefetch = 0 : i64, scratch_operands = 0 : i64, tpu.core_type = #tpu.core_type<tc>, window_params = [{transform_indices = @transform_0, window_bounds = array<i64: 9, 128, 128>}, {transform_indices = @transform_1, window_bounds = array<i64: 128, 128>}]} {
    %c0 = arith.constant 0 : index
    %c0_0 = arith.constant 0 : index
    %c0_1 = arith.constant 0 : index
    %0 = vector.load %arg2[%c0, %c0_0, %c0_1] : memref<9x128x128xf32, #tpu.memory_space<vmem>>, vector<9x128x128xf32>
    %cst = arith.constant dense<0xFF800000> : vector<128x128xf32>
    %1 = vector.multi_reduction <maximumf>, %0, %cst [0] : vector<9x128x128xf32> to vector<128x128xf32>
    %c0_2 = arith.constant 0 : index
    %c0_3 = arith.constant 0 : index
    %2 = vector.load %arg3[%c0_2, %c0_3] : memref<128x128xf32, #tpu.memory_space<vmem>>, vector<128x128xf32>
    tpu.vector_store %arg3[%c0_2, %c0_3], %1 {strides = array<i32>} : memref<128x128xf32, #tpu.memory_space<vmem>>, vector<128x128xf32>,
    return
  }
  func.func @transform_0(%arg0: i32, %arg1: i32) -> (i32, i32, i32) {
    %c0_i32 = arith.constant 0 : i32
    %c0_i32_0 = arith.constant 0 : i32
    return %c0_i32, %arg0, %arg1 : i32, i32, i32
  }
  func.func @transform_1(%arg0: i32, %arg1: i32) -> (i32, i32) {
    %c0_i32 = arith.constant 0 : i32
    return %arg0, %arg1 : i32, i32
  }
}

</mosaic_0001>

<bundles_post_ra>
// kernel: _lambda_.7
= control target key start
LH: loop header
LB: loop body
LE: loop exit
PB: predicated region body
PF: predicated region fallthrough
CT: control target
= control target key end

     0   :  { %8 = vsyncpa [#allocation4], 0  ;;  %s2148_s0 = inlined_call_operand.vmem [shape: bf16[640,128], index: 0, kind: input, shape index: {}]   ;;  %s2149_s1 = inlined_call_operand.hbm [shape: bf16[128,768], index: 1, kind: input, shape index: {}]   ;;  %s2150_s2 = inlined_call_operand.vmem [shape: f32[1,768], index: 2, kind: input, shape index: {}]   ;;  %s2151_s3 = inlined_call_operand.vmem [shape: bf16[640,768], index: 3, kind: output, shape index: {}]  }
   0x1   :  { %10 = vsyncpa [#allocation4 + $0x1], 0  ;;  %s1728_s12 = smov 0   ;;  %s1730_s13 = smov 0  }
   0x2   :  { %s1732_s14 = smov 0   ;;  %s1734_s15 = smov 0  }
   0x3   :  { %s1736_s16 = smov 0   ;;  %s1738_s17 = smov 0  }
   0x4   :  { %s1740_s18 = smov 0   ;;  %s1742_s19 = smov 0  }
   0x5   :  { %s1744_s20 = smov 0   ;;  %s1746_s21 = smov 0  }
   0x6 LB: > { %2155 = sst [smem:[#allocation7_spill]] %s1699_s20  ;;  %s1267_s22 = sadd.s32 4294967295, %s1703_s21   ;;  %s1703_s21 = sphi %s1746_s21, %s16_s21   ;;  %s1699_s20 = sphi %s1744_s20, %s2164_s20   ;;  %s1695_s19 = sphi %s1742_s19, %s2171_s19   ;;  %s1691_s18 = sphi %s1740_s18, %s2162_s18   ;;  %s1687_s17 = sphi %s1738_s17, %s2170_s17   ;;  %s1683_s16 = sphi %s1736_s16, %s2169_s16   ;;  %s1679_s15 = sphi %s1734_s15, %s2168_s15   ;;  %s1675_s14 = sphi %s1732_s14, %s2167_s14   ;;  %s1671_s13 = sphi %s1730_s13, %s2166_s13   ;;  %s1667_s12 = sphi %s1728_s12, %s2165_s12  }
   0x7   : > { %s31_s23 = sadd.s32 1, %s1695_s19  ;;  %s35_s24 = sadd.s32 1, %s1699_s20 }
   0x8   : > { %p33_p0 = scmp.ge.s32.totalorder %s31_s23, 2  ;;  %s72_s25 = sadd.s32 1, %s1683_s16 }
   0x9   : > { %p79_p1 = scmp.ne.s32.totalorder %s1683_s16, %s1679_s15  ;;  %p80_p2 = scmp.eq.s32.totalorder %s1703_s21, 0 }
   0xa   : > { %s2173_s23 = smov (%p33_p0, %s31_s23), 0  ;;  %s2175_s24 = smov (!%p33_p0, %s35_s24), %s1699_s20 }
   0xb   : > { %2156 = sst [smem:[#allocation8_spill]] %s2173_s23  ;;  %s68_s26 = ssub.s32 %s1695_s19, %s2173_s23 }
   0xc   : > { %p37_p3 = scmp.ge.s32.totalorder %s2175_s24, 5  ;;  %p70_p4 = scmp.eq.s32.totalorder %s68_s26, 0 }
   0xd   : > { %p1788_p5 = por %p80_p2, %p79_p1  ;;  %p85_p6 = scmp.ne.s32.totalorder %s1679_s15, %s1675_s14 }
   0xe   : > { %s2177_s24 = smov (%p37_p3, %s2175_s24), 0  ;;  %p86_p7 = scmp.eq.s32.totalorder %s1267_s22, 0 }
   0xf   : > { %2158 = sst [smem:[#allocation9_spill]] %s2177_s24  ;;  %s121_s29 = ssub.s32 %s1699_s20, %s2177_s24 }
  0x10   : > { %s1796_s28 = scalar_select %p70_p4, %s1683_s16, %s72_s25  }
  0x11   : > { %s123_s30 = sor.u32 %s121_s29, %s68_s26  ;;  %s126_s4 = sadd.s32 1, %s1671_s13 }
  0x12   : > { %p1801_p8 = por %p86_p7, %p85_p6  ;;  %p124_p9 = scmp.eq.s32.totalorder %s123_s30, 0 }
  0x13   : > { %p136_p10 = scmp.ne.s32.totalorder %s1671_s13, %s1667_s12  ;;  %p137_p11 = scmp.eq.s32.totalorder %s1267_s22, 9 }
  0x14   : > { %s1808_s6 = scalar_select %p124_p9, %s1671_s13, %s126_s4  }
  0x15   : > { %p1810_p12 = por %p137_p11, %p136_p10  ;;  %p1507_p13 = scmp.lt.s32.totalorder %s1703_s21, 10 }
  0x16   : > { %s175_s8 = sand.u32 1, %s1683_s16   ;;  %s1440_s10 = smul.u32 12, %s1695_s19 }
  0x17   : > { %s1497_s9 = smul.u32 192, %s175_s8  ;;  %p1504_p0 = pnand %p1507_p13, %p1788_p5 }
  0x18   : > { %s187_s25 = scalar_lea.hbm %s2149_s1, %s1440_s10  ;;  %s176_s30 = scalar_lea.sflag [#allocation4], %s175_s8 }
  0x19   : > { %s179_s26 = scalar_lea.vmem [#allocation3], %s1497_s9  ;;  %s188_s29 = sshll.u32 %s187_s25, 4  ;;  %s189_s29 = int_to_ptr.hbm [resolvable:$true] %s188_s29 }
  0x1a   : > { %s190_s22 = sshll.u32 %s179_s26, 4  ;;  %s1705_s4 = smov 384   ;;  %s191_s22 = int_to_ptr.vmem [resolvable:$true] %s190_s22 }
  0x1b   : > { %s1706_s24 = smov 192   ;;  %s1707_s23 = smov 12  }
  0x1c   : > { %1506 = dma.hbm_to_vmem [thread:$0]  (!%p1504_p0), %s189_s29, 3072, %s191_s22, %s176_s30, %s1705_s4, %s1706_s24, %s1707_s23  }
  0x1d   : > { %p1272_p1 = scmp.ge.s32.totalorder %s1703_s21, 1  ;;  %p206_p2 = scmp.lt.s32.totalorder %s1703_s21, 11 }
  0x1f   : > { %p207_p3 = pnand %p1272_p1, %p206_p2 }
  0x20   : > { %s212_s27 = sand.u32 (!%p207_p3), 1, %s1679_s15  }
  0x21   : > { %210 = sbr.rel (%p207_p3) target bundleno = 311 (0x137), region = 32  ;;  %s213_s11 = scalar_lea.sflag (!%p207_p3), [#allocation4], %s212_s27 }
  0x22   : > { %s1498_s20 = smul.u32 (!%p207_p3), 192, %s212_s27 }
  0x24   : > { %s1825_s10 = scalar_lea.vmem (!%p207_p3), [#allocation3], %s1498_s20 }
  0x26   : > { %1662 = dma.done.wait (%p1801_p8), %s213_s11, 3072  }
  0x27   : > { %1664 = vsyncadd (%p1801_p8), %s213_s11, 4294964224  ;;  %v1393_v0 = vld [vmem:[%s1825_s10 + $0xa8] sm:$0xf]  ;;  %v1471_v1 = vld [vmem:[%s1825_s10 + $0xb0] sm:$0xf0]  ;;  %s1273_s20 = sshll.u32 %s1691_s18, 4 }
  0x28   : > { %v1470_v2 = vld [vmem:[%s1825_s10 + $0xac] sm:$0xf]  ;;  %v1394_v3 = vor.u32 %v1471_v1, %v1393_v0  ;;  %v1395_v4 = vld [vmem:[%s1825_s10 + $0xb4] sm:$0xf0]  ;;  %v1401_v5 = vld [vmem:[%s1825_s10 + $0xb0] sm:$0xf] }
  0x29   : > { %v1472_v6 = vld [vmem:[%s1825_s10 + $0xb8] sm:$0xf0]  ;;  %v1837_v7 = vor.u32 %v1470_v2, %v1395_v4  ;;  %v1381_v9 = vld [vmem:[%s1825_s10 + $0x90] sm:$0xf]  ;;  %v1467_v11 = vld [vmem:[%s1825_s10 + $0x94] sm:$0xf] }
  0x2a   : > { %v1839_v8 = vor.u32 %v1472_v6, %v1401_v5  ;;  %v1468_v10 = vld [vmem:[%s1825_s10 + $0x98] sm:$0xf0]  ;;  %593 = vmatpush.bf16.msra.mxu0 %v1394_v3  ;;  %1473 = vmatpush.bf16.msra.mxu3 %v1394_v3  ;;  %v1383_v13 = vld [vmem:[%s1825_s10 + $0x9c] sm:$0xf0]  ;;  %v1389_v14 = vld [vmem:[%s1825_s10 + $0x98] sm:$0xf] }
  0x2b   : > { %v1382_v12 = vor.u32 %v1468_v10, %v1381_v9  ;;  %v1469_v15 = vld [vmem:[%s1825_s10 + $0xa0] sm:$0xf0]  ;;  %642 = vmatpush.bf16.msra.mxu1 %v1837_v7  ;;  %v1849_v16 = vor.u32 %v1467_v11, %v1383_v13  ;;  %v1369_v18 = vld [vmem:[%s1825_s10 + $0x78] sm:$0xf]  ;;  %v1464_v20 = vld [vmem:[%s1825_s10 + $0x7c] sm:$0xf] }
  0x2c   : > { %691 = vmatpush.bf16.msra.mxu2 %v1839_v8  ;;  %v1851_v17 = vor.u32 %v1469_v15, %v1389_v14  ;;  %v1465_v19 = vld [vmem:[%s1825_s10 + $0x80] sm:$0xf0]  ;;  %v1371_v21 = vld [vmem:[%s1825_s10 + $0x84] sm:$0xf0]  ;;  %v1377_v22 = vld [vmem:[%s1825_s10 + $0x80] sm:$0xf] }
  0x2d   : > { %v1466_v23 = vld [vmem:[%s1825_s10 + $0x88] sm:$0xf0]  ;;  %v1370_v24 = vor.u32 %v1465_v19, %v1369_v18  ;;  %v1861_v25 = vor.u32 %v1464_v20, %v1371_v21  ;;  %v1357_v27 = vld [vmem:[%s1825_s10 + $0x60] sm:$0xf]  ;;  %v1461_v29 = vld [vmem:[%s1825_s10 + $0x64] sm:$0xf] }
  0x2e   : > { %594 = vmatpush.bf16.msra.mxu0 %v1382_v12  ;;  %1474 = vmatpush.bf16.msra.mxu3 %v1382_v12  ;;  %v1863_v26 = vor.u32 %v1466_v23, %v1377_v22  ;;  %v1462_v28 = vld [vmem:[%s1825_s10 + $0x68] sm:$0xf0]  ;;  %v1359_v30 = vld [vmem:[%s1825_s10 + $0x6c] sm:$0xf0]  ;;  %v1365_v31 = vld [vmem:[%s1825_s10 + $0x68] sm:$0xf] }
  0x2f   : > { %643 = vmatpush.bf16.msra.mxu1 %v1849_v16  ;;  %v1463_v32 = vld [vmem:[%s1825_s10 + $0x70] sm:$0xf0]  ;;  %v1358_v33 = vor.u32 %v1462_v28, %v1357_v27  ;;  %v1874_v34 = vor.u32 %v1461_v29, %v1359_v30  ;;  %v1345_v36 = vld [vmem:[%s1825_s10 + $0x48] sm:$0xf]  ;;  %v1458_v38 = vld [vmem:[%s1825_s10 + $0x4c] sm:$0xf] }
  0x30   : > { %692 = vmatpush.bf16.msra.mxu2 %v1851_v17  ;;  %v1876_v35 = vor.u32 %v1463_v32, %v1365_v31  ;;  %v1459_v37 = vld [vmem:[%s1825_s10 + $0x50] sm:$0xf0]  ;;  %v1347_v39 = vld [vmem:[%s1825_s10 + $0x54] sm:$0xf0]  ;;  %v1353_v40 = vld [vmem:[%s1825_s10 + $0x50] sm:$0xf] }
  0x31   : > { %v1460_v41 = vld [vmem:[%s1825_s10 + $0x58] sm:$0xf0]  ;;  %v1346_v42 = vor.u32 %v1459_v37, %v1345_v36  ;;  %p1884_p4 = scmp.lt.s32.totalorder %s1273_s20, 79  ;;  %v1350_v43 = vor.u32 %v1458_v38, %v1347_v39  ;;  %v1333_v45 = vld [vmem:[%s1825_s10 + $0x30] sm:$0xf]  ;;  %s1943_s14 = smul.u32 3, %s1687_s17 }
  0x32   : > { %595 = vmatpush.bf16.msra.mxu0 %v1370_v24  ;;  %1475 = vmatpush.bf16.msra.mxu3 %v1370_v24  ;;  %v1890_v44 = vor.u32 %v1460_v41, %v1353_v40  ;;  %v1456_v46 = vld [vmem:[%s1825_s10 + $0x38] sm:$0xf0]  ;;  %v1455_v47 = vld [vmem:[%s1825_s10 + $0x34] sm:$0xf]  ;;  %v1335_v48 = vld [vmem:[%s1825_s10 + $0x3c] sm:$0xf0] }
  0x33   : > { %644 = vmatpush.bf16.msra.mxu1 %v1861_v25  ;;  %v1341_v49 = vld [vmem:[%s1825_s10 + $0x38] sm:$0xf]  ;;  %v1457_v50 = vld [vmem:[%s1825_s10 + $0x40] sm:$0xf0]  ;;  %v1334_v51 = vor.u32 %v1456_v46, %v1333_v45  ;;  %s2179_s20 = smov (!%p1884_p4, %s1273_s20), 79  ;;  %v1338_v52 = vor.u32 %v1455_v47, %v1335_v48  ;;  %p263_p5 = scmp.lt.s32.totalorder %s1943_s14, 5 }
  0x34   : > { %693 = vmatpush.bf16.msra.mxu2 %v1863_v26  ;;  %v1903_v53 = vor.u32 %v1457_v50, %v1341_v49  ;;  %v1321_v54 = vld [vmem:[%s1825_s10 + $0x18] sm:$0xf]  ;;  %v1453_v55 = vld [vmem:[%s1825_s10 + $0x20] sm:$0xf0]  ;;  %v1452_v56 = vld [vmem:[%s1825_s10 + $0x1c] sm:$0xf] }
  0x35   : > { %v1323_v57 = vld [vmem:[%s1825_s10 + $0x24] sm:$0xf0]  ;;  %v1329_v58 = vld [vmem:[%s1825_s10 + $0x20] sm:$0xf]  ;;  %v1454_v59 = vld [vmem:[%s1825_s10 + $0x28] sm:$0xf0]  ;;  %v1322_v60 = vor.u32 %v1453_v55, %v1321_v54 }
  0x36   : > { %596 = vmatpush.bf16.msra.mxu0 %v1358_v33  ;;  %1476 = vmatpush.bf16.msra.mxu3 %v1358_v33  ;;  %s1274_s24 = sshll.u32 %s2179_s20, 2  ;;  %v1326_v61 = vor.u32 %v1452_v56, %v1323_v57  ;;  %v1330_v62 = vor.u32 %v1454_v59, %v1329_v58  ;;  %v1309_v63 = vld [vmem:[%s1825_s10] sm:$0xf]  ;;  %v1450_v0 = vld [vmem:[%s1825_s10 + $0x8] sm:$0xf0]  ;;  %s248_s30 = sand.u32 1, %s1667_s12  }
  0x37   : > { %645 = vmatpush.bf16.msra.mxu1 %v1874_v34  ;;  %v1449_v1 = vld [vmem:[%s1825_s10 + $0x4] sm:$0xf]  ;;  %v1311_v2 = vld [vmem:[%s1825_s10 + $0xc] sm:$0xf0]  ;;  %v1317_v3 = vld [vmem:[%s1825_s10 + $0x8] sm:$0xf]  ;;  %v1310_v5 = vor.u32 %v1450_v0, %v1309_v63  ;;  %s1922_s9 = scalar_lea.vmem %s2148_s0, %s1274_s24 }
  0x38   : > { %694 = vmatpush.bf16.msra.mxu2 %v1876_v35  ;;  %v1451_v4 = vld [vmem:[%s1825_s10 + $0x10] sm:$0xf0]  ;;  %v1314_v6 = vor.u32 %v1449_v1, %v1311_v2  ;;  %v1441_v10 = vld [vmem:[%s1922_s9] sm:$0xff]  ;;  %v1442_v12 = vld [vmem:[%s1922_s9 + $0x8] sm:$0xff]  ;;  %s264_s25 = scalar_select %p263_p5, %s1943_s14, 5 }
  0x39   : > { %v1318_v9 = vor.u32 %v1451_v4, %v1317_v3  ;;  %v1447_v11 = vld [vmem:[%s1922_s9 + $0x30] sm:$0xff]  ;;  %v1448_v13 = vld [vmem:[%s1922_s9 + $0x38] sm:$0xff]  ;;  %v1446_v15 = vld [vmem:[%s1922_s9 + $0x28] sm:$0xff]  ;;  %s1499_s4 = smul.u32 192, %s248_s30 }
  0x3a   : > { %597 = vmatpush.bf16.msra.mxu0 %v1346_v42  ;;  %1477 = vmatpush.bf16.msra.mxu3 %v1346_v42  ;;  %v1444_v14 = vld [vmem:[%s1922_s9 + $0x18] sm:$0xff]  ;;  %s265_s29 = scalar_lea.vmem %s2150_s2, %s264_s25  ;;  %s1500_s12 = smul.u32 (%p1810_p12), 96, %s1691_s18 }
  0x3b   : > { %646 = vmatpush.bf16.msra.mxu1 %v1350_v43  ;;  %s1959_s17 = scalar_lea.vmem [#allocation5], %s1499_s4 }
  0x3c   : > { %695 = vmatpush.bf16.msra.mxu2 %v1890_v44  ;;  %s1065_s27 = sadd.s32 (%p1810_p12), %s1500_s12, %s1943_s14 }
  0x3d   : > { %s1405_s11 = sshll.u32 (%p1810_p12), %s1065_s27, 2 }
  0x3e   : > { %598 = vmatpush.bf16.msra.mxu0 %v1334_v51  ;;  %1478 = vmatpush.bf16.msra.mxu3 %v1334_v51  ;;  %s2054_s7 = scalar_lea.vmem (%p1810_p12), %s2151_s3, %s1405_s11 }
  0x3f   : > { %647 = vmatpush.bf16.msra.mxu1 %v1338_v52 }
  0x40   : > { %696 = vmatpush.bf16.msra.mxu2 %v1903_v53 }
  0x42   : > { %599 = vmatpush.bf16.msra.mxu0 %v1322_v60  ;;  %1479 = vmatpush.bf16.msra.mxu3 %v1322_v60 }
  0x43   : > { %648 = vmatpush.bf16.msra.mxu1 %v1326_v61 }
  0x44   : > { %697 = vmatpush.bf16.msra.mxu2 %v1330_v62 }
  0x46   : > { %600 = vmatpush.bf16.msra.mxu0 %v1310_v5  ;;  %1480 = vmatpush.bf16.msra.mxu3 %v1310_v5 }
  0x47   : > { %649 = vmatpush.bf16.msra.mxu1 %v1314_v6 }
  0x48   : > { %698 = vmatpush.bf16.msra.mxu2 %v1318_v9 }
  0x49   : > { %601 = vmatmul.bf16.vlgmr.msra.gmra.mxu0 %v1441_v10  ;;  %631 = vmatmul.bf16.vlgmr.msra.gmra.mxu3 %v1447_v11 }
  0x4a   : > { %1481 = vmatpush.bf16.msrb.mxu3 %v1837_v7  ;;  %650 = vmatmul.bf16.vlgmr.msra.gmra.mxu1 %v1441_v10  ;;  %v1443_v7 = vld [vmem:[%s1922_s9 + $0x10] sm:$0xff] }
  0x4b   : > { %699 = vmatmul.bf16.vlgmr.msra.gmra.mxu2 %v1441_v10 }
  0x4e   : > { %1482 = vmatpush.bf16.msrb.mxu3 %v1849_v16  ;;  %v887_v16 = vld [vmem:[%s265_s29] sm:$0x7] }
  0x4f   : > { %v1953_v18 = vperm.slane %v887_v16, 1 }
  0x52   : > { %1483 = vmatpush.bf16.msrb.mxu3 %v1861_v25  ;;  %v1957_v25 = vperm.slane %v887_v16, 2 }
  0x56   : > { %1484 = vmatpush.bf16.msrb.mxu3 %v1874_v34 }
  0x59   : > { %606 = vmatmul.bf16.gmra.mxu0 %v1442_v12  ;;  %636 = vmatmul.bf16.gmra.mxu3 %v1448_v13 }
  0x5a   : > { %1485 = vmatpush.bf16.msrb.mxu3 %v1350_v43  ;;  %655 = vmatmul.bf16.gmra.mxu1 %v1442_v12 }
  0x5b   : > { %704 = vmatmul.bf16.gmra.mxu2 %v1442_v12 }
  0x5e   : > { %1486 = vmatpush.bf16.msrb.mxu3 %v1338_v52 }
  0x62   : > { %1487 = vmatpush.bf16.msrb.mxu3 %v1326_v61 }
  0x66   : > { %1488 = vmatpush.bf16.msrb.mxu3 %v1314_v6 }
  0x69   : > { %611 = vmatmul.bf16.gmra.mxu0 %v1443_v7  ;;  %680 = vmatmul.bf16.vlgmr.msrb.gmra.mxu3 %v1447_v11 }
  0x6a   : > { %1489 = vmatpush.bf16.msra.mxu3 %v1839_v8  ;;  %660 = vmatmul.bf16.gmra.mxu1 %v1443_v7  ;;  %v1445_v8 = vld [vmem:[%s1922_s9 + $0x20] sm:$0xff] }
  0x6b   : > { %709 = vmatmul.bf16.gmra.mxu2 %v1443_v7 }
  0x6e   : > { %1490 = vmatpush.bf16.msra.mxu3 %v1851_v17  ;;  %v1950_v17 = vperm.slane %v887_v16, 0 }
  0x72   : > { %1491 = vmatpush.bf16.msra.mxu3 %v1863_v26 }
  0x76   : > { %1492 = vmatpush.bf16.msra.mxu3 %v1876_v35 }
  0x79   : > { %616 = vmatmul.bf16.gmra.mxu0 %v1444_v14  ;;  %685 = vmatmul.bf16.gmra.mxu3 %v1448_v13 }
  0x7a   : > { %1493 = vmatpush.bf16.msra.mxu3 %v1890_v44  ;;  %665 = vmatmul.bf16.gmra.mxu1 %v1444_v14 }
  0x7b   : > { %714 = vmatmul.bf16.gmra.mxu2 %v1444_v14 }
  0x7e   : > { %1494 = vmatpush.bf16.msra.mxu3 %v1903_v53 }
  0x82   : > { %1495 = vmatpush.bf16.msra.mxu3 %v1330_v62 }
  0x86   : > { %1496 = vmatpush.bf16.msra.mxu3 %v1318_v9 }
  0x89   : > { %621 = vmatmul.bf16.gmra.mxu0 %v1445_v8  ;;  %729 = vmatmul.bf16.vlgmr.msra.gmra.mxu3 %v1447_v11 }
  0x8a   : > { %670 = vmatmul.bf16.gmra.mxu1 %v1445_v8 }
  0x8b   : > { %719 = vmatmul.bf16.gmra.mxu2 %v1445_v8 }
  0x99   : > { %626 = vmatmul.bf16.gmra.mxu0 %v1446_v15  ;;  %734 = vmatmul.bf16.gmra.mxu3 %v1448_v13 }
  0x9a   : > { %675 = vmatmul.bf16.gmra.mxu1 %v1446_v15 }
  0x9b   : > { %724 = vmatmul.bf16.gmra.mxu2 %v1446_v15 }
  0xc6   : > { %v602_v19 = vpop.f32.mrf.mxu0 }
  0xc7   : > { %v895_v20 = vadd.f32 %v1950_v17, %v602_v19  ;;  %v651_v21 = vpop.f32.mrf.mxu1 }
  0xc8   : > { %v896_v22 = vadd.f32 %v1953_v18, %v651_v21 }
  0xc9   : > { %v943_v23 = vmax.f32 %v895_v20, 0.0 }
  0xca   : > { %v944_v24 = vmax.f32 %v896_v22, 0.0 }
  0xcc   : > { %v991_v26 = vpack.c.bf16 %v944_v24, %v943_v23  ;;  %v632_v27 = vpop.f32.mrf.mxu3 }
  0xcd   : > { %v931_v12 = vadd.f32 %v1950_v17, %v632_v27 }
  0xce   : > { %v700_v28 = vpop.f32.mrf.mxu2  ;;  %1023 = vst [vmem:[%s1959_s17] sm:$0xff] %v991_v26  ;;  %v604_v30 = vpop.f32.mrf.mxu0 }
  0xcf   : > { %v897_v29 = vadd.f32 %v1957_v25, %v700_v28  ;;  %v898_v31 = vadd.f32 %v1950_v17, %v604_v30  ;;  %v653_v32 = vpop.f32.mrf.mxu1  ;;  %v979_v19 = vmax.f32 %v931_v12, 0.0 }
  0xd0   : > { %v899_v34 = vadd.f32 %v1953_v18, %v653_v32 }
  0xd1   : > { %v945_v33 = vmax.f32 %v897_v29, 0.0  ;;  %v946_v35 = vmax.f32 %v898_v31, 0.0 }
  0xd2   : > { %v947_v37 = vmax.f32 %v899_v34, 0.0 }
  0xd3   : > { %v992_v36 = vpack.c.bf16 %v945_v33, %v945_v33 }
  0xd4   : > { %v993_v38 = vpack.c.bf16 %v947_v37, %v946_v35  ;;  %v634_v39 = vpop.f32.mrf.mxu3 }
  0xd5   : > { %1024 = vst [vmem:[%s1959_s17 + $0x8] sm:$0xf] %v992_v36  ;;  %v934_v30 = vadd.f32 %v1950_v17, %v634_v39 }
  0xd6   : > { %v702_v40 = vpop.f32.mrf.mxu2  ;;  %1025 = vst [vmem:[%s1959_s17 + $0xc] sm:$0xff] %v993_v38  ;;  %v607_v42 = vpop.f32.mrf.mxu0 }
  0xd7   : > { %v900_v41 = vadd.f32 %v1957_v25, %v702_v40  ;;  %v901_v43 = vadd.f32 %v1950_v17, %v607_v42  ;;  %v656_v44 = vpop.f32.mrf.mxu1  ;;  %v982_v37 = vmax.f32 %v934_v30, 0.0 }
  0xd8   : > { %v902_v46 = vadd.f32 %v1953_v18, %v656_v44 }
  0xd9   : > { %v948_v45 = vmax.f32 %v900_v41, 0.0  ;;  %v949_v47 = vmax.f32 %v901_v43, 0.0 }
  0xda   : > { %v950_v49 = vmax.f32 %v902_v46, 0.0 }
  0xdb   : > { %v994_v48 = vpack.c.bf16 %v948_v45, %v948_v45 }
  0xdc   : > { %v995_v50 = vpack.c.bf16 %v950_v49, %v949_v47  ;;  %v1971_v51 = vpop.f32.mrf.mxu3 }
  0xdd   : > { %1026 = vst [vmem:[%s1959_s17 + $0x14] sm:$0xf] %v994_v48  ;;  %v937_v47 = vadd.f32 %v1950_v17, %v1971_v51 }
  0xde   : > { %v705_v52 = vpop.f32.mrf.mxu2  ;;  %1027 = vst [vmem:[%s1959_s17 + $0x18] sm:$0xff] %v995_v50  ;;  %v609_v54 = vpop.f32.mrf.mxu0 }
  0xdf   : > { %v903_v53 = vadd.f32 %v1957_v25, %v705_v52  ;;  %v904_v55 = vadd.f32 %v1950_v17, %v609_v54  ;;  %v658_v56 = vpop.f32.mrf.mxu1 }
  0xe0   : > { %v905_v58 = vadd.f32 %v1953_v18, %v658_v56 }
  0xe1   : > { %v951_v57 = vmax.f32 %v903_v53, 0.0  ;;  %v952_v59 = vmax.f32 %v904_v55, 0.0  ;;  %v985_v55 = vmax.f32 %v937_v47, 0.0 }
  0xe2   : > { %v953_v61 = vmax.f32 %v905_v58, 0.0 }
  0xe3   : > { %v996_v60 = vpack.c.bf16 %v951_v57, %v951_v57 }
  0xe4   : > { %v997_v62 = vpack.c.bf16 %v953_v61, %v952_v59  ;;  %v1978_v63 = vpop.f32.mrf.mxu3 }
  0xe5   : > { %1028 = vst [vmem:[%s1959_s17 + $0x20] sm:$0xf] %v996_v60 }
  0xe6   : > { %v707_v0 = vpop.f32.mrf.mxu2  ;;  %1029 = vst [vmem:[%s1959_s17 + $0x24] sm:$0xff] %v997_v62  ;;  %v612_v2 = vpop.f32.mrf.mxu0 }
  0xe7   : > { %v906_v1 = vadd.f32 %v1957_v25, %v707_v0  ;;  %v907_v3 = vadd.f32 %v1950_v17, %v612_v2  ;;  %v661_v4 = vpop.f32.mrf.mxu1 }
  0xe8   : > { %v908_v6 = vadd.f32 %v1953_v18, %v661_v4 }
  0xe9   : > { %v954_v5 = vmax.f32 %v906_v1, 0.0  ;;  %v955_v9 = vmax.f32 %v907_v3, 0.0  ;;  %v940_v1 = vadd.f32 %v1950_v17, %v1978_v63 }
  0xea   : > { %v956_v11 = vmax.f32 %v908_v6, 0.0 }
  0xeb   : > { %v998_v10 = vpack.c.bf16 %v954_v5, %v954_v5 }
  0xec   : > { %v999_v13 = vpack.c.bf16 %v956_v11, %v955_v9  ;;  %v681_v7 = vpop.f32.mrf.mxu3 }
  0xed   : > { %1030 = vst [vmem:[%s1959_s17 + $0x2c] sm:$0xf] %v998_v10  ;;  %v932_v14 = vadd.f32 %v1953_v18, %v681_v7  ;;  %v988_v10 = vmax.f32 %v940_v1, 0.0 }
  0xee   : > { %v710_v8 = vpop.f32.mrf.mxu2  ;;  %1031 = vst [vmem:[%s1959_s17 + $0x30] sm:$0xff] %v999_v13  ;;  %v614_v16 = vpop.f32.mrf.mxu0 }
  0xef   : > { %v909_v15 = vadd.f32 %v1957_v25, %v710_v8  ;;  %v980_v20 = vmax.f32 %v932_v14, 0.0  ;;  %v910_v21 = vadd.f32 %v1950_v17, %v614_v16  ;;  %v663_v22 = vpop.f32.mrf.mxu1 }
  0xf0   : > { %v911_v24 = vadd.f32 %v1953_v18, %v663_v22 }
  0xf1   : > { %v957_v23 = vmax.f32 %v909_v15, 0.0  ;;  %v1015_v26 = vpack.c.bf16 %v980_v20, %v979_v19  ;;  %v958_v27 = vmax.f32 %v910_v21, 0.0 }
  0xf2   : > { %v959_v29 = vmax.f32 %v911_v24, 0.0 }
  0xf3   : > { %v1000_v28 = vpack.c.bf16 %v957_v23, %v957_v23  ;;  %1047 = vst [vmem:[%s1959_s17 + $0x90] sm:$0xff] %v1015_v26 }
  0xf4   : > { %v1001_v31 = vpack.c.bf16 %v959_v29, %v958_v27  ;;  %v683_v32 = vpop.f32.mrf.mxu3 }
  0xf5   : > { %1032 = vst [vmem:[%s1959_s17 + $0x38] sm:$0xf] %v1000_v28  ;;  %v935_v33 = vadd.f32 %v1953_v18, %v683_v32 }
  0xf6   : > { %v712_v34 = vpop.f32.mrf.mxu2  ;;  %1033 = vst [vmem:[%s1959_s17 + $0x3c] sm:$0xff] %v1001_v31  ;;  %v617_v36 = vpop.f32.mrf.mxu0 }
  0xf7   : > { %v912_v35 = vadd.f32 %v1957_v25, %v712_v34  ;;  %v983_v38 = vmax.f32 %v935_v33, 0.0  ;;  %v913_v40 = vadd.f32 %v1950_v17, %v617_v36  ;;  %v666_v41 = vpop.f32.mrf.mxu1 }
  0xf8   : > { %v914_v42 = vadd.f32 %v1953_v18, %v666_v41 }
  0xf9   : > { %v960_v39 = vmax.f32 %v912_v35, 0.0  ;;  %v1017_v43 = vpack.c.bf16 %v983_v38, %v982_v37  ;;  %v961_v44 = vmax.f32 %v913_v40, 0.0 }
  0xfa   : > { %v962_v46 = vmax.f32 %v914_v42, 0.0 }
  0xfb   : > { %v1002_v45 = vpack.c.bf16 %v960_v39, %v960_v39  ;;  %1049 = vst [vmem:[%s1959_s17 + $0x9c] sm:$0xff] %v1017_v43 }
  0xfc   : > { %v1003_v48 = vpack.c.bf16 %v962_v46, %v961_v44  ;;  %v686_v49 = vpop.f32.mrf.mxu3 }
  0xfd   : > { %1034 = vst [vmem:[%s1959_s17 + $0x44] sm:$0xf] %v1002_v45  ;;  %v938_v50 = vadd.f32 %v1953_v18, %v686_v49 }
  0xfe   : > { %v715_v52 = vpop.f32.mrf.mxu2  ;;  %1035 = vst [vmem:[%s1959_s17 + $0x48] sm:$0xff] %v1003_v48  ;;  %v619_v54 = vpop.f32.mrf.mxu0 }
  0xff   : > { %v915_v53 = vadd.f32 %v1957_v25, %v715_v52  ;;  %v986_v56 = vmax.f32 %v938_v50, 0.0  ;;  %v916_v57 = vadd.f32 %v1950_v17, %v619_v54  ;;  %v668_v58 = vpop.f32.mrf.mxu1 }
 0x100   : > { %v917_v59 = vadd.f32 %v1953_v18, %v668_v58 }
 0x101   : > { %v963_v51 = vmax.f32 %v915_v53, 0.0  ;;  %v1019_v60 = vpack.c.bf16 %v986_v56, %v985_v55  ;;  %v964_v61 = vmax.f32 %v916_v57, 0.0 }
 0x102   : > { %v965_v0 = vmax.f32 %v917_v59, 0.0 }
 0x103   : > { %v1004_v62 = vpack.c.bf16 %v963_v51, %v963_v51  ;;  %1051 = vst [vmem:[%s1959_s17 + $0xa8] sm:$0xff] %v1019_v60 }
 0x104   : > { %v1005_v2 = vpack.c.bf16 %v965_v0, %v964_v61  ;;  %v688_v3 = vpop.f32.mrf.mxu3 }
 0x105   : > { %1036 = vst [vmem:[%s1959_s17 + $0x50] sm:$0xf] %v1004_v62  ;;  %v941_v4 = vadd.f32 %v1953_v18, %v688_v3 }
 0x106   : > { %v717_v5 = vpop.f32.mrf.mxu2  ;;  %1037 = vst [vmem:[%s1959_s17 + $0x54] sm:$0xff] %v1005_v2  ;;  %v622_v9 = vpop.f32.mrf.mxu0 }
 0x107   : > { %v918_v6 = vadd.f32 %v1957_v25, %v717_v5  ;;  %v989_v11 = vmax.f32 %v941_v4, 0.0  ;;  %v919_v12 = vadd.f32 %v1950_v17, %v622_v9  ;;  %v671_v13 = vpop.f32.mrf.mxu1 }
 0x108   : > { %v920_v7 = vadd.f32 %v1953_v18, %v671_v13  ;;  %v1088_v13 = vld [vmem:[%s1959_s17 + $0x24] sm:$0xff] (%p1810_p12) }
 0x109   : > { %v966_v63 = vmax.f32 %v918_v6, 0.0  ;;  %v1021_v14 = vpack.c.bf16 %v989_v11, %v988_v10  ;;  %v967_v8 = vmax.f32 %v919_v12, 0.0  ;;  %v1084_v11 = vld [vmem:[%s1959_s17 + $0xc] sm:$0xff] (%p1810_p12)  ;;  %v1086_v12 = vld [vmem:[%s1959_s17 + $0x18] sm:$0xff] (%p1810_p12)  ;;  %1089 = vst [vmem:[%s2054_s7 + $0x48] sm:$0xff] (%p1810_p12), %v1088_v13 }
 0x10a   : > { %v968_v16 = vmax.f32 %v920_v7, 0.0  ;;  %1085 = vst [vmem:[%s2054_s7 + $0x18] sm:$0xff] (%p1810_p12), %v1084_v11  ;;  %v1092_v7 = vld [vmem:[%s1959_s17 + $0x3c] sm:$0xff] (%p1810_p12) }
 0x10b   : > { %v1006_v15 = vpack.c.bf16 %v966_v63, %v966_v63  ;;  %1053 = vst [vmem:[%s1959_s17 + $0xb4] sm:$0xff] %v1021_v14  ;;  %v1090_v63 = vld [vmem:[%s1959_s17 + $0x30] sm:$0xff] (%p1810_p12)  ;;  %v1094_v14 = vld [vmem:[%s1959_s17 + $0x48] sm:$0xff] (%p1810_p12) }
 0x10c   : > { %v1007_v19 = vpack.c.bf16 %v968_v16, %v967_v8  ;;  %v730_v20 = vpop.f32.mrf.mxu3  ;;  %1087 = vst [vmem:[%s2054_s7 + $0x30] sm:$0xff] (%p1810_p12), %v1086_v12 }
 0x10d   : > { %1038 = vst [vmem:[%s1959_s17 + $0x5c] sm:$0xf] %v1006_v15  ;;  %v933_v22 = vadd.f32 %v1957_v25, %v730_v20  ;;  %v1096_v8 = vld [vmem:[%s1959_s17 + $0x54] sm:$0xff] (%p1810_p12) }
 0x10e   : > { %v720_v21 = vpop.f32.mrf.mxu2  ;;  %1039 = vst [vmem:[%s1959_s17 + $0x60] sm:$0xff] %v1007_v19  ;;  %v624_v24 = vpop.f32.mrf.mxu0 }
 0x10f   : > { %v921_v23 = vadd.f32 %v1957_v25, %v720_v21  ;;  %v981_v26 = vmax.f32 %v933_v22, 0.0  ;;  %v922_v27 = vadd.f32 %v1950_v17, %v624_v24  ;;  %v673_v28 = vpop.f32.mrf.mxu1  ;;  %1091 = vst [vmem:[%s2054_s7 + $0x60] sm:$0xff] (%p1810_p12), %v1090_v63  ;;  %v1106_v21 = vld [vmem:[%s1959_s17 + $0x90] sm:$0xff] (%p1810_p12)  ;;  %v1108_v22 = vld [vmem:[%s1959_s17 + $0x9c] sm:$0xff] (%p1810_p12) }
 0x110   : > { %v923_v30 = vadd.f32 %v1953_v18, %v673_v28  ;;  %1093 = vst [vmem:[%s2054_s7 + $0x78] sm:$0xff] (%p1810_p12), %v1092_v7  ;;  %v1410_v28 = vld [vmem:[%s1959_s17 + $0x20] sm:$0xf] (%p1810_p12) }
 0x111   : > { %v969_v29 = vmax.f32 %v921_v23, 0.0  ;;  %v1016_v31 = vpack.c.bf16 %v981_v26, %v981_v26  ;;  %v970_v32 = vmax.f32 %v922_v27, 0.0  ;;  %1095 = vst [vmem:[%s2054_s7 + $0x90] sm:$0xff] (%p1810_p12), %v1094_v14  ;;  %v1110_v23 = vld [vmem:[%s1959_s17 + $0xa8] sm:$0xff] (%p1810_p12)  ;;  %v1408_v27 = vld [vmem:[%s1959_s17 + $0x14] sm:$0xf] (%p1810_p12) }
 0x112   : > { %v971_v34 = vmax.f32 %v923_v30, 0.0  ;;  %1097 = vst [vmem:[%s2054_s7 + $0xa8] sm:$0xff] (%p1810_p12), %v1096_v8  ;;  %v1112_v24 = vld [vmem:[%s1959_s17 + $0xb4] sm:$0xff] (%p1810_p12)  ;;  %v1406_v26 = vld [vmem:[%s1959_s17 + $0x8] sm:$0xf] (%p1810_p12) }
 0x113   : > { %v1008_v33 = vpack.c.bf16 %v969_v29, %v969_v29  ;;  %1048 = vst [vmem:[%s1959_s17 + $0x98] sm:$0xf] %v1016_v31  ;;  %v1412_v29 = vld [vmem:[%s1959_s17 + $0x2c] sm:$0xf] (%p1810_p12)  ;;  %v1414_v30 = vld [vmem:[%s1959_s17 + $0x38] sm:$0xf] (%p1810_p12) }
 0x114   : > { %v1009_v35 = vpack.c.bf16 %v971_v34, %v970_v32  ;;  %v732_v36 = vpop.f32.mrf.mxu3  ;;  %1107 = vst [vmem:[%s2054_s7 + $0x120] sm:$0xff] (%p1810_p12), %v1106_v21  ;;  %v1416_v31 = vld [vmem:[%s1959_s17 + $0x44] sm:$0xf] (%p1810_p12)  ;;  %v1418_v32 = vld [vmem:[%s1959_s17 + $0x50] sm:$0xf] (%p1810_p12) }
 0x115   : > { %1040 = vst [vmem:[%s1959_s17 + $0x68] sm:$0xf] %v1008_v33  ;;  %v936_v38 = vadd.f32 %v1957_v25, %v732_v36  ;;  %v1098_v15 = vld [vmem:[%s1959_s17 + $0x60] sm:$0xff] (%p1810_p12)  ;;  %v1420_v33 = vld [vmem:[%s1959_s17 + $0x5c] sm:$0xf] (%p1810_p12) }
 0x116   : > { %v722_v37 = vpop.f32.mrf.mxu2  ;;  %1041 = vst [vmem:[%s1959_s17 + $0x6c] sm:$0xff] %v1009_v35  ;;  %v627_v41 = vpop.f32.mrf.mxu0 }
 0x117   : > { %v924_v40 = vadd.f32 %v1957_v25, %v722_v37  ;;  %v984_v39 = vmax.f32 %v936_v38, 0.0  ;;  %v925_v42 = vadd.f32 %v1950_v17, %v627_v41  ;;  %v676_v43 = vpop.f32.mrf.mxu1  ;;  %1099 = vst [vmem:[%s2054_s7 + $0xc0] sm:$0xff] (%p1810_p12), %v1098_v15 }
 0x118   : > { %v926_v45 = vadd.f32 %v1953_v18, %v676_v43  ;;  %1109 = vst [vmem:[%s2054_s7 + $0x138] sm:$0xff] (%p1810_p12), %v1108_v22 }
 0x119   : > { %v972_v44 = vmax.f32 %v924_v40, 0.0  ;;  %v1018_v46 = vpack.c.bf16 %v984_v39, %v984_v39  ;;  %v973_v47 = vmax.f32 %v925_v42, 0.0  ;;  %1111 = vst [vmem:[%s2054_s7 + $0x150] sm:$0xff] (%p1810_p12), %v1110_v23 }
 0x11a   : > { %v974_v49 = vmax.f32 %v926_v45, 0.0  ;;  %1113 = vst [vmem:[%s2054_s7 + $0x168] sm:$0xff] (%p1810_p12), %v1112_v24  ;;  %v1430_v38 = vld [vmem:[%s1959_s17 + $0x98] sm:$0xf] (%p1810_p12) }
 0x11b   : > { %v1010_v48 = vpack.c.bf16 %v972_v44, %v972_v44  ;;  %1050 = vst [vmem:[%s1959_s17 + $0xa4] sm:$0xf] %v1018_v46 }
 0x11c   : > { %v1011_v50 = vpack.c.bf16 %v974_v49, %v973_v47  ;;  %v735_v52 = vpop.f32.mrf.mxu3  ;;  %1407 = vst [vmem:[%s2054_s7 + $0x8] sm:$0xf] (%p1810_p12), %v1406_v26  ;;  %v1422_v34 = vld [vmem:[%s1959_s17 + $0x68] sm:$0xf] (%p1810_p12) }
 0x11d   : > { %1042 = vst [vmem:[%s1959_s17 + $0x74] sm:$0xf] %v1010_v48  ;;  %v939_v54 = vadd.f32 %v1957_v25, %v735_v52  ;;  %v1100_v16 = vld [vmem:[%s1959_s17 + $0x6c] sm:$0xff] (%p1810_p12) }
 0x11e   : > { %v725_v53 = vpop.f32.mrf.mxu2  ;;  %1043 = vst [vmem:[%s1959_s17 + $0x78] sm:$0xff] %v1011_v50  ;;  %v629_v56 = vpop.f32.mrf.mxu0 }
 0x11f   : > { %v927_v55 = vadd.f32 %v1957_v25, %v725_v53  ;;  %v987_v57 = vmax.f32 %v939_v54, 0.0  ;;  %v928_v58 = vadd.f32 %v1950_v17, %v629_v56  ;;  %v678_v51 = vpop.f32.mrf.mxu1  ;;  %1101 = vst [vmem:[%s2054_s7 + $0xd8] sm:$0xff] (%p1810_p12), %v1100_v16 }
 0x120   : > { %v929_v60 = vadd.f32 %v1953_v18, %v678_v51  ;;  %1409 = vst [vmem:[%s2054_s7 + $0x20] sm:$0xf] (%p1810_p12), %v1408_v27 }
 0x121   : > { %v975_v59 = vmax.f32 %v927_v55, 0.0  ;;  %v1020_v61 = vpack.c.bf16 %v987_v57, %v987_v57  ;;  %v976_v62 = vmax.f32 %v928_v58, 0.0  ;;  %1411 = vst [vmem:[%s2054_s7 + $0x38] sm:$0xf] (%p1810_p12), %v1410_v28 }
 0x122   : > { %v977_v1 = vmax.f32 %v929_v60, 0.0  ;;  %1413 = vst [vmem:[%s2054_s7 + $0x50] sm:$0xf] (%p1810_p12), %v1412_v29  ;;  %v1432_v40 = vld [vmem:[%s1959_s17 + $0xa4] sm:$0xf] (%p1810_p12) }
 0x123   : > { %v1012_v0 = vpack.c.bf16 %v975_v59, %v975_v59  ;;  %1052 = vst [vmem:[%s1959_s17 + $0xb0] sm:$0xf] %v1020_v61 }
 0x124   : > { %v1013_v2 = vpack.c.bf16 %v977_v1, %v976_v62  ;;  %v737_v3 = vpop.f32.mrf.mxu3  ;;  %1415 = vst [vmem:[%s2054_s7 + $0x68] sm:$0xf] (%p1810_p12), %v1414_v30  ;;  %v1424_v35 = vld [vmem:[%s1959_s17 + $0x74] sm:$0xf] (%p1810_p12) }
 0x125   : > { %1044 = vst [vmem:[%s1959_s17 + $0x80] sm:$0xf] %v1012_v0  ;;  %v942_v5 = vadd.f32 %v1957_v25, %v737_v3  ;;  %v1102_v19 = vld [vmem:[%s1959_s17 + $0x78] sm:$0xff] (%p1810_p12) }
 0x126   : > { %v727_v4 = vpop.f32.mrf.mxu2  ;;  %1045 = vst [vmem:[%s1959_s17 + $0x84] sm:$0xff] %v1013_v2 }
 0x127   : > { %v930_v17 = vadd.f32 %v1957_v25, %v727_v4  ;;  %v990_v6 = vmax.f32 %v942_v5, 0.0  ;;  %v1082_v25 = vld [vmem:[%s1959_s17] sm:$0xff] (%p1810_p12)  ;;  %1103 = vst [vmem:[%s2054_s7 + $0xf0] sm:$0xff] (%p1810_p12), %v1102_v19 }
 0x128   : > { %1083 = vst [vmem:[%s2054_s7] sm:$0xff] (%p1810_p12), %v1082_v25 }
 0x129   : > { %v978_v9 = vmax.f32 %v930_v17, 0.0  ;;  %v1022_v10 = vpack.c.bf16 %v990_v6, %v990_v6  ;;  %1061 = sbr.rel (!%p1810_p12) target bundleno = 311 (0x137), region = 48  ;;  %1417 = vst [vmem:[%s2054_s7 + $0x80] sm:$0xf] (%p1810_p12), %v1416_v31 }
 0x12a   : > { %1419 = vst [vmem:[%s2054_s7 + $0x98] sm:$0xf] (%p1810_p12), %v1418_v32  ;;  %v1434_v41 = vld [vmem:[%s1959_s17 + $0xb0] sm:$0xf] (%p1810_p12) }
 0x12b   : > { %v1014_v18 = vpack.c.bf16 %v978_v9, %v978_v9  ;;  %1054 = vst [vmem:[%s1959_s17 + $0xbc] sm:$0xf] %v1022_v10 }
 0x12c   : > { %1421 = vst [vmem:[%s2054_s7 + $0xb0] sm:$0xf] (%p1810_p12), %v1420_v33  ;;  %v1426_v36 = vld [vmem:[%s1959_s17 + $0x80] sm:$0xf] (%p1810_p12) }
 0x12d   : > { %1046 = vst [vmem:[%s1959_s17 + $0x8c] sm:$0xf] %v1014_v18  ;;  %v1104_v20 = vld [vmem:[%s1959_s17 + $0x84] sm:$0xff] (%p1810_p12) }
 0x12e   : > { %1105 = vst [vmem:[%s2054_s7 + $0x108] sm:$0xff] %v1104_v20 }
 0x12f   : > { %1423 = vst [vmem:[%s2054_s7 + $0xc8] sm:$0xf] %v1422_v34 }
 0x130   : > { %1425 = vst [vmem:[%s2054_s7 + $0xe0] sm:$0xf] %v1424_v35 }
 0x131   : > { %1427 = vst [vmem:[%s2054_s7 + $0xf8] sm:$0xf] %v1426_v36 }
 0x132   : > { %1431 = vst [vmem:[%s2054_s7 + $0x128] sm:$0xf] %v1430_v38  ;;  %v1436_v39 = vld [vmem:[%s1959_s17 + $0xbc] sm:$0xf] }
 0x133   : > { %1433 = vst [vmem:[%s2054_s7 + $0x140] sm:$0xf] %v1432_v40 }
 0x134   : > { %v1428_v37 = vld [vmem:[%s1959_s17 + $0x8c] sm:$0xf]  ;;  %1435 = vst [vmem:[%s2054_s7 + $0x158] sm:$0xf] %v1434_v41 }
 0x135   : > { %1429 = vst [vmem:[%s2054_s7 + $0x110] sm:$0xf] %v1428_v37 }
 0x136   : > { %1437 = vst [vmem:[%s2054_s7 + $0x170] sm:$0xf] %v1436_v39 }
 0x137 PF: > { %s16_s21 = sadd.s32 1, %s1703_s21   ;;  %s2162_s18 = sld [smem:[#allocation7_spill]] }
 0x138   : > { %p13_p6 = scmp.ge.s32.totalorder %s16_s21, 12   ;;  %s2163_s23 = sld [smem:[#allocation8_spill]] }
 0x139   : > { %s2164_s20 = sld [smem:[#allocation9_spill]]  ;;  %s2165_s12 = smov %s1671_s13 }
 0x13a   : > { %s2166_s13 = smov %s1808_s6  ;;  %s2167_s14 = smov %s1679_s15 }
 0x13b   : > { %s2168_s15 = smov %s1683_s16  ;;  %s2169_s16 = smov %s1796_s28 }
 0x13c   : > { %s2170_s17 = smov %s1695_s19  ;;  %15 = sbr.rel (!%p13_p6) target bundleno = 6 (0x6), region = 118 }
 0x13e   : > { %s2171_s19 = smov %s2163_s23 }
 0x141   :  { %1169 = vsyncpa [#allocation4], 1 }
 0x142   :  { %1171 = vsyncpa [#allocation4 + $0x1], 1 }

// kernel: _lambda_.10
= control target key start
LH: loop header
LB: loop body
LE: loop exit
PB: predicated region body
PF: predicated region fallthrough
CT: control target
= control target key end

     0   :  { %s2684_s12 = smov 0   ;;  %s2686_s13 = smov 0   ;;  %s3337_s0 = inlined_call_operand.vmem [shape: bf16[640,2304], index: 0, kind: input, shape index: {}]   ;;  %s3338_s1 = inlined_call_operand.vmem [shape: bf16[2304,384], index: 1, kind: input, shape index: {}]   ;;  %s3339_s2 = inlined_call_operand.vmem [shape: f32[1,384], index: 2, kind: input, shape index: {}]   ;;  %s3340_s3 = inlined_call_operand.vmem [shape: bf16[640,384], index: 3, kind: output, shape index: {}]  }
   0x1   :  { %s2688_s14 = smov 0   ;;  %s2690_s15 = smov 0  }
   0x2   :  { %s2692_s16 = smov 0   ;;  %s2694_s17 = smov 0  }
   0x3   :  { %s2696_s18 = smov 0  }
   0x4 LB: > { %s25_s19 = sadd.s32 1, %s2653_s16  ;;  %s32_s20 = sadd.s32 1, %s2657_s17  ;;  %s2661_s18 = sphi %s2696_s18, %s13_s18   ;;  %s2657_s17 = sphi %s2694_s17, %s3346_s17   ;;  %s2653_s16 = sphi %s2692_s16, %s3345_s16   ;;  %s2649_s15 = sphi %s2690_s15, %s3344_s15   ;;  %s2645_s14 = sphi %s2688_s14, %s3343_s14   ;;  %s2641_s13 = sphi %s2686_s13, %s3342_s13   ;;  %s2637_s12 = sphi %s2684_s12, %s3341_s12  }
   0x5   : > { %p26_p0 = scmp.ge.s32.totalorder %s25_s19, 6  ;;  %p48_p1 = scmp.ne.s32.totalorder %s2641_s13, %s2637_s12 }
   0x6   : > { %p49_p2 = scmp.eq.s32.totalorder %s2661_s18, 0  ;;  %s41_s24 = sadd.s32 1, %s2641_s13 }
   0x7   : > { %s3348_s19 = smov (%p26_p0, %s25_s19), 0  ;;  %s3350_s20 = smov (!%p26_p0, %s32_s20), %s2657_s17 }
   0x8   : > { %p50_p3 = por %p49_p2, %p48_p1  ;;  %p34_p4 = scmp.ge.s32.totalorder %s3350_s20, 5 }
   0x9   : > { %s37_s21 = ssub.s32 %s2653_s16, %s3348_s19  ;;  %p1997_p6 = scmp.ge.s32.totalorder %s2661_s18, 30 }
   0xa   : > { %s3352_s20 = smov (%p34_p4, %s3350_s20), 0 }
   0xb   : > { %s36_s22 = ssub.s32 %s2657_s17, %s3352_s20  ;;  %164 = sbr.rel (%p1997_p6) target bundleno = 57 (0x39), region = 20 }
   0xc   : > { %s38_s23 = sor.u32 %s37_s21, %s36_s22 }
   0xd   : > { %p39_p5 = scmp.eq.s32.totalorder %s38_s23, 0 }
   0xf   : > { %s2735_s25 = scalar_select %p39_p5, %s2641_s13, %s41_s24  }
  0x10   : > { %167 = sbr.rel (!%p50_p3) target bundleno = 57 (0x39), region = 24  ;;  %s169_s26 = sand.u32 (%p50_p3), 1, %s2641_s13  }
  0x11   : > { %s173_s27 = smul.u32 (%p50_p3), 3, %s2653_s16 }
  0x12   : > { %s2545_s28 = smul.u32 (%p50_p3), 192, %s169_s26 }
  0x13   : > { %s2546_s29 = smul.u32 (%p50_p3), 288, %s2657_s17 }
  0x14   : > { %s2749_s8 = scalar_lea.vmem (%p50_p3), [#allocation3], %s2545_s28 }
  0x15   : > { %s175_s30 = sadd.s32 %s2546_s29, %s173_s27 }
  0x16   : > { %s2000_s4 = sshll.u32 %s175_s30, 2 }
  0x17   : > { %s2744_s7 = scalar_lea.vmem %s3337_s0, %s2000_s4 }
  0x18   : > { %v192_v0 = vld [vmem:[%s2744_s7] sm:$0xff]  ;;  %v194_v1 = vld [vmem:[%s2744_s7 + $0x48] sm:$0xff]  ;;  %v196_v2 = vld [vmem:[%s2744_s7 + $0x90] sm:$0xff] }
  0x19   : > { %193 = vst [vmem:[%s2749_s8] sm:$0xff] %v192_v0  ;;  %v198_v3 = vld [vmem:[%s2744_s7 + $0xd8] sm:$0xff]  ;;  %v200_v4 = vld [vmem:[%s2744_s7 + $0x120] sm:$0xff]  ;;  %v202_v5 = vld [vmem:[%s2744_s7 + $0x168] sm:$0xff] }
  0x1a   : > { %195 = vst [vmem:[%s2749_s8 + $0xc] sm:$0xff] %v194_v1  ;;  %v204_v6 = vld [vmem:[%s2744_s7 + $0x1b0] sm:$0xff]  ;;  %v206_v7 = vld [vmem:[%s2744_s7 + $0x1f8] sm:$0xff]  ;;  %v208_v8 = vld [vmem:[%s2744_s7 + $0x240] sm:$0xff] }
  0x1b   : > { %197 = vst [vmem:[%s2749_s8 + $0x18] sm:$0xff] %v196_v2  ;;  %v210_v9 = vld [vmem:[%s2744_s7 + $0x288] sm:$0xff]  ;;  %v212_v10 = vld [vmem:[%s2744_s7 + $0x2d0] sm:$0xff]  ;;  %v214_v11 = vld [vmem:[%s2744_s7 + $0x318] sm:$0xff] }
  0x1c   : > { %199 = vst [vmem:[%s2749_s8 + $0x24] sm:$0xff] %v198_v3  ;;  %v216_v12 = vld [vmem:[%s2744_s7 + $0x360] sm:$0xff]  ;;  %v218_v13 = vld [vmem:[%s2744_s7 + $0x3a8] sm:$0xff]  ;;  %v220_v14 = vld [vmem:[%s2744_s7 + $0x3f0] sm:$0xff] }
  0x1d   : > { %201 = vst [vmem:[%s2749_s8 + $0x30] sm:$0xff] %v200_v4  ;;  %v222_v15 = vld [vmem:[%s2744_s7 + $0x438] sm:$0xff]  ;;  %v2001_v16 = vld [vmem:[%s2744_s7 + $0x8] sm:$0xf]  ;;  %v2003_v17 = vld [vmem:[%s2744_s7 + $0x50] sm:$0xf] }
  0x1e   : > { %203 = vst [vmem:[%s2749_s8 + $0x3c] sm:$0xff] %v202_v5  ;;  %v2005_v18 = vld [vmem:[%s2744_s7 + $0x98] sm:$0xf]  ;;  %v2007_v19 = vld [vmem:[%s2744_s7 + $0xe0] sm:$0xf] }
  0x1f   : > { %205 = vst [vmem:[%s2749_s8 + $0x48] sm:$0xff] %v204_v6  ;;  %v2009_v20 = vld [vmem:[%s2744_s7 + $0x128] sm:$0xf]  ;;  %v2011_v21 = vld [vmem:[%s2744_s7 + $0x170] sm:$0xf] }
  0x20   : > { %207 = vst [vmem:[%s2749_s8 + $0x54] sm:$0xff] %v206_v7  ;;  %v2013_v22 = vld [vmem:[%s2744_s7 + $0x1b8] sm:$0xf]  ;;  %v2015_v23 = vld [vmem:[%s2744_s7 + $0x200] sm:$0xf] }
  0x21   : > { %209 = vst [vmem:[%s2749_s8 + $0x60] sm:$0xff] %v208_v8  ;;  %v2017_v24 = vld [vmem:[%s2744_s7 + $0x248] sm:$0xf]  ;;  %v2019_v25 = vld [vmem:[%s2744_s7 + $0x290] sm:$0xf] }
  0x22   : > { %211 = vst [vmem:[%s2749_s8 + $0x6c] sm:$0xff] %v210_v9  ;;  %v2021_v26 = vld [vmem:[%s2744_s7 + $0x2d8] sm:$0xf]  ;;  %v2023_v27 = vld [vmem:[%s2744_s7 + $0x320] sm:$0xf] }
  0x23   : > { %213 = vst [vmem:[%s2749_s8 + $0x78] sm:$0xff] %v212_v10  ;;  %v2025_v28 = vld [vmem:[%s2744_s7 + $0x368] sm:$0xf]  ;;  %v2027_v29 = vld [vmem:[%s2744_s7 + $0x3b0] sm:$0xf] }
  0x24   : > { %215 = vst [vmem:[%s2749_s8 + $0x84] sm:$0xff] %v214_v11  ;;  %v2029_v30 = vld [vmem:[%s2744_s7 + $0x3f8] sm:$0xf]  ;;  %v2031_v31 = vld [vmem:[%s2744_s7 + $0x440] sm:$0xf] }
  0x25   : > { %217 = vst [vmem:[%s2749_s8 + $0x90] sm:$0xff] %v216_v12 }
  0x26   : > { %219 = vst [vmem:[%s2749_s8 + $0x9c] sm:$0xff] %v218_v13 }
  0x27   : > { %221 = vst [vmem:[%s2749_s8 + $0xa8] sm:$0xff] %v220_v14 }
  0x28   : > { %223 = vst [vmem:[%s2749_s8 + $0xb4] sm:$0xff] %v222_v15 }
  0x29   : > { %2002 = vst [vmem:[%s2749_s8 + $0x8] sm:$0xf] %v2001_v16 }
  0x2a   : > { %2004 = vst [vmem:[%s2749_s8 + $0x14] sm:$0xf] %v2003_v17 }
  0x2b   : > { %2006 = vst [vmem:[%s2749_s8 + $0x20] sm:$0xf] %v2005_v18 }
  0x2c   : > { %2008 = vst [vmem:[%s2749_s8 + $0x2c] sm:$0xf] %v2007_v19 }
  0x2d   : > { %2010 = vst [vmem:[%s2749_s8 + $0x38] sm:$0xf] %v2009_v20 }
  0x2e   : > { %2012 = vst [vmem:[%s2749_s8 + $0x44] sm:$0xf] %v2011_v21 }
  0x2f   : > { %2014 = vst [vmem:[%s2749_s8 + $0x50] sm:$0xf] %v2013_v22 }
  0x30   : > { %2016 = vst [vmem:[%s2749_s8 + $0x5c] sm:$0xf] %v2015_v23 }
  0x31   : > { %2018 = vst [vmem:[%s2749_s8 + $0x68] sm:$0xf] %v2017_v24 }
  0x32   : > { %2020 = vst [vmem:[%s2749_s8 + $0x74] sm:$0xf] %v2019_v25 }
  0x33   : > { %2022 = vst [vmem:[%s2749_s8 + $0x80] sm:$0xf] %v2021_v26 }
  0x34   : > { %2024 = vst [vmem:[%s2749_s8 + $0x8c] sm:$0xf] %v2023_v27 }
  0x35   : > { %2026 = vst [vmem:[%s2749_s8 + $0x98] sm:$0xf] %v2025_v28 }
  0x36   : > { %2028 = vst [vmem:[%s2749_s8 + $0xa4] sm:$0xf] %v2027_v29 }
  0x37   : > { %2030 = vst [vmem:[%s2749_s8 + $0xb0] sm:$0xf] %v2029_v30 }
  0x38   : > { %2032 = vst [vmem:[%s2749_s8 + $0xbc] sm:$0xf] %v2031_v31 }
  0x39 PF: > { %p2033_p7 = scmp.ge.s32.totalorder %s2661_s18, 1  ;;  %p283_p8 = scmp.lt.s32.totalorder %s2661_s18, 31 }
  0x3b   : > { %p284_p9 = pnand %p2033_p7, %p283_p8 }
  0x3c   : > { %s290_s9 = sand.u32 (!%p284_p9), 1, %s2637_s12   ;;  %s334_s10 = smul.u32 (!%p284_p9), 48, %s2645_s14 }
  0x3d   : > { %287 = sbr.rel (%p284_p9) target bundleno = 618 (0x26a), region = 54  ;;  %s2035_s21 = sshll.u32 (!%p284_p9), %s2649_s15, 4 }
  0x3e   : > { %s2547_s11 = smul.u32 (!%p284_p9), 192, %s290_s9  ;;  %p336_p10 = scmp.lt.s32.totalorder (!%p284_p9), %s334_s10, 287 }
  0x3f   : > { %p353_p11 = scmp.lt.s32.totalorder (!%p284_p9), %s2035_s21, 79  ;;  %p2037_p12 = scmp.ne.s32.totalorder (!%p284_p9), %s2645_s14, 0 }
  0x40   : > { %s2827_s12 = scalar_lea.vmem (!%p284_p9), [#allocation3], %s2547_s11 }
  0x42   : > { %s3354_s10 = smov (!%p336_p10, %s334_s10), 287  ;;  %s3356_s21 = smov (!%p353_p11, %s2035_s21), 79 }
  0x43   : > { %s2548_s22 = smul.u32 12, %s3354_s10 }
  0x44   : > { %s2549_s23 = smul.u32 12, %s3356_s21 }
  0x45   : > { %s2820_s27 = scalar_lea.vmem %s3338_s1, %s2548_s22  ;;  %366 = sbr.rel (%p2037_p12) target bundleno = 123 (0x7b), region = 62 }
  0x46   : > { %s2825_s30 = scalar_lea.vmem %s3340_s3, %s2549_s23 }
  0x4a   : > { %v2663_v32 = vmov 0.0  }
  0x4b   : > { %367 = vst [vmem:[#allocation2 + $0xb0] sm:$0xff] %v2663_v32 }
  0x4c   : > { %368 = vst [vmem:[#allocation2 + $0xd0] sm:$0xff] %v2663_v32 }
  0x4d   : > { %369 = vst [vmem:[#allocation2 + $0x10] sm:$0xff] %v2663_v32 }
  0x4e   : > { %370 = vst [vmem:[#allocation2 + $0x48] sm:$0xff] %v2663_v32 }
  0x4f   : > { %371 = vst [vmem:[#allocation2 + $0x160] sm:$0xff] %v2663_v32 }
  0x50   : > { %372 = vst [vmem:[#allocation2 + $0x128] sm:$0xff] %v2663_v32 }
  0x51   : > { %373 = vst [vmem:[#allocation2 + $0x40] sm:$0xff] %v2663_v32 }
  0x52   : > { %374 = vst [vmem:[#allocation2 + $0x178] sm:$0xff] %v2663_v32 }
  0x53   : > { %375 = vst [vmem:[#allocation2 + $0x108] sm:$0xff] %v2663_v32 }
  0x54   : > { %376 = vst [vmem:[#allocation2 + $0x110] sm:$0xff] %v2663_v32 }
  0x55   : > { %377 = vst [vmem:[#allocation2 + $0x90] sm:$0xff] %v2663_v32 }
  0x56   : > { %378 = vst [vmem:[#allocation2 + $0x118] sm:$0xff] %v2663_v32 }
  0x57   : > { %379 = vst [vmem:[#allocation2 + $0x148] sm:$0xff] %v2663_v32 }
  0x58   : > { %380 = vst [vmem:[#allocation2 + $0x100] sm:$0xff] %v2663_v32 }
  0x59   : > { %381 = vst [vmem:[#allocation2 + $0x58] sm:$0xff] %v2663_v32 }
  0x5a   : > { %382 = vst [vmem:[#allocation2 + $0xd8] sm:$0xff] %v2663_v32 }
  0x5b   : > { %383 = vst [vmem:[#allocation2 + $0x80] sm:$0xff] %v2663_v32 }
  0x5c   : > { %384 = vst [vmem:[#allocation2 + $0x130] sm:$0xff] %v2663_v32 }
  0x5d   : > { %385 = vst [vmem:[#allocation2 + $0x138] sm:$0xff] %v2663_v32 }
  0x5e   : > { %386 = vst [vmem:[#allocation2 + $0x120] sm:$0xff] %v2663_v32 }
  0x5f   : > { %387 = vst [vmem:[#allocation2 + $0xe0] sm:$0xff] %v2663_v32 }
  0x60   : > { %388 = vst [vmem:[#allocation2 + $0xa8] sm:$0xff] %v2663_v32 }
  0x61   : > { %389 = vst [vmem:[#allocation2 + $0xb8] sm:$0xff] %v2663_v32 }
  0x62   : > { %390 = vst [vmem:[#allocation2 + $0x168] sm:$0xff] %v2663_v32 }
  0x63   : > { %391 = vst [vmem:[#allocation2 + $0xe8] sm:$0xff] %v2663_v32 }
  0x64   : > { %392 = vst [vmem:[#allocation2 + $0xf8] sm:$0xff] %v2663_v32 }
  0x65   : > { %393 = vst [vmem:[#allocation2 + $0x20] sm:$0xff] %v2663_v32 }
  0x66   : > { %394 = vst [vmem:[#allocation2 + $0x88] sm:$0xff] %v2663_v32 }
  0x67   : > { %395 = vst [vmem:[#allocation2 + $0xa0] sm:$0xff] %v2663_v32 }
  0x68   : > { %396 = vst [vmem:[#allocation2 + $0x170] sm:$0xff] %v2663_v32 }
  0x69   : > { %397 = vst [vmem:[#allocation2 + $0xf0] sm:$0xff] %v2663_v32 }
  0x6a   : > { %398 = vst [vmem:[#allocation2 + $0x140] sm:$0xff] %v2663_v32 }
  0x6b   : > { %399 = vst [vmem:[#allocation2 + $0x60] sm:$0xff] %v2663_v32 }
  0x6c   : > { %400 = vst [vmem:[#allocation2 + $0xc8] sm:$0xff] %v2663_v32 }
  0x6d   : > { %401 = vst [vmem:[#allocation2 + $0x28] sm:$0xff] %v2663_v32 }
  0x6e   : > { %402 = vst [vmem:[#allocation2 + $0x38] sm:$0xff] %v2663_v32 }
  0x6f   : > { %403 = vst [vmem:[#allocation2 + $0xc0] sm:$0xff] %v2663_v32 }
  0x70   : > { %404 = vst [vmem:[#allocation2 + $0x18] sm:$0xff] %v2663_v32 }
  0x71   : > { %405 = vst [vmem:[#allocation2 + $0x98] sm:$0xff] %v2663_v32 }
  0x72   : > { %406 = vst [vmem:[#allocation2 + $0x8] sm:$0xff] %v2663_v32 }
  0x73   : > { %407 = vst [vmem:[#allocation2] sm:$0xff] %v2663_v32 }
  0x74   : > { %408 = vst [vmem:[#allocation2 + $0x78] sm:$0xff] %v2663_v32 }
  0x75   : > { %409 = vst [vmem:[#allocation2 + $0x50] sm:$0xff] %v2663_v32 }
  0x76   : > { %410 = vst [vmem:[#allocation2 + $0x68] sm:$0xff] %v2663_v32 }
  0x77   : > { %411 = vst [vmem:[#allocation2 + $0x70] sm:$0xff] %v2663_v32 }
  0x78   : > { %412 = vst [vmem:[#allocation2 + $0x30] sm:$0xff] %v2663_v32 }
  0x79   : > { %413 = vst [vmem:[#allocation2 + $0x158] sm:$0xff] %v2663_v32 }
  0x7a   : > { %414 = vst [vmem:[#allocation2 + $0x150] sm:$0xff] %v2663_v32 }
  0x7b PF: > { %v2220_v33 = vld [vmem:[%s2820_s27 + $0xa8] sm:$0xf]  ;;  %v2471_v34 = vld [vmem:[%s2820_s27 + $0xb0] sm:$0xf0]  ;;  %v2208_v35 = vld [vmem:[%s2820_s27 + $0x90] sm:$0xf] }
  0x7c   : > { %v2221_v36 = vor.u32 %v2471_v34, %v2220_v33  ;;  %v2468_v37 = vld [vmem:[%s2820_s27 + $0x98] sm:$0xf0]  ;;  %v2196_v39 = vld [vmem:[%s2820_s27 + $0x78] sm:$0xf]  ;;  %v2465_v40 = vld [vmem:[%s2820_s27 + $0x80] sm:$0xf0] }
  0x7d   : > { %v2209_v38 = vor.u32 %v2468_v37, %v2208_v35  ;;  %v2197_v41 = vor.u32 %v2465_v40, %v2196_v39  ;;  %v2184_v42 = vld [vmem:[%s2820_s27 + $0x60] sm:$0xf]  ;;  %v2462_v43 = vld [vmem:[%s2820_s27 + $0x68] sm:$0xf0]  ;;  %v2172_v45 = vld [vmem:[%s2820_s27 + $0x48] sm:$0xf] }
  0x7e   : > { %1103 = vmatpush.bf16.msra.mxu0 %v2221_v36  ;;  %2521 = vmatpush.bf16.msra.mxu1 %v2221_v36  ;;  %v2185_v44 = vor.u32 %v2462_v43, %v2184_v42  ;;  %v2459_v46 = vld [vmem:[%s2820_s27 + $0x50] sm:$0xf0]  ;;  %v2160_v48 = vld [vmem:[%s2820_s27 + $0x30] sm:$0xf]  ;;  %v2456_v49 = vld [vmem:[%s2820_s27 + $0x38] sm:$0xf0] }
  0x7f   : > { %2522 = vmatpush.bf16.msra.mxu2 %v2221_v36  ;;  %2523 = vmatpush.bf16.msra.mxu3 %v2221_v36  ;;  %v2173_v47 = vor.u32 %v2459_v46, %v2172_v45  ;;  %v2161_v50 = vor.u32 %v2456_v49, %v2160_v48  ;;  %v2148_v51 = vld [vmem:[%s2820_s27 + $0x18] sm:$0xf]  ;;  %v2453_v52 = vld [vmem:[%s2820_s27 + $0x20] sm:$0xf0]  ;;  %v2136_v54 = vld [vmem:[%s2820_s27] sm:$0xf] }
  0x80   : > { %v2149_v53 = vor.u32 %v2453_v52, %v2148_v51  ;;  %v2450_v55 = vld [vmem:[%s2820_s27 + $0x8] sm:$0xf0]  ;;  %v2040_v56 = vld [vmem:[%s2827_s12] sm:$0xf]  ;;  %v2064_v58 = vld [vmem:[%s2827_s12 + $0x30] sm:$0xf] }
  0x81   : > { %v2426_v57 = vld [vmem:[%s2827_s12 + $0x8] sm:$0xf0]  ;;  %v2432_v59 = vld [vmem:[%s2827_s12 + $0x38] sm:$0xf0]  ;;  %v2412_v60 = vld [vmem:[%s2820_s27 + $0x228] sm:$0xf]  ;;  %v2137_v0 = vor.u32 %v2450_v55, %v2136_v54 }
  0x82   : > { %1104 = vmatpush.bf16.msra.mxu0 %v2209_v38  ;;  %2524 = vmatpush.bf16.msra.mxu1 %v2209_v38  ;;  %v2519_v61 = vld [vmem:[%s2820_s27 + $0x230] sm:$0xf0]  ;;  %v2470_v62 = vld [vmem:[%s2820_s27 + $0xac] sm:$0xf]  ;;  %v2222_v63 = vld [vmem:[%s2820_s27 + $0xb4] sm:$0xf0]  ;;  %v2863_v12 = vor.u32 %v2426_v57, %v2040_v56  ;;  %v2865_v13 = vor.u32 %v2432_v59, %v2064_v58 }
  0x83   : > { %2525 = vmatpush.bf16.msra.mxu2 %v2209_v38  ;;  %2526 = vmatpush.bf16.msra.mxu3 %v2209_v38  ;;  %v2088_v1 = vld [vmem:[%s2827_s12 + $0x60] sm:$0xf]  ;;  %v2438_v2 = vld [vmem:[%s2827_s12 + $0x68] sm:$0xf0]  ;;  %v2112_v3 = vld [vmem:[%s2827_s12 + $0x90] sm:$0xf]  ;;  %v2413_v7 = vor.u32 %v2519_v61, %v2412_v60  ;;  %v2225_v8 = vor.u32 %v2470_v62, %v2222_v63 }
  0x84   : > { %v2444_v4 = vld [vmem:[%s2827_s12 + $0x98] sm:$0xf0]  ;;  %v2316_v5 = vld [vmem:[%s2820_s27 + $0x168] sm:$0xf]  ;;  %v2495_v6 = vld [vmem:[%s2820_s27 + $0x170] sm:$0xf0]  ;;  %v2870_v17 = vor.u32 %v2438_v2, %v2088_v1 }
  0x85   : > { %v2494_v9 = vld [vmem:[%s2820_s27 + $0x16c] sm:$0xf]  ;;  %v2318_v10 = vld [vmem:[%s2820_s27 + $0x174] sm:$0xf0]  ;;  %v2400_v11 = vld [vmem:[%s2820_s27 + $0x210] sm:$0xf]  ;;  %v2872_v18 = vor.u32 %v2444_v4, %v2112_v3  ;;  %v2317_v19 = vor.u32 %v2495_v6, %v2316_v5 }
  0x86   : > { %1105 = vmatpush.bf16.msra.mxu0 %v2197_v41  ;;  %2527 = vmatpush.bf16.msra.mxu1 %v2197_v41  ;;  %v2516_v14 = vld [vmem:[%s2820_s27 + $0x218] sm:$0xf0]  ;;  %v2467_v15 = vld [vmem:[%s2820_s27 + $0x94] sm:$0xf]  ;;  %v2210_v16 = vld [vmem:[%s2820_s27 + $0x9c] sm:$0xf0]  ;;  %v2321_v20 = vor.u32 %v2494_v9, %v2318_v10 }
  0x87   : > { %2528 = vmatpush.bf16.msra.mxu2 %v2197_v41  ;;  %2529 = vmatpush.bf16.msra.mxu3 %v2197_v41  ;;  %v2304_v21 = vld [vmem:[%s2820_s27 + $0x150] sm:$0xf]  ;;  %v2492_v22 = vld [vmem:[%s2820_s27 + $0x158] sm:$0xf0]  ;;  %v2401_v23 = vor.u32 %v2516_v14, %v2400_v11  ;;  %v2213_v24 = vor.u32 %v2467_v15, %v2210_v16  ;;  %v2491_v25 = vld [vmem:[%s2820_s27 + $0x154] sm:$0xf] }
  0x88   : > { %v2306_v26 = vld [vmem:[%s2820_s27 + $0x15c] sm:$0xf0]  ;;  %v2388_v27 = vld [vmem:[%s2820_s27 + $0x1f8] sm:$0xf]  ;;  %v2513_v28 = vld [vmem:[%s2820_s27 + $0x200] sm:$0xf0]  ;;  %v2305_v31 = vor.u32 %v2492_v22, %v2304_v21 }
  0x89   : > { %v2464_v29 = vld [vmem:[%s2820_s27 + $0x7c] sm:$0xf]  ;;  %v2198_v30 = vld [vmem:[%s2820_s27 + $0x84] sm:$0xf0]  ;;  %v2309_v32 = vor.u32 %v2491_v25, %v2306_v26  ;;  %v2292_v33 = vld [vmem:[%s2820_s27 + $0x138] sm:$0xf]  ;;  %v2389_v35 = vor.u32 %v2513_v28, %v2388_v27 }
  0x8a   : > { %1106 = vmatpush.bf16.msra.mxu0 %v2185_v44  ;;  %2530 = vmatpush.bf16.msra.mxu1 %v2185_v44  ;;  %v2489_v34 = vld [vmem:[%s2820_s27 + $0x140] sm:$0xf0]  ;;  %v2201_v36 = vor.u32 %v2464_v29, %v2198_v30  ;;  %v2488_v37 = vld [vmem:[%s2820_s27 + $0x13c] sm:$0xf]  ;;  %v2294_v38 = vld [vmem:[%s2820_s27 + $0x144] sm:$0xf0] }
  0x8b   : > { %2531 = vmatpush.bf16.msra.mxu2 %v2185_v44  ;;  %2532 = vmatpush.bf16.msra.mxu3 %v2185_v44  ;;  %v2376_v39 = vld [vmem:[%s2820_s27 + $0x1e0] sm:$0xf]  ;;  %v2510_v40 = vld [vmem:[%s2820_s27 + $0x1e8] sm:$0xf0]  ;;  %v2461_v41 = vld [vmem:[%s2820_s27 + $0x64] sm:$0xf]  ;;  %v2293_v44 = vor.u32 %v2489_v34, %v2292_v33  ;;  %v2297_v45 = vor.u32 %v2488_v37, %v2294_v38 }
  0x8c   : > { %v2186_v42 = vld [vmem:[%s2820_s27 + $0x6c] sm:$0xf0]  ;;  %v2280_v43 = vld [vmem:[%s2820_s27 + $0x120] sm:$0xf]  ;;  %v2486_v46 = vld [vmem:[%s2820_s27 + $0x128] sm:$0xf0]  ;;  %v2377_v49 = vor.u32 %v2510_v40, %v2376_v39 }
  0x8d   : > { %v2282_v48 = vld [vmem:[%s2820_s27 + $0x12c] sm:$0xf0]  ;;  %v2052_v51 = vld [vmem:[%s2827_s12 + $0x18] sm:$0xf]  ;;  %v2429_v52 = vld [vmem:[%s2827_s12 + $0x20] sm:$0xf0]  ;;  %v2281_v62 = vor.u32 %v2486_v46, %v2280_v43 }
  0x8e   : > { %1107 = vmatpush.bf16.msra.mxu0 %v2173_v47  ;;  %2533 = vmatpush.bf16.msra.mxu1 %v2173_v47  ;;  %v2435_v54 = vld [vmem:[%s2827_s12 + $0x50] sm:$0xf0]  ;;  %v2364_v55 = vld [vmem:[%s2820_s27 + $0x1c8] sm:$0xf]  ;;  %v2458_v57 = vld [vmem:[%s2820_s27 + $0x4c] sm:$0xf] }
  0x8f   : > { %2534 = vmatpush.bf16.msra.mxu2 %v2173_v47  ;;  %2535 = vmatpush.bf16.msra.mxu3 %v2173_v47  ;;  %v2485_v47 = vld [vmem:[%s2820_s27 + $0x124] sm:$0xf]  ;;  %v2507_v56 = vld [vmem:[%s2820_s27 + $0x1d0] sm:$0xf0]  ;;  %v2174_v58 = vld [vmem:[%s2820_s27 + $0x54] sm:$0xf0] }
  0x90   : > { %v2100_v59 = vld [vmem:[%s2827_s12 + $0x78] sm:$0xf]  ;;  %v2441_v60 = vld [vmem:[%s2827_s12 + $0x80] sm:$0xf0]  ;;  %v2124_v61 = vld [vmem:[%s2827_s12 + $0xa8] sm:$0xf]  ;;  %v2285_v63 = vor.u32 %v2485_v47, %v2282_v48  ;;  %v2365_v3 = vor.u32 %v2507_v56, %v2364_v55  ;;  %v2177_v4 = vor.u32 %v2458_v57, %v2174_v58 }
  0x91   : > { %v2268_v1 = vld [vmem:[%s2820_s27 + $0x108] sm:$0xf]  ;;  %v2483_v2 = vld [vmem:[%s2820_s27 + $0x110] sm:$0xf0]  ;;  %v2482_v5 = vld [vmem:[%s2820_s27 + $0x10c] sm:$0xf]  ;;  %v2922_v15 = vor.u32 %v2441_v60, %v2100_v59 }
  0x92   : > { %1108 = vmatpush.bf16.msra.mxu0 %v2161_v50  ;;  %2536 = vmatpush.bf16.msra.mxu1 %v2161_v50  ;;  %v2270_v6 = vld [vmem:[%s2820_s27 + $0x114] sm:$0xf0]  ;;  %v2504_v10 = vld [vmem:[%s2820_s27 + $0x1b8] sm:$0xf0]  ;;  %v2455_v11 = vld [vmem:[%s2820_s27 + $0x34] sm:$0xf] }
  0x93   : > { %2537 = vmatpush.bf16.msra.mxu2 %v2161_v50  ;;  %2538 = vmatpush.bf16.msra.mxu3 %v2161_v50  ;;  %v2189_v50 = vor.u32 %v2461_v41, %v2186_v42  ;;  %v2162_v14 = vld [vmem:[%s2820_s27 + $0x3c] sm:$0xf0]  ;;  %v2256_v21 = vld [vmem:[%s2820_s27 + $0xf0] sm:$0xf]  ;;  %v2480_v22 = vld [vmem:[%s2820_s27 + $0xf8] sm:$0xf0] }
  0x94   : > { %v2479_v25 = vld [vmem:[%s2820_s27 + $0xf4] sm:$0xf]  ;;  %v2258_v26 = vld [vmem:[%s2820_s27 + $0xfc] sm:$0xf0]  ;;  %v2340_v27 = vld [vmem:[%s2820_s27 + $0x198] sm:$0xf] }
  0x95   : > { %v2501_v28 = vld [vmem:[%s2820_s27 + $0x1a0] sm:$0xf0]  ;;  %v2452_v29 = vld [vmem:[%s2820_s27 + $0x1c] sm:$0xf]  ;;  %v2150_v30 = vld [vmem:[%s2820_s27 + $0x24] sm:$0xf0] }
  0x96   : > { %1109 = vmatpush.bf16.msra.mxu0 %v2149_v53  ;;  %2539 = vmatpush.bf16.msra.mxu1 %v2149_v53  ;;  %v2244_v33 = vld [vmem:[%s2820_s27 + $0xd8] sm:$0xf]  ;;  %v2477_v34 = vld [vmem:[%s2820_s27 + $0xe0] sm:$0xf0]  ;;  %v2153_v37 = vor.u32 %v2452_v29, %v2150_v30  ;;  %v2246_v38 = vld [vmem:[%s2820_s27 + $0xe4] sm:$0xf0] }
  0x97   : > { %2540 = vmatpush.bf16.msra.mxu2 %v2149_v53  ;;  %2541 = vmatpush.bf16.msra.mxu3 %v2149_v53  ;;  %v2076_v53 = vld [vmem:[%s2827_s12 + $0x48] sm:$0xf]  ;;  %v2328_v39 = vld [vmem:[%s2820_s27 + $0x180] sm:$0xf]  ;;  %v2498_v40 = vld [vmem:[%s2820_s27 + $0x188] sm:$0xf0]  ;;  %v2245_v47 = vor.u32 %v2477_v34, %v2244_v33 }
  0x98   : > { %v2917_v9 = vor.u32 %v2435_v54, %v2076_v53  ;;  %v2449_v41 = vld [vmem:[%s2820_s27 + $0x4] sm:$0xf]  ;;  %v2138_v42 = vld [vmem:[%s2820_s27 + $0xc] sm:$0xf0]  ;;  %v2496_v46 = vld [vmem:[%s2820_s27 + $0x178] sm:$0xf0] }
  0x99   : > { %v2228_v43 = vld [vmem:[%s2820_s27 + $0xb0] sm:$0xf]  ;;  %v2141_v53 = vor.u32 %v2449_v41, %v2138_v42  ;;  %v2518_v55 = vld [vmem:[%s2820_s27 + $0x22c] sm:$0xf]  ;;  %v2414_v56 = vld [vmem:[%s2820_s27 + $0x234] sm:$0xf0] }
  0x9a   : > { %1110 = vmatpush.bf16.msra.mxu0 %v2137_v0  ;;  %2542 = vmatpush.bf16.msra.mxu1 %v2137_v0  ;;  %v2234_v54 = vld [vmem:[%s2820_s27 + $0xcc] sm:$0xf0]  ;;  %v2425_v57 = vld [vmem:[%s2827_s12 + $0x4] sm:$0xf]  ;;  %v2300_v29 = vld [vmem:[%s2820_s27 + $0x140] sm:$0xf] }
  0x9b   : > { %2543 = vmatpush.bf16.msra.mxu2 %v2137_v0  ;;  %2544 = vmatpush.bf16.msra.mxu3 %v2137_v0  ;;  %v2447_v0 = vld [vmem:[%s2827_s12 + $0xb0] sm:$0xf0]  ;;  %v2420_v60 = vld [vmem:[%s2820_s27 + $0x230] sm:$0xf]  ;;  %v2390_v33 = vld [vmem:[%s2820_s27 + $0x204] sm:$0xf0] }
  0x9c   : > { %v2924_v16 = vor.u32 %v2447_v0, %v2124_v61  ;;  %v2520_v61 = vld [vmem:[%s2820_s27 + $0x238] sm:$0xf0]  ;;  %v2312_v0 = vld [vmem:[%s2820_s27 + $0x158] sm:$0xf]  ;;  %v2060_v41 = vld [vmem:[%s2827_s12 + $0x20] sm:$0xf] }
  0x9d   : > { %1111 = vmatmul.bf16.vlgmr.msra.gmra.mxu0 %v2863_v12  ;;  %1121 = vmatmul.bf16.vlgmr.msra.gmra.mxu1 %v2865_v13  ;;  %v2430_v42 = vld [vmem:[%s2827_s12 + $0x28] sm:$0xf0]  ;;  %p2422_p13 = scmp.ne.s32.totalorder %s2645_s14, 5 }
  0x9e   : > { %1131 = vmatmul.bf16.vlgmr.msra.gmra.mxu2 %v2870_v17  ;;  %1141 = vmatmul.bf16.vlgmr.msra.gmra.mxu3 %v2872_v18 }
  0x9f   : > { %1201 = vmatpush.bf16.msrb.mxu2 %v2413_v7  ;;  %1250 = vmatpush.bf16.msrb.mxu3 %v2225_v8  ;;  %v2352_v7 = vld [vmem:[%s2820_s27 + $0x1b0] sm:$0xf]  ;;  %v2915_v8 = vor.u32 %v2429_v52, %v2052_v51  ;;  %v2473_v51 = vld [vmem:[%s2820_s27 + $0xc4] sm:$0xf]  ;;  %v2329_v52 = vor.u32 %v2498_v40, %v2328_v39  ;;  %v2428_v39 = vld [vmem:[%s2827_s12 + $0x1c] sm:$0xf] }
  0xa0   : > { %1152 = vmatpush.bf16.msrb.mxu1 %v2317_v19  ;;  %1299 = vmatpush.bf16.msrb.mxu0 %v2321_v20  ;;  %v2269_v19 = vor.u32 %v2483_v2, %v2268_v1  ;;  %v2273_v20 = vor.u32 %v2482_v5, %v2270_v6  ;;  %v2493_v1 = vld [vmem:[%s2820_s27 + $0x160] sm:$0xf0]  ;;  %v2048_v5 = vld [vmem:[%s2827_s12 + $0x8] sm:$0xf]  ;;  %v2427_v6 = vld [vmem:[%s2827_s12 + $0x10] sm:$0xf0] }
  0xa1   : > { %v2054_v40 = vld [vmem:[%s2827_s12 + $0x24] sm:$0xf0] }
  0xa3   : > { %1202 = vmatpush.bf16.msrb.mxu2 %v2401_v23  ;;  %1251 = vmatpush.bf16.msrb.mxu3 %v2213_v24  ;;  %v2353_v23 = vor.u32 %v2504_v10, %v2352_v7  ;;  %v2165_v24 = vor.u32 %v2455_v11, %v2162_v14  ;;  %v2417_v7 = vor.u32 %v2518_v55, %v2414_v56  ;;  %v2515_v11 = vld [vmem:[%s2820_s27 + $0x214] sm:$0xf] }
  0xa4   : > { %1153 = vmatpush.bf16.msrb.mxu1 %v2305_v31  ;;  %1300 = vmatpush.bf16.msrb.mxu0 %v2309_v32  ;;  %v2257_v31 = vor.u32 %v2480_v22, %v2256_v21  ;;  %v2261_v32 = vor.u32 %v2479_v25, %v2258_v26  ;;  %v2421_v10 = vor.u32 %v2520_v61, %v2420_v60  ;;  %v2408_v21 = vld [vmem:[%s2820_s27 + $0x218] sm:$0xf]  ;;  %v2517_v22 = vld [vmem:[%s2820_s27 + $0x220] sm:$0xf0]  ;;  %v2511_v55 = vld [vmem:[%s2820_s27 + $0x1f0] sm:$0xf0] }
  0xa5   : > { %v2409_v26 = vor.u32 %v2517_v22, %v2408_v21  ;;  %v2433_v60 = vld [vmem:[%s2827_s12 + $0x40] sm:$0xf0]  ;;  %v2084_v21 = vld [vmem:[%s2827_s12 + $0x50] sm:$0xf]  ;;  %v2436_v22 = vld [vmem:[%s2827_s12 + $0x58] sm:$0xf0] }
  0xa7   : > { %1203 = vmatpush.bf16.msrb.mxu2 %v2389_v35  ;;  %1252 = vmatpush.bf16.msrb.mxu3 %v2201_v36  ;;  %v2476_v35 = vld [vmem:[%s2820_s27 + $0xdc] sm:$0xf]  ;;  %v2341_v36 = vor.u32 %v2501_v28, %v2340_v27  ;;  %v2204_v27 = vld [vmem:[%s2820_s27 + $0x80] sm:$0xf]  ;;  %v2466_v28 = vld [vmem:[%s2820_s27 + $0x88] sm:$0xf0] }
  0xa8   : > { %1154 = vmatpush.bf16.msrb.mxu1 %v2293_v44  ;;  %1301 = vmatpush.bf16.msrb.mxu0 %v2297_v45  ;;  %v2472_v44 = vld [vmem:[%s2820_s27 + $0xb8] sm:$0xf0]  ;;  %v2324_v45 = vld [vmem:[%s2820_s27 + $0x170] sm:$0xf]  ;;  %v2249_v48 = vor.u32 %v2476_v35, %v2246_v38  ;;  %v2205_v30 = vor.u32 %v2466_v28, %v2204_v27  ;;  %v2168_v27 = vld [vmem:[%s2820_s27 + $0x38] sm:$0xf] }
  0xa9   : > { %v2229_v58 = vor.u32 %v2472_v44, %v2228_v43  ;;  %v2325_v59 = vor.u32 %v2496_v46, %v2324_v45  ;;  %v2990_v43 = vor.u32 %v2428_v39, %v2054_v40  ;;  %v2992_v44 = vor.u32 %v2430_v42, %v2060_v41  ;;  %v2192_v45 = vld [vmem:[%s2820_s27 + $0x68] sm:$0xf]  ;;  %v2463_v46 = vld [vmem:[%s2820_s27 + $0x70] sm:$0xf0]  ;;  %v2457_v28 = vld [vmem:[%s2820_s27 + $0x40] sm:$0xf0] }
  0xaa   : > { %v2437_v39 = vld [vmem:[%s2827_s12 + $0x64] sm:$0xf]  ;;  %v2090_v40 = vld [vmem:[%s2827_s12 + $0x6c] sm:$0xf0]  ;;  %v2096_v41 = vld [vmem:[%s2827_s12 + $0x68] sm:$0xf] }
  0xab   : > { %1204 = vmatpush.bf16.msrb.mxu2 %v2377_v49  ;;  %1253 = vmatpush.bf16.msrb.mxu3 %v2189_v50  ;;  %v2232_v49 = vld [vmem:[%s2820_s27 + $0xc0] sm:$0xf]  ;;  %v2474_v50 = vld [vmem:[%s2820_s27 + $0xc8] sm:$0xf0]  ;;  %v2439_v42 = vld [vmem:[%s2827_s12 + $0x70] sm:$0xf0] }
  0xac   : > { %1155 = vmatpush.bf16.msrb.mxu1 %v2281_v62  ;;  %1302 = vmatpush.bf16.msrb.mxu0 %v2285_v63  ;;  %v2216_v62 = vld [vmem:[%s2820_s27 + $0x98] sm:$0xf]  ;;  %v2469_v63 = vld [vmem:[%s2820_s27 + $0xa0] sm:$0xf0]  ;;  %v2233_v2 = vor.u32 %v2474_v50, %v2232_v49  ;;  %v2487_v49 = vld [vmem:[%s2820_s27 + $0x130] sm:$0xf0] }
  0xad   : > { %1116 = vmatmul.bf16.gmra.mxu0 %v2915_v8  ;;  %1126 = vmatmul.bf16.gmra.mxu1 %v2917_v9  ;;  %v2217_v14 = vor.u32 %v2469_v63, %v2216_v62  ;;  %v2509_v50 = vld [vmem:[%s2820_s27 + $0x1e4] sm:$0xf]  ;;  %v2180_v63 = vld [vmem:[%s2820_s27 + $0x50] sm:$0xf] }
  0xae   : > { %1136 = vmatmul.bf16.gmra.mxu2 %v2922_v15  ;;  %1146 = vmatmul.bf16.gmra.mxu3 %v2924_v16 }
  0xaf   : > { %1205 = vmatpush.bf16.msrb.mxu2 %v2365_v3  ;;  %1254 = vmatpush.bf16.msrb.mxu3 %v2177_v4  ;;  %v2237_v3 = vor.u32 %v2473_v51, %v2234_v54  ;;  %v2042_v4 = vld [vmem:[%s2827_s12 + $0xc] sm:$0xf0]  ;;  %v2384_v54 = vld [vmem:[%s2820_s27 + $0x1e8] sm:$0xf] }
  0xb0   : > { %1156 = vmatpush.bf16.msrb.mxu1 %v2269_v19  ;;  %1303 = vmatpush.bf16.msrb.mxu0 %v2273_v20  ;;  %v2313_v19 = vor.u32 %v2493_v1, %v2312_v0  ;;  %v2402_v20 = vld [vmem:[%s2820_s27 + $0x21c] sm:$0xf0]  ;;  %v2378_v51 = vld [vmem:[%s2820_s27 + $0x1ec] sm:$0xf0]  ;;  %v2385_v56 = vor.u32 %v2511_v55, %v2384_v54  ;;  %v2460_v0 = vld [vmem:[%s2820_s27 + $0x58] sm:$0xf0] }
  0xb1   : > { %v2405_v25 = vor.u32 %v2515_v11, %v2402_v20  ;;  %v2276_v1 = vld [vmem:[%s2820_s27 + $0x110] sm:$0xf]  ;;  %v2508_v11 = vld [vmem:[%s2820_s27 + $0x1d8] sm:$0xf0]  ;;  %v2078_v20 = vld [vmem:[%s2827_s12 + $0x54] sm:$0xf0] }
  0xb2   : > { %v2342_v54 = vld [vmem:[%s2820_s27 + $0x1a4] sm:$0xf0]  ;;  %v2348_v55 = vld [vmem:[%s2820_s27 + $0x1a0] sm:$0xf] }
  0xb3   : > { %1206 = vmatpush.bf16.msrb.mxu2 %v2353_v23  ;;  %1255 = vmatpush.bf16.msrb.mxu3 %v2165_v24  ;;  %v2970_v23 = vor.u32 %v2425_v57, %v2042_v4  ;;  %v2972_v24 = vor.u32 %v2427_v6, %v2048_v5  ;;  %v2431_v57 = vld [vmem:[%s2827_s12 + $0x34] sm:$0xf]  ;;  %v2506_v4 = vld [vmem:[%s2820_s27 + $0x1cc] sm:$0xf]  ;;  %v2366_v5 = vld [vmem:[%s2820_s27 + $0x1d4] sm:$0xf0] }
  0xb4   : > { %1157 = vmatpush.bf16.msrb.mxu1 %v2257_v31  ;;  %1304 = vmatpush.bf16.msrb.mxu0 %v2261_v32  ;;  %v2490_v31 = vld [vmem:[%s2820_s27 + $0x148] sm:$0xf0]  ;;  %v2512_v32 = vld [vmem:[%s2820_s27 + $0x1fc] sm:$0xf] }
  0xb5   : > { %v2301_v34 = vor.u32 %v2490_v31, %v2300_v29  ;;  %v2393_v35 = vor.u32 %v2512_v32, %v2390_v33  ;;  %v2264_v29 = vld [vmem:[%s2820_s27 + $0xf8] sm:$0xf]  ;;  %v2481_v31 = vld [vmem:[%s2820_s27 + $0x100] sm:$0xf0]  ;;  %v2503_v32 = vld [vmem:[%s2820_s27 + $0x1b4] sm:$0xf] }
  0xb6   : > { %v2354_v33 = vld [vmem:[%s2820_s27 + $0x1bc] sm:$0xf0] }
  0xb7   : > { %1207 = vmatpush.bf16.msrb.mxu2 %v2341_v36  ;;  %1256 = vmatpush.bf16.msrb.mxu3 %v2153_v37  ;;  %v2396_v36 = vld [vmem:[%s2820_s27 + $0x200] sm:$0xf]  ;;  %v2514_v37 = vld [vmem:[%s2820_s27 + $0x208] sm:$0xf0] }
  0xb8   : > { %1158 = vmatpush.bf16.msrb.mxu1 %v2245_v47  ;;  %1305 = vmatpush.bf16.msrb.mxu0 %v2249_v48  ;;  %v2397_v38 = vor.u32 %v2514_v37, %v2396_v36  ;;  %v2288_v47 = vld [vmem:[%s2820_s27 + $0x128] sm:$0xf]  ;;  %v2193_v48 = vor.u32 %v2463_v46, %v2192_v45  ;;  %v2360_v36 = vld [vmem:[%s2820_s27 + $0x1b8] sm:$0xf]  ;;  %v2505_v37 = vld [vmem:[%s2820_s27 + $0x1c0] sm:$0xf0]  ;;  %v3050_v45 = vor.u32 %v2437_v39, %v2090_v40 }
  0xb9   : > { %v3052_v46 = vor.u32 %v2439_v42, %v2096_v41  ;;  %v2446_v39 = vld [vmem:[%s2827_s12 + $0xac] sm:$0xf]  ;;  %v2126_v40 = vld [vmem:[%s2827_s12 + $0xb4] sm:$0xf0]  ;;  %v2132_v41 = vld [vmem:[%s2827_s12 + $0xb0] sm:$0xf] }
  0xba   : > { %v2448_v42 = vld [vmem:[%s2827_s12 + $0xb8] sm:$0xf0] }
  0xbb   : > { %1208 = vmatpush.bf16.msrb.mxu2 %v2329_v52  ;;  %1257 = vmatpush.bf16.msrb.mxu3 %v2141_v53  ;;  %v2289_v52 = vor.u32 %v2487_v49, %v2288_v47  ;;  %v2381_v53 = vor.u32 %v2509_v50, %v2378_v51  ;;  %v2156_v47 = vld [vmem:[%s2820_s27 + $0x20] sm:$0xf]  ;;  %v2478_v51 = vld [vmem:[%s2820_s27 + $0xe8] sm:$0xf0] }
  0xbc   : > { %1159 = vmatpush.bf16.msrb.mxu1 %v2233_v2  ;;  %1306 = vmatpush.bf16.msrb.mxu0 %v2237_v3  ;;  %v2181_v2 = vor.u32 %v2460_v0, %v2180_v63  ;;  %v2484_v3 = vld [vmem:[%s2820_s27 + $0x118] sm:$0xf0]  ;;  %v2252_v49 = vld [vmem:[%s2820_s27 + $0xe0] sm:$0xf]  ;;  %v2442_v0 = vld [vmem:[%s2827_s12 + $0x88] sm:$0xf0] }
  0xbd   : > { %v2277_v6 = vor.u32 %v2484_v3, %v2276_v1  ;;  %v2108_v63 = vld [vmem:[%s2827_s12 + $0x80] sm:$0xf]  ;;  %v2144_v3 = vld [vmem:[%s2820_s27 + $0x8] sm:$0xf] }
  0xbe   : > { %1209 = vmatmul.bf16.vlgmr.msrb.gmra.mxu2 %v2972_v24  ;;  %1258 = vmatmul.bf16.vlgmr.msrb.gmra.mxu3 %v2863_v12 }
  0xbf   : > { %1397 = vmatpush.bf16.msra.mxu2 %v2229_v58  ;;  %1446 = vmatpush.bf16.msra.mxu3 %v2325_v59  ;;  %v2066_v58 = vld [vmem:[%s2827_s12 + $0x3c] sm:$0xf0]  ;;  %v2072_v59 = vld [vmem:[%s2827_s12 + $0x38] sm:$0xf] }
  0xc0   : > { %1348 = vmatpush.bf16.msra.mxu1 %v2417_v7  ;;  %1495 = vmatpush.bf16.msra.mxu0 %v2421_v10  ;;  %v3010_v61 = vor.u32 %v2431_v57, %v2066_v58  ;;  %v3012_v62 = vor.u32 %v2433_v60, %v2072_v59  ;;  %v2369_v7 = vor.u32 %v2506_v4, %v2366_v5  ;;  %v2372_v10 = vld [vmem:[%s2820_s27 + $0x1d0] sm:$0xf]  ;;  %v2502_v57 = vld [vmem:[%s2820_s27 + $0x1a8] sm:$0xf0]  ;;  %v2440_v59 = vld [vmem:[%s2827_s12 + $0x7c] sm:$0xf] }
  0xc1   : > { %1160 = vmatmul.bf16.vlgmr.msrb.gmra.mxu1 %v2970_v23  ;;  %1307 = vmatmul.bf16.vlgmr.msrb.gmra.mxu0 %v2970_v23  ;;  %v2349_v58 = vor.u32 %v2502_v57, %v2348_v55  ;;  %v2102_v60 = vld [vmem:[%s2827_s12 + $0x84] sm:$0xf0]  ;;  %v2451_v4 = vld [vmem:[%s2820_s27 + $0x10] sm:$0xf0] }
  0xc2   : > { %v3070_v1 = vor.u32 %v2440_v59, %v2102_v60  ;;  %v2240_v5 = vld [vmem:[%s2820_s27 + $0xc8] sm:$0xf] }
  0xc3   : > { %1398 = vmatpush.bf16.msra.mxu2 %v2217_v14  ;;  %1447 = vmatpush.bf16.msra.mxu3 %v2313_v19  ;;  %v2373_v14 = vor.u32 %v2508_v11, %v2372_v10  ;;  %v2434_v19 = vld [vmem:[%s2827_s12 + $0x4c] sm:$0xf]  ;;  %v2497_v11 = vld [vmem:[%s2820_s27 + $0x184] sm:$0xf] }
  0xc4   : > { %1349 = vmatpush.bf16.msra.mxu1 %v2405_v25  ;;  %1496 = vmatpush.bf16.msra.mxu0 %v2409_v26  ;;  %v3030_v25 = vor.u32 %v2434_v19, %v2078_v20  ;;  %v3032_v26 = vor.u32 %v2436_v22, %v2084_v21  ;;  %v2336_v19 = vld [vmem:[%s2820_s27 + $0x188] sm:$0xf]  ;;  %v2499_v21 = vld [vmem:[%s2820_s27 + $0x190] sm:$0xf0] }
  0xc5   : > { %v2337_v22 = vor.u32 %v2499_v21, %v2336_v19  ;;  %v418_v19 = vld [vmem:[#allocation2 + $0x48] sm:$0xff] }
  0xc7   : > { %1399 = vmatpush.bf16.msra.mxu2 %v2205_v30  ;;  %1448 = vmatpush.bf16.msra.mxu3 %v2301_v34  ;;  %v2169_v30 = vor.u32 %v2457_v28, %v2168_v27  ;;  %v2265_v34 = vor.u32 %v2481_v31, %v2264_v29  ;;  %v2443_v27 = vld [vmem:[%s2827_s12 + $0x94] sm:$0xf]  ;;  %v2114_v28 = vld [vmem:[%s2827_s12 + $0x9c] sm:$0xf0]  ;;  %v2120_v29 = vld [vmem:[%s2827_s12 + $0x98] sm:$0xf] }
  0xc8   : > { %1350 = vmatpush.bf16.msra.mxu1 %v2393_v35  ;;  %1497 = vmatpush.bf16.msra.mxu0 %v2397_v38  ;;  %v2357_v35 = vor.u32 %v2503_v32, %v2354_v33  ;;  %v2361_v38 = vor.u32 %v2505_v37, %v2360_v36  ;;  %v3092_v33 = vor.u32 %v2443_v27, %v2114_v28 }
  0xcb   : > { %1400 = vmatpush.bf16.msra.mxu2 %v2193_v48  ;;  %1449 = vmatpush.bf16.msra.mxu3 %v2289_v52  ;;  %v2454_v48 = vld [vmem:[%s2820_s27 + $0x28] sm:$0xf0]  ;;  %v2253_v52 = vor.u32 %v2478_v51, %v2252_v49  ;;  %v3116_v51 = vor.u32 %v2446_v39, %v2126_v40 }
  0xcc   : > { %1351 = vmatpush.bf16.msra.mxu1 %v2381_v53  ;;  %1498 = vmatpush.bf16.msra.mxu0 %v2385_v56  ;;  %v2157_v50 = vor.u32 %v2454_v48, %v2156_v47  ;;  %v2500_v53 = vld [vmem:[%s2820_s27 + $0x19c] sm:$0xf] }
  0xcd   : > { %v2345_v56 = vor.u32 %v2500_v53, %v2342_v54 }
  0xce   : > { %1214 = vmatmul.bf16.gmra.mxu2 %v2992_v44  ;;  %1263 = vmatmul.bf16.gmra.mxu3 %v2915_v8 }
  0xcf   : > { %1401 = vmatpush.bf16.msra.mxu2 %v2181_v2  ;;  %1450 = vmatpush.bf16.msra.mxu3 %v2277_v6  ;;  %v3072_v2 = vor.u32 %v2442_v0, %v2108_v63  ;;  %v2145_v6 = vor.u32 %v2451_v4, %v2144_v3  ;;  %v415_v0 = vld [vmem:[#allocation2 + $0xb0] sm:$0xff] }
  0xd0   : > { %1352 = vmatpush.bf16.msra.mxu1 %v2369_v7  ;;  %1499 = vmatpush.bf16.msra.mxu0 %v2373_v14  ;;  %v2475_v7 = vld [vmem:[%s2820_s27 + $0xd0] sm:$0xf0]  ;;  %v2330_v14 = vld [vmem:[%s2820_s27 + $0x18c] sm:$0xf0] }
  0xd1   : > { %1165 = vmatmul.bf16.gmra.mxu1 %v2990_v43  ;;  %1312 = vmatmul.bf16.gmra.mxu0 %v2990_v43  ;;  %v2241_v10 = vor.u32 %v2475_v7, %v2240_v5  ;;  %v2333_v20 = vor.u32 %v2497_v11, %v2330_v14 }
  0xd3   : > { %1402 = vmatpush.bf16.msra.mxu2 %v2169_v30  ;;  %1451 = vmatpush.bf16.msra.mxu3 %v2265_v34  ;;  %v2445_v30 = vld [vmem:[%s2827_s12 + $0xa0] sm:$0xf0] }
  0xd4   : > { %1353 = vmatpush.bf16.msra.mxu1 %v2357_v35  ;;  %1500 = vmatpush.bf16.msra.mxu0 %v2361_v38  ;;  %v3094_v34 = vor.u32 %v2445_v30, %v2120_v29  ;;  %v421_v29 = vld [vmem:[#allocation2 + $0x40] sm:$0xff] }
  0xd7   : > { %1403 = vmatpush.bf16.msra.mxu2 %v2157_v50  ;;  %1452 = vmatpush.bf16.msra.mxu3 %v2253_v52  ;;  %v3118_v52 = vor.u32 %v2448_v42, %v2132_v41 }
  0xd8   : > { %1354 = vmatpush.bf16.msra.mxu1 %v2345_v56  ;;  %1501 = vmatpush.bf16.msra.mxu0 %v2349_v58 }
  0xdb   : > { %1404 = vmatpush.bf16.msra.mxu2 %v2145_v6  ;;  %1453 = vmatpush.bf16.msra.mxu3 %v2241_v10 }
  0xdc   : > { %1355 = vmatpush.bf16.msra.mxu1 %v2333_v20  ;;  %1502 = vmatpush.bf16.msra.mxu0 %v2337_v22 }
  0xde   : > { %1219 = vmatmul.bf16.gmra.mxu2 %v3012_v62  ;;  %1268 = vmatmul.bf16.gmra.mxu3 %v2865_v13 }
  0xe1   : > { %1170 = vmatmul.bf16.gmra.mxu1 %v3010_v61  ;;  %1317 = vmatmul.bf16.gmra.mxu0 %v3010_v61 }
  0xee   : > { %1224 = vmatmul.bf16.gmra.mxu2 %v3032_v26  ;;  %1273 = vmatmul.bf16.gmra.mxu3 %v2917_v9 }
  0xf1   : > { %1175 = vmatmul.bf16.gmra.mxu1 %v3030_v25  ;;  %1322 = vmatmul.bf16.gmra.mxu0 %v3030_v25 }
  0xfe   : > { %1229 = vmatmul.bf16.gmra.mxu2 %v3052_v46  ;;  %1278 = vmatmul.bf16.gmra.mxu3 %v2870_v17 }
 0x101   : > { %1180 = vmatmul.bf16.gmra.mxu1 %v3050_v45  ;;  %1327 = vmatmul.bf16.gmra.mxu0 %v3050_v45 }
 0x10e   : > { %1234 = vmatmul.bf16.gmra.mxu2 %v3072_v2  ;;  %1283 = vmatmul.bf16.gmra.mxu3 %v2922_v15 }
 0x111   : > { %1185 = vmatmul.bf16.gmra.mxu1 %v3070_v1  ;;  %1332 = vmatmul.bf16.gmra.mxu0 %v3070_v1 }
 0x11a   : > { %v1112_v31 = vpop.f32.mrf.mxu0  ;;  %v3090_v32 = vpop.f32.mrf.mxu1 }
 0x11e   : > { %1239 = vmatmul.bf16.gmra.mxu2 %v3094_v34  ;;  %1288 = vmatmul.bf16.gmra.mxu3 %v2872_v18 }
 0x121   : > { %1190 = vmatmul.bf16.gmra.mxu1 %v3092_v33  ;;  %1337 = vmatmul.bf16.gmra.mxu0 %v3092_v33  ;;  %v3100_v35 = vpop.f32.mrf.mxu2  ;;  %v3102_v36 = vpop.f32.mrf.mxu3 }
 0x122   : > { %v1114_v37 = vpop.f32.mrf.mxu0  ;;  %v3104_v38 = vpop.f32.mrf.mxu1 }
 0x129   : > { %v3110_v47 = vpop.f32.mrf.mxu2  ;;  %v3112_v48 = vpop.f32.mrf.mxu3 }
 0x12a   : > { %v1117_v49 = vpop.f32.mrf.mxu0  ;;  %v3114_v50 = vpop.f32.mrf.mxu1 }
 0x12e   : > { %1244 = vmatmul.bf16.gmra.mxu2 %v3118_v52  ;;  %1293 = vmatmul.bf16.gmra.mxu3 %v2924_v16 }
 0x131   : > { %1195 = vmatmul.bf16.gmra.mxu1 %v3116_v51  ;;  %1342 = vmatmul.bf16.gmra.mxu0 %v3116_v51  ;;  %v3124_v53 = vpop.f32.mrf.mxu2  ;;  %v3126_v54 = vpop.f32.mrf.mxu3 }
 0x132   : > { %v1119_v55 = vpop.f32.mrf.mxu0  ;;  %v3128_v56 = vpop.f32.mrf.mxu1 }
 0x139   : > { %v3130_v57 = vpop.f32.mrf.mxu2  ;;  %v3132_v58 = vpop.f32.mrf.mxu3 }
 0x13e   : > { %v1161_v59 = vpop.f32.mrf.mxu1  ;;  %v1308_v60 = vpop.f32.mrf.mxu0  ;;  %1405 = vmatmul.bf16.vlgmr.msra.gmra.mxu2 %v2863_v12  ;;  %1454 = vmatmul.bf16.vlgmr.msra.gmra.mxu3 %v2970_v23 }
 0x13f   : > { %v1162_v63 = vadd.f32 %v1161_v59, %v1112_v31 }
 0x141   : > { %1356 = vmatmul.bf16.vlgmr.msra.gmra.mxu1 %v2972_v24  ;;  %1503 = vmatmul.bf16.vlgmr.msra.gmra.mxu0 %v2972_v24  ;;  %v1210_v3 = vpop.f32.mrf.mxu2  ;;  %v1259_v5 = vpop.f32.mrf.mxu3 }
 0x142   : > { %v1211_v4 = vadd.f32 %v1210_v3, %v1162_v63  ;;  %v3138_v6 = vadd.f32 %v1308_v60, %v1259_v5  ;;  %v424_v60 = vld [vmem:[#allocation2 + $0x110] sm:$0xff] }
 0x144   : > { %v1544_v10 = vadd.f32 %v1211_v4, %v415_v0  ;;  %v427_v4 = vld [vmem:[#allocation2 + $0x148] sm:$0xff] }
 0x146   : > { %v1163_v7 = vpop.f32.mrf.mxu1  ;;  %v1310_v11 = vpop.f32.mrf.mxu0  ;;  %1592 = vst [vmem:[#allocation2 + $0xb0] sm:$0xff] %v1544_v10 }
 0x147   : > { %v1164_v14 = vadd.f32 %v1163_v7, %v1114_v37 }
 0x149   : > { %v1212_v20 = vpop.f32.mrf.mxu2  ;;  %v1261_v12 = vpop.f32.mrf.mxu3 }
 0x14a   : > { %v1213_v21 = vadd.f32 %v1212_v20, %v1164_v14  ;;  %v3140_v22 = vadd.f32 %v1310_v11, %v1261_v12  ;;  %v430_v12 = vld [vmem:[#allocation2 + $0xd8] sm:$0xff] }
 0x14c   : > { %v1547_v24 = vadd.f32 %v1213_v21, %v418_v19 }
 0x14e   : > { %v1166_v23 = vpop.f32.mrf.mxu1  ;;  %v1313_v27 = vpop.f32.mrf.mxu0  ;;  %1595 = vst [vmem:[#allocation2 + $0x48] sm:$0xff] %v1547_v24  ;;  %1410 = vmatmul.bf16.gmra.mxu2 %v2915_v8  ;;  %1459 = vmatmul.bf16.gmra.mxu3 %v2990_v43 }
 0x14f   : > { %v1167_v28 = vadd.f32 %v1166_v23, %v1117_v49 }
 0x151   : > { %1361 = vmatmul.bf16.gmra.mxu1 %v2992_v44  ;;  %1508 = vmatmul.bf16.gmra.mxu0 %v2992_v44  ;;  %v1215_v30 = vpop.f32.mrf.mxu2  ;;  %v1264_v37 = vpop.f32.mrf.mxu3 }
 0x152   : > { %v1216_v31 = vadd.f32 %v1215_v30, %v1167_v28  ;;  %v3146_v39 = vadd.f32 %v1313_v27, %v1264_v37  ;;  %v433_v28 = vld [vmem:[#allocation2 + $0x138] sm:$0xff] }
 0x154   : > { %v1550_v41 = vadd.f32 %v1216_v31, %v421_v29 }
 0x156   : > { %v1168_v40 = vpop.f32.mrf.mxu1  ;;  %v1315_v42 = vpop.f32.mrf.mxu0  ;;  %1598 = vst [vmem:[#allocation2 + $0x40] sm:$0xff] %v1550_v41 }
 0x157   : > { %v1169_v59 = vadd.f32 %v1168_v40, %v1119_v55 }
 0x159   : > { %v1217_v63 = vpop.f32.mrf.mxu2  ;;  %v1266_v8 = vpop.f32.mrf.mxu3 }
 0x15a   : > { %v1218_v0 = vadd.f32 %v1217_v63, %v1169_v59  ;;  %v3148_v3 = vadd.f32 %v1315_v42, %v1266_v8 }
 0x15c   : > { %v1553_v44 = vadd.f32 %v1218_v0, %v424_v60  ;;  %v436_v60 = vld [vmem:[#allocation2 + $0xa8] sm:$0xff] }
 0x15e   : > { %v1171_v43 = vpop.f32.mrf.mxu1  ;;  %v1318_v49 = vpop.f32.mrf.mxu0  ;;  %1601 = vst [vmem:[#allocation2 + $0x110] sm:$0xff] %v1553_v44  ;;  %1415 = vmatmul.bf16.gmra.mxu2 %v2865_v13  ;;  %1464 = vmatmul.bf16.gmra.mxu3 %v3010_v61 }
 0x15f   : > { %v1172_v55 = vadd.f32 %v1171_v43, %v3090_v32  ;;  %v439_v43 = vld [vmem:[#allocation2 + $0xe8] sm:$0xff] }
 0x161   : > { %1366 = vmatmul.bf16.gmra.mxu1 %v3012_v62  ;;  %1513 = vmatmul.bf16.gmra.mxu0 %v3012_v62  ;;  %v1220_v5 = vpop.f32.mrf.mxu2  ;;  %v1269_v10 = vpop.f32.mrf.mxu3 }
 0x162   : > { %v1221_v7 = vadd.f32 %v1220_v5, %v1172_v55  ;;  %v3155_v11 = vadd.f32 %v1318_v49, %v1269_v10 }
 0x164   : > { %v1556_v19 = vadd.f32 %v1221_v7, %v427_v4 }
 0x166   : > { %v1173_v14 = vpop.f32.mrf.mxu1  ;;  %v1320_v20 = vpop.f32.mrf.mxu0  ;;  %1604 = vst [vmem:[#allocation2 + $0x148] sm:$0xff] %v1556_v19  ;;  %v442_v19 = vld [vmem:[#allocation2 + $0x88] sm:$0xff] }
 0x167   : > { %v1174_v21 = vadd.f32 %v1173_v14, %v3104_v38 }
 0x169   : > { %v1222_v13 = vpop.f32.mrf.mxu2  ;;  %v1271_v61 = vpop.f32.mrf.mxu3 }
 0x16a   : > { %v1223_v23 = vadd.f32 %v1222_v13, %v1174_v21  ;;  %v3158_v24 = vadd.f32 %v1320_v20, %v1271_v61  ;;  %v445_v13 = vld [vmem:[#allocation2 + $0xf0] sm:$0xff] }
 0x16c   : > { %v1559_v32 = vadd.f32 %v1223_v23, %v430_v12 }
 0x16e   : > { %v1176_v62 = vpop.f32.mrf.mxu1  ;;  %v1323_v27 = vpop.f32.mrf.mxu0  ;;  %1607 = vst [vmem:[#allocation2 + $0xd8] sm:$0xff] %v1559_v32  ;;  %1420 = vmatmul.bf16.gmra.mxu2 %v2917_v9  ;;  %1469 = vmatmul.bf16.gmra.mxu3 %v3030_v25 }
 0x16f   : > { %v1177_v38 = vadd.f32 %v1176_v62, %v3114_v50 }
 0x171   : > { %1371 = vmatmul.bf16.gmra.mxu1 %v3032_v26  ;;  %1518 = vmatmul.bf16.gmra.mxu0 %v3032_v26  ;;  %v1225_v29 = vpop.f32.mrf.mxu2  ;;  %v1274_v31 = vpop.f32.mrf.mxu3 }
 0x172   : > { %v1226_v30 = vadd.f32 %v1225_v29, %v1177_v38  ;;  %v3165_v37 = vadd.f32 %v1323_v27, %v1274_v31 }
 0x174   : > { %v1562_v41 = vadd.f32 %v1226_v30, %v433_v28  ;;  %v448_v30 = vld [vmem:[#allocation2 + $0xc8] sm:$0xff] }
 0x176   : > { %v1178_v40 = vpop.f32.mrf.mxu1  ;;  %v1325_v42 = vpop.f32.mrf.mxu0  ;;  %1610 = vst [vmem:[#allocation2 + $0x138] sm:$0xff] %v1562_v41 }
 0x177   : > { %v1179_v59 = vadd.f32 %v1178_v40, %v3128_v56 }
 0x179   : > { %v1227_v9 = vpop.f32.mrf.mxu2  ;;  %v1276_v25 = vpop.f32.mrf.mxu3 }
 0x17a   : > { %v1228_v63 = vadd.f32 %v1227_v9, %v1179_v59  ;;  %v3168_v0 = vadd.f32 %v1325_v42, %v1276_v25  ;;  %v451_v42 = vld [vmem:[#allocation2 + $0xc0] sm:$0xff] }
 0x17c   : > { %v1565_v50 = vadd.f32 %v1228_v63, %v436_v60 }
 0x17e   : > { %v1181_v26 = vpop.f32.mrf.mxu1  ;;  %v1328_v8 = vpop.f32.mrf.mxu0  ;;  %1613 = vst [vmem:[#allocation2 + $0xa8] sm:$0xff] %v1565_v50  ;;  %1425 = vmatmul.bf16.gmra.mxu2 %v2870_v17  ;;  %1474 = vmatmul.bf16.gmra.mxu3 %v3050_v45 }
 0x17f   : > { %v1182_v56 = vadd.f32 %v1181_v26, %v3100_v35 }
 0x181   : > { %1376 = vmatmul.bf16.gmra.mxu1 %v3052_v46  ;;  %1523 = vmatmul.bf16.gmra.mxu0 %v3052_v46  ;;  %v1230_v44 = vpop.f32.mrf.mxu2  ;;  %v1279_v55 = vpop.f32.mrf.mxu3 }
 0x182   : > { %v1231_v49 = vadd.f32 %v1230_v44, %v1182_v56  ;;  %v3175_v4 = vadd.f32 %v1328_v8, %v1279_v55  ;;  %v454_v56 = vld [vmem:[#allocation2 + $0x8] sm:$0xff]  ;;  %v457_v55 = vld [vmem:[#allocation2 + $0x50] sm:$0xff] }
 0x184   : > { %v1568_v7 = vadd.f32 %v1231_v49, %v439_v43 }
 0x186   : > { %v1183_v5 = vpop.f32.mrf.mxu1  ;;  %v1330_v10 = vpop.f32.mrf.mxu0  ;;  %1616 = vst [vmem:[#allocation2 + $0xe8] sm:$0xff] %v1568_v7 }
 0x187   : > { %v1184_v14 = vadd.f32 %v1183_v5, %v3110_v47 }
 0x189   : > { %v1232_v17 = vpop.f32.mrf.mxu2  ;;  %v1281_v45 = vpop.f32.mrf.mxu3 }
 0x18a   : > { %v1233_v20 = vadd.f32 %v1232_v17, %v1184_v14  ;;  %v3178_v21 = vadd.f32 %v1330_v10, %v1281_v45 }
 0x18c   : > { %v1571_v35 = vadd.f32 %v1233_v20, %v442_v19 }
 0x18e   : > { %v1186_v46 = vpop.f32.mrf.mxu1  ;;  %v1333_v12 = vpop.f32.mrf.mxu0  ;;  %1619 = vst [vmem:[#allocation2 + $0x88] sm:$0xff] %v1571_v35  ;;  %1430 = vmatmul.bf16.gmra.mxu2 %v2922_v15  ;;  %1479 = vmatmul.bf16.gmra.mxu3 %v3070_v1 }
 0x18f   : > { %v1187_v47 = vadd.f32 %v1186_v46, %v3124_v53  ;;  %v460_v46 = vld [vmem:[#allocation2 + $0x30] sm:$0xff] }
 0x191   : > { %1381 = vmatmul.bf16.gmra.mxu1 %v3072_v2  ;;  %1528 = vmatmul.bf16.gmra.mxu0 %v3072_v2  ;;  %v1235_v23 = vpop.f32.mrf.mxu2  ;;  %v1284_v62 = vpop.f32.mrf.mxu3 }
 0x192   : > { %v1236_v61 = vadd.f32 %v1235_v23, %v1187_v47  ;;  %v3185_v32 = vadd.f32 %v1333_v12, %v1284_v62 }
 0x194   : > { %v1574_v38 = vadd.f32 %v1236_v61, %v445_v13 }
 0x196   : > { %v1188_v27 = vpop.f32.mrf.mxu1  ;;  %v1335_v28 = vpop.f32.mrf.mxu0  ;;  %1622 = vst [vmem:[#allocation2 + $0xf0] sm:$0xff] %v1574_v38 }
 0x197   : > { %v1189_v29 = vadd.f32 %v1188_v27, %v3130_v57 }
 0x199   : > { %v1237_v15 = vpop.f32.mrf.mxu2  ;;  %v1286_v1 = vpop.f32.mrf.mxu3 }
 0x19a   : > { %v1238_v31 = vadd.f32 %v1237_v15, %v1189_v29  ;;  %v3188_v40 = vadd.f32 %v1335_v28, %v1286_v1  ;;  %v419_v28 = vld [vmem:[#allocation2 + $0x160] sm:$0xff]  ;;  %v417_v29 = vld [vmem:[#allocation2 + $0x10] sm:$0xff] }
 0x19c   : > { %v1577_v53 = vadd.f32 %v1238_v31, %v448_v30 }
 0x19e   : > { %v1191_v2 = vpop.f32.mrf.mxu1  ;;  %v1338_v41 = vpop.f32.mrf.mxu0  ;;  %1625 = vst [vmem:[#allocation2 + $0xc8] sm:$0xff] %v1577_v53  ;;  %1435 = vmatmul.bf16.gmra.mxu2 %v2872_v18  ;;  %1484 = vmatmul.bf16.gmra.mxu3 %v3092_v33 }
 0x19f   : > { %v1192_v57 = vadd.f32 %v1191_v2, %v3102_v36 }
 0x1a1   : > { %1386 = vmatmul.bf16.gmra.mxu1 %v3094_v34  ;;  %1533 = vmatmul.bf16.gmra.mxu0 %v3094_v34  ;;  %v1240_v59 = vpop.f32.mrf.mxu2  ;;  %v1289_v9 = vpop.f32.mrf.mxu3 }
 0x1a2   : > { %v1241_v60 = vadd.f32 %v1240_v59, %v1192_v57  ;;  %v3195_v63 = vadd.f32 %v1338_v41, %v1289_v9  ;;  %v422_v57 = vld [vmem:[#allocation2 + $0x178] sm:$0xff]  ;;  %v420_v59 = vld [vmem:[#allocation2 + $0x128] sm:$0xff] }
 0x1a4   : > { %v1580_v26 = vadd.f32 %v1241_v60, %v451_v42 }
 0x1a6   : > { %v1193_v25 = vpop.f32.mrf.mxu1  ;;  %v1340_v50 = vpop.f32.mrf.mxu0  ;;  %1628 = vst [vmem:[#allocation2 + $0xc0] sm:$0xff] %v1580_v26 }
 0x1a7   : > { %v1194_v8 = vadd.f32 %v1193_v25, %v3112_v48 }
 0x1a9   : > { %v1242_v18 = vpop.f32.mrf.mxu2  ;;  %v1291_v33 = vpop.f32.mrf.mxu3 }
 0x1aa   : > { %v1243_v43 = vadd.f32 %v1242_v18, %v1194_v8  ;;  %v3198_v44 = vadd.f32 %v1340_v50, %v1291_v33  ;;  %v425_v18 = vld [vmem:[#allocation2 + $0x90] sm:$0xff]  ;;  %v423_v33 = vld [vmem:[#allocation2 + $0x108] sm:$0xff] }
 0x1ac   : > { %v1583_v36 = vadd.f32 %v1243_v43, %v454_v56 }
 0x1ae   : > { %v1196_v34 = vpop.f32.mrf.mxu1  ;;  %v1343_v49 = vpop.f32.mrf.mxu0  ;;  %1631 = vst [vmem:[#allocation2 + $0x8] sm:$0xff] %v1583_v36  ;;  %1440 = vmatmul.bf16.gmra.mxu2 %v2924_v16  ;;  %1489 = vmatmul.bf16.gmra.mxu3 %v3116_v51 }
 0x1af   : > { %v1197_v48 = vadd.f32 %v1196_v34, %v3126_v54 }
 0x1b1   : > { %1391 = vmatmul.bf16.gmra.mxu1 %v3118_v52  ;;  %1538 = vmatmul.bf16.gmra.mxu0 %v3118_v52  ;;  %v1245_v5 = vpop.f32.mrf.mxu2  ;;  %v1294_v10 = vpop.f32.mrf.mxu3  ;;  %v416_v52 = vld [vmem:[#allocation2 + $0xd0] sm:$0xff] }
 0x1b2   : > { %v1246_v7 = vadd.f32 %v1245_v5, %v1197_v48  ;;  %v3205_v14 = vadd.f32 %v1343_v49, %v1294_v10  ;;  %v428_v10 = vld [vmem:[#allocation2 + $0x100] sm:$0xff] }
 0x1b4   : > { %v1586_v17 = vadd.f32 %v1246_v7, %v457_v55 }
 0x1b6   : > { %v1198_v19 = vpop.f32.mrf.mxu1  ;;  %v1345_v20 = vpop.f32.mrf.mxu0  ;;  %1634 = vst [vmem:[#allocation2 + $0x50] sm:$0xff] %v1586_v17  ;;  %v426_v17 = vld [vmem:[#allocation2 + $0x118] sm:$0xff] }
 0x1b7   : > { %v1199_v45 = vadd.f32 %v1198_v19, %v3132_v58 }
 0x1b9   : > { %v1247_v16 = vpop.f32.mrf.mxu2  ;;  %v1296_v51 = vpop.f32.mrf.mxu3 }
 0x1ba   : > { %v1248_v35 = vadd.f32 %v1247_v16, %v1199_v45  ;;  %v3208_v12 = vadd.f32 %v1345_v20, %v1296_v51 }
 0x1bc   : > { %v1589_v47 = vadd.f32 %v1248_v35, %v460_v46 }
 0x1be   : > { %v1357_v54 = vpop.f32.mrf.mxu1  ;;  %v1504_v23 = vpop.f32.mrf.mxu0  ;;  %1637 = vst [vmem:[#allocation2 + $0x30] sm:$0xff] %v1589_v47 }
 0x1bf   : > { %v1358_v13 = vadd.f32 %v1357_v54, %v3138_v6  ;;  %v431_v54 = vld [vmem:[#allocation2 + $0x80] sm:$0xff] }
 0x1c1   : > { %v1545_v61 = vadd.f32 %v1358_v13, %v416_v52  ;;  %v1406_v62 = vpop.f32.mrf.mxu2  ;;  %v1455_v27 = vpop.f32.mrf.mxu3  ;;  %v429_v13 = vld [vmem:[#allocation2 + $0x58] sm:$0xff] }
 0x1c2   : > { %v1456_v38 = vadd.f32 %v1455_v27, %v1406_v62 }
 0x1c3   : > { %1593 = vst [vmem:[#allocation2 + $0xd0] sm:$0xff] %v1545_v61 }
 0x1c4   : > { %v1505_v31 = vadd.f32 %v1504_v23, %v1456_v38 }
 0x1c6   : > { %v1359_v58 = vpop.f32.mrf.mxu1  ;;  %v1506_v15 = vpop.f32.mrf.mxu0  ;;  %v1546_v2 = vadd.f32 %v1505_v31, %v417_v29  ;;  %v434_v29 = vld [vmem:[#allocation2 + $0x120] sm:$0xff] }
 0x1c7   : > { %v1360_v30 = vadd.f32 %v1359_v58, %v3140_v22 }
 0x1c8   : > { %1594 = vst [vmem:[#allocation2 + $0x10] sm:$0xff] %v1546_v2 }
 0x1c9   : > { %v1548_v1 = vadd.f32 %v1360_v30, %v419_v28  ;;  %v1408_v53 = vpop.f32.mrf.mxu2  ;;  %v1457_v6 = vpop.f32.mrf.mxu3 }
 0x1ca   : > { %v1458_v41 = vadd.f32 %v1457_v6, %v1408_v53 }
 0x1cb   : > { %1596 = vst [vmem:[#allocation2 + $0x160] sm:$0xff] %v1548_v1 }
 0x1cc   : > { %v1507_v25 = vadd.f32 %v1506_v15, %v1458_v41  ;;  %v432_v15 = vld [vmem:[#allocation2 + $0x130] sm:$0xff] }
 0x1ce   : > { %v1362_v42 = vpop.f32.mrf.mxu1  ;;  %v1509_v9 = vpop.f32.mrf.mxu0  ;;  %v1549_v50 = vadd.f32 %v1507_v25, %v420_v59 }
 0x1cf   : > { %v1363_v60 = vadd.f32 %v1362_v42, %v3146_v39  ;;  %v437_v42 = vld [vmem:[#allocation2 + $0xb8] sm:$0xff] }
 0x1d0   : > { %1597 = vst [vmem:[#allocation2 + $0x128] sm:$0xff] %v1549_v50 }
 0x1d1   : > { %v1551_v26 = vadd.f32 %v1363_v60, %v422_v57  ;;  %v1411_v22 = vpop.f32.mrf.mxu2  ;;  %v1460_v8 = vpop.f32.mrf.mxu3  ;;  %v435_v60 = vld [vmem:[#allocation2 + $0xe0] sm:$0xff] }
 0x1d2   : > { %v1461_v56 = vadd.f32 %v1460_v8, %v1411_v22 }
 0x1d3   : > { %1599 = vst [vmem:[#allocation2 + $0x178] sm:$0xff] %v1551_v26 }
 0x1d4   : > { %v1510_v49 = vadd.f32 %v1509_v9, %v1461_v56 }
 0x1d6   : > { %v1364_v43 = vpop.f32.mrf.mxu1  ;;  %v1511_v36 = vpop.f32.mrf.mxu0  ;;  %v1552_v55 = vadd.f32 %v1510_v49, %v423_v33  ;;  %v438_v33 = vld [vmem:[#allocation2 + $0x168] sm:$0xff] }
 0x1d7   : > { %v1365_v34 = vadd.f32 %v1364_v43, %v3148_v3 }
 0x1d8   : > { %1600 = vst [vmem:[#allocation2 + $0x108] sm:$0xff] %v1552_v55 }
 0x1d9   : > { %v1554_v48 = vadd.f32 %v1365_v34, %v425_v18  ;;  %v1413_v39 = vpop.f32.mrf.mxu2  ;;  %v1462_v5 = vpop.f32.mrf.mxu3  ;;  %v440_v18 = vld [vmem:[#allocation2 + $0xf8] sm:$0xff] }
 0x1da   : > { %v1463_v7 = vadd.f32 %v1462_v5, %v1413_v39 }
 0x1db   : > { %1602 = vst [vmem:[#allocation2 + $0x90] sm:$0xff] %v1554_v48 }
 0x1dc   : > { %v1512_v46 = vadd.f32 %v1511_v36, %v1463_v7  ;;  %v443_v7 = vld [vmem:[#allocation2 + $0xa0] sm:$0xff] }
 0x1de   : > { %v1367_v19 = vpop.f32.mrf.mxu1  ;;  %v1514_v45 = vpop.f32.mrf.mxu0  ;;  %v1555_v35 = vadd.f32 %v1512_v46, %v426_v17 }
 0x1df   : > { %v1368_v20 = vadd.f32 %v1367_v19, %v3155_v11  ;;  %v441_v19 = vld [vmem:[#allocation2 + $0x20] sm:$0xff] }
 0x1e0   : > { %1603 = vst [vmem:[#allocation2 + $0x118] sm:$0xff] %v1555_v35 }
 0x1e1   : > { %v1557_v16 = vadd.f32 %v1368_v20, %v428_v10  ;;  %v1416_v3 = vpop.f32.mrf.mxu2  ;;  %v1465_v51 = vpop.f32.mrf.mxu3 }
 0x1e2   : > { %v1466_v52 = vadd.f32 %v1465_v51, %v1416_v3  ;;  %v446_v51 = vld [vmem:[#allocation2 + $0x140] sm:$0xff] }
 0x1e3   : > { %1605 = vst [vmem:[#allocation2 + $0x100] sm:$0xff] %v1557_v16 }
 0x1e4   : > { %v1515_v62 = vadd.f32 %v1514_v45, %v1466_v52 }
 0x1e6   : > { %v1369_v47 = vpop.f32.mrf.mxu1  ;;  %v1516_v61 = vpop.f32.mrf.mxu0  ;;  %v1558_v38 = vadd.f32 %v1515_v62, %v429_v13 }
 0x1e7   : > { %v1370_v23 = vadd.f32 %v1369_v47, %v3158_v24 }
 0x1e8   : > { %1606 = vst [vmem:[#allocation2 + $0x58] sm:$0xff] %v1558_v38 }
 0x1e9   : > { %v1560_v27 = vadd.f32 %v1370_v23, %v431_v54  ;;  %v1418_v11 = vpop.f32.mrf.mxu2  ;;  %v1467_v28 = vpop.f32.mrf.mxu3  ;;  %v444_v54 = vld [vmem:[#allocation2 + $0x170] sm:$0xff] }
 0x1ea   : > { %v1468_v58 = vadd.f32 %v1467_v28, %v1418_v11  ;;  %v449_v11 = vld [vmem:[#allocation2 + $0x28] sm:$0xff] }
 0x1eb   : > { %1608 = vst [vmem:[#allocation2 + $0x80] sm:$0xff] %v1560_v27 }
 0x1ec   : > { %v1517_v2 = vadd.f32 %v1516_v61, %v1468_v58  ;;  %v447_v58 = vld [vmem:[#allocation2 + $0x60] sm:$0xff] }
 0x1ee   : > { %v1372_v30 = vpop.f32.mrf.mxu1  ;;  %v1519_v1 = vpop.f32.mrf.mxu0  ;;  %v1561_v6 = vadd.f32 %v1517_v2, %v432_v15 }
 0x1ef   : > { %v1373_v31 = vadd.f32 %v1372_v30, %v3165_v37 }
 0x1f0   : > { %1609 = vst [vmem:[#allocation2 + $0x130] sm:$0xff] %v1561_v6  ;;  %v452_v6 = vld [vmem:[#allocation2 + $0x18] sm:$0xff] }
 0x1f1   : > { %v1563_v53 = vadd.f32 %v1373_v31, %v434_v29  ;;  %v1421_v24 = vpop.f32.mrf.mxu2  ;;  %v1470_v41 = vpop.f32.mrf.mxu3 }
 0x1f2   : > { %v1471_v57 = vadd.f32 %v1470_v41, %v1421_v24  ;;  %v450_v41 = vld [vmem:[#allocation2 + $0x38] sm:$0xff] }
 0x1f3   : > { %1611 = vst [vmem:[#allocation2 + $0x120] sm:$0xff] %v1563_v53 }
 0x1f4   : > { %v1520_v26 = vadd.f32 %v1519_v1, %v1471_v57 }
 0x1f6   : > { %v1374_v59 = vpop.f32.mrf.mxu1  ;;  %v1521_v25 = vpop.f32.mrf.mxu0  ;;  %v1564_v22 = vadd.f32 %v1520_v26, %v435_v60 }
 0x1f7   : > { %v1375_v9 = vadd.f32 %v1374_v59, %v3168_v0 }
 0x1f8   : > { %1612 = vst [vmem:[#allocation2 + $0xe0] sm:$0xff] %v1564_v22 }
 0x1f9   : > { %v1566_v50 = vadd.f32 %v1375_v9, %v437_v42  ;;  %v1423_v37 = vpop.f32.mrf.mxu2  ;;  %v1472_v8 = vpop.f32.mrf.mxu3 }
 0x1fa   : > { %v1473_v56 = vadd.f32 %v1472_v8, %v1423_v37  ;;  %v453_v37 = vld [vmem:[#allocation2 + $0x98] sm:$0xff] }
 0x1fb   : > { %1614 = vst [vmem:[#allocation2 + $0xb8] sm:$0xff] %v1566_v50  ;;  %v455_v50 = vld [vmem:[#allocation2] sm:$0xff] }
 0x1fc   : > { %v1522_v49 = vadd.f32 %v1521_v25, %v1473_v56 }
 0x1fe   : > { %v1377_v43 = vpop.f32.mrf.mxu1  ;;  %v1524_v36 = vpop.f32.mrf.mxu0  ;;  %v1567_v55 = vadd.f32 %v1522_v49, %v438_v33  ;;  %v458_v49 = vld [vmem:[#allocation2 + $0x68] sm:$0xff] }
 0x1ff   : > { %v1378_v34 = vadd.f32 %v1377_v43, %v3175_v4 }
 0x200   : > { %1615 = vst [vmem:[#allocation2 + $0x168] sm:$0xff] %v1567_v55  ;;  %v456_v55 = vld [vmem:[#allocation2 + $0x78] sm:$0xff] }
 0x201   : > { %v1569_v48 = vadd.f32 %v1378_v34, %v440_v18  ;;  %v1426_v0 = vpop.f32.mrf.mxu2  ;;  %v1475_v39 = vpop.f32.mrf.mxu3 }
 0x202   : > { %v1476_v5 = vadd.f32 %v1475_v39, %v1426_v0 }
 0x203   : > { %1617 = vst [vmem:[#allocation2 + $0xf8] sm:$0xff] %v1569_v48 }
 0x204   : > { %v1525_v45 = vadd.f32 %v1524_v36, %v1476_v5 }
 0x206   : > { %v1379_v10 = vpop.f32.mrf.mxu1  ;;  %v1526_v20 = vpop.f32.mrf.mxu0  ;;  %v1570_v16 = vadd.f32 %v1525_v45, %v441_v19 }
 0x207   : > { %v1380_v17 = vadd.f32 %v1379_v10, %v3178_v21 }
 0x208   : > { %1618 = vst [vmem:[#allocation2 + $0x20] sm:$0xff] %v1570_v16 }
 0x209   : > { %v1572_v46 = vadd.f32 %v1380_v17, %v443_v7  ;;  %v1428_v4 = vpop.f32.mrf.mxu2  ;;  %v1477_v35 = vpop.f32.mrf.mxu3 }
 0x20a   : > { %v1478_v3 = vadd.f32 %v1477_v35, %v1428_v4 }
 0x20b   : > { %1620 = vst [vmem:[#allocation2 + $0xa0] sm:$0xff] %v1572_v46  ;;  %v459_v46 = vld [vmem:[#allocation2 + $0x70] sm:$0xff] }
 0x20c   : > { %v1527_v23 = vadd.f32 %v1526_v20, %v1478_v3  ;;  %v461_v20 = vld [vmem:[#allocation2 + $0x158] sm:$0xff] }
 0x20e   : > { %v1382_v52 = vpop.f32.mrf.mxu1  ;;  %v1529_v13 = vpop.f32.mrf.mxu0  ;;  %v1573_v62 = vadd.f32 %v1527_v23, %v444_v54 }
 0x20f   : > { %v1383_v47 = vadd.f32 %v1382_v52, %v3185_v32 }
 0x210   : > { %1621 = vst [vmem:[#allocation2 + $0x170] sm:$0xff] %v1573_v62 }
 0x211   : > { %v1575_v61 = vadd.f32 %v1383_v47, %v446_v51  ;;  %v1431_v21 = vpop.f32.mrf.mxu2  ;;  %v1480_v27 = vpop.f32.mrf.mxu3  ;;  %v462_v47 = vld [vmem:[#allocation2 + $0x150] sm:$0xff] }
 0x212   : > { %v1481_v38 = vadd.f32 %v1480_v27, %v1431_v21 }
 0x213   : > { %1623 = vst [vmem:[#allocation2 + $0x140] sm:$0xff] %v1575_v61 }
 0x214   : > { %v1530_v15 = vadd.f32 %v1529_v13, %v1481_v38 }
 0x216   : > { %v1384_v28 = vpop.f32.mrf.mxu1  ;;  %v1531_v30 = vpop.f32.mrf.mxu0  ;;  %v1576_v1 = vadd.f32 %v1530_v15, %v447_v58 }
 0x217   : > { %v1385_v29 = vadd.f32 %v1384_v28, %v3188_v40 }
 0x218   : > { %1624 = vst [vmem:[#allocation2 + $0x60] sm:$0xff] %v1576_v1 }
 0x219   : > { %v1578_v31 = vadd.f32 %v1385_v29, %v449_v11  ;;  %v1433_v32 = vpop.f32.mrf.mxu2  ;;  %v1482_v2 = vpop.f32.mrf.mxu3 }
 0x21a   : > { %v1483_v53 = vadd.f32 %v1482_v2, %v1433_v32 }
 0x21b   : > { %1626 = vst [vmem:[#allocation2 + $0x28] sm:$0xff] %v1578_v31 }
 0x21c   : > { %v1532_v42 = vadd.f32 %v1531_v30, %v1483_v53 }
 0x21e   : > { %v1387_v24 = vpop.f32.mrf.mxu1  ;;  %v1534_v60 = vpop.f32.mrf.mxu0  ;;  %v1579_v9 = vadd.f32 %v1532_v42, %v450_v41 }
 0x21f   : > { %v1388_v57 = vadd.f32 %v1387_v24, %v3195_v63 }
 0x220   : > { %1627 = vst [vmem:[#allocation2 + $0x38] sm:$0xff] %v1579_v9 }
 0x221   : > { %v1581_v59 = vadd.f32 %v1388_v57, %v452_v6  ;;  %v1436_v40 = vpop.f32.mrf.mxu2  ;;  %v1485_v25 = vpop.f32.mrf.mxu3 }
 0x222   : > { %v1486_v26 = vadd.f32 %v1485_v25, %v1436_v40 }
 0x223   : > { %1629 = vst [vmem:[#allocation2 + $0x18] sm:$0xff] %v1581_v59 }
 0x224   : > { %v1535_v56 = vadd.f32 %v1534_v60, %v1486_v26 }
 0x226   : > { %v1389_v22 = vpop.f32.mrf.mxu1  ;;  %v1582_v43 = vadd.f32 %v1535_v56, %v453_v37  ;;  %v1536_v33 = vpop.f32.mrf.mxu0 }
 0x227   : > { %v1390_v8 = vadd.f32 %v1389_v22, %v3198_v44 }
 0x228   : > { %1630 = vst [vmem:[#allocation2 + $0x98] sm:$0xff] %v1582_v43 }
 0x229   : > { %v1584_v18 = vadd.f32 %v1390_v8, %v455_v50  ;;  %v1438_v63 = vpop.f32.mrf.mxu2  ;;  %v1487_v34 = vpop.f32.mrf.mxu3 }
 0x22a   : > { %v1488_v36 = vadd.f32 %v1487_v34, %v1438_v63 }
 0x22b   : > { %1632 = vst [vmem:[#allocation2] sm:$0xff] %v1584_v18 }
 0x22c   : > { %v1537_v39 = vadd.f32 %v1536_v33, %v1488_v36 }
 0x22e   : > { %v1392_v48 = vpop.f32.mrf.mxu1  ;;  %v1585_v7 = vadd.f32 %v1537_v39, %v456_v55  ;;  %v1539_v10 = vpop.f32.mrf.mxu0 }
 0x22f   : > { %v1393_v0 = vadd.f32 %v1392_v48, %v3205_v14 }
 0x230   : > { %1633 = vst [vmem:[#allocation2 + $0x78] sm:$0xff] %v1585_v7 }
 0x231   : > { %v1587_v5 = vadd.f32 %v1393_v0, %v458_v49  ;;  %v1441_v44 = vpop.f32.mrf.mxu2  ;;  %v1490_v19 = vpop.f32.mrf.mxu3 }
 0x232   : > { %v1491_v17 = vadd.f32 %v1490_v19, %v1441_v44 }
 0x233   : > { %1635 = vst [vmem:[#allocation2 + $0x68] sm:$0xff] %v1587_v5 }
 0x234   : > { %v1540_v4 = vadd.f32 %v1539_v10, %v1491_v17 }
 0x236   : > { %v1394_v45 = vpop.f32.mrf.mxu1  ;;  %v1588_v3 = vadd.f32 %v1540_v4, %v459_v46  ;;  %v1541_v54 = vpop.f32.mrf.mxu0 }
 0x237   : > { %v1395_v16 = vadd.f32 %v1394_v45, %v3208_v12 }
 0x238   : > { %1636 = vst [vmem:[#allocation2 + $0x70] sm:$0xff] %v1588_v3 }
 0x239   : > { %v1590_v35 = vadd.f32 %v1395_v16, %v461_v20  ;;  %v1443_v14 = vpop.f32.mrf.mxu2  ;;  %v1492_v51 = vpop.f32.mrf.mxu3 }
 0x23a   : > { %v1493_v52 = vadd.f32 %v1492_v51, %v1443_v14 }
 0x23b   : > { %1638 = vst [vmem:[#allocation2 + $0x158] sm:$0xff] %v1590_v35 }
 0x23c   : > { %v1542_v13 = vadd.f32 %v1541_v54, %v1493_v52  ;;  %1643 = sbr.rel (%p2422_p13) target bundleno = 618 (0x26a), region = 66 }
 0x23e   : > { %v1591_v23 = vadd.f32 %v1542_v13, %v462_v47 }
 0x240   : > { %1639 = vst [vmem:[#allocation2 + $0x150] sm:$0xff] %v1591_v23 }
 0x241   : > { %v1644_v61 = vld [vmem:[#allocation2 + $0xb0] sm:$0xff]  ;;  %v1692_v12 = vld [vmem:[%s3339_s2] sm:$0x7]  ;;  %v1647_v28 = vld [vmem:[#allocation2 + $0x48] sm:$0xff] }
 0x242   : > { %v1645_v62 = vld [vmem:[#allocation2 + $0xd0] sm:$0xff]  ;;  %v3230_v21 = vperm.slane %v1692_v12, 0  ;;  %v3232_v27 = vperm.slane %v1692_v12, 1  ;;  %v3234_v11 = vperm.slane %v1692_v12, 2  ;;  %v1648_v58 = vld [vmem:[#allocation2 + $0x160] sm:$0xff]  ;;  %v1649_v29 = vld [vmem:[#allocation2 + $0x128] sm:$0xff] }
 0x243   : > { %v1646_v38 = vld [vmem:[#allocation2 + $0x10] sm:$0xff]  ;;  %v1650_v30 = vld [vmem:[#allocation2 + $0x40] sm:$0xff]  ;;  %v1651_v15 = vld [vmem:[#allocation2 + $0x178] sm:$0xff] }
 0x244   : > { %v1700_v31 = vadd.f32 %v3230_v21, %v1644_v61  ;;  %v1701_v1 = vadd.f32 %v3232_v27, %v1645_v62  ;;  %v1702_v32 = vadd.f32 %v3234_v11, %v1646_v38  ;;  %v1703_v2 = vadd.f32 %v3230_v21, %v1647_v28  ;;  %v1652_v57 = vld [vmem:[#allocation2 + $0x108] sm:$0xff]  ;;  %v1653_v42 = vld [vmem:[#allocation2 + $0x110] sm:$0xff]  ;;  %v1655_v8 = vld [vmem:[#allocation2 + $0x118] sm:$0xff] }
 0x245   : > { %v1704_v53 = vadd.f32 %v3232_v27, %v1648_v58  ;;  %v1705_v6 = vadd.f32 %v3234_v11, %v1649_v29  ;;  %v1706_v24 = vadd.f32 %v3230_v21, %v1650_v30  ;;  %v1707_v41 = vadd.f32 %v3232_v27, %v1651_v15  ;;  %v1654_v25 = vld [vmem:[#allocation2 + $0x90] sm:$0xff]  ;;  %v1656_v56 = vld [vmem:[#allocation2 + $0x148] sm:$0xff]  ;;  %v1657_v34 = vld [vmem:[#allocation2 + $0x100] sm:$0xff] }
 0x246   : > { %v1748_v59 = vmax.f32 %v1700_v31, 0.0  ;;  %v1749_v60 = vmax.f32 %v1701_v1, 0.0  ;;  %v1750_v9 = vmax.f32 %v1702_v32, 0.0  ;;  %v1751_v40 = vmax.f32 %v1703_v2, 0.0  ;;  %v1658_v36 = vld [vmem:[#allocation2 + $0x58] sm:$0xff]  ;;  %v1660_v5 = vld [vmem:[#allocation2 + $0x80] sm:$0xff] }
 0x247   : > { %v1752_v26 = vmax.f32 %v1704_v53, 0.0  ;;  %v1753_v50 = vmax.f32 %v1705_v6, 0.0  ;;  %v1754_v22 = vmax.f32 %v1706_v24, 0.0  ;;  %v1755_v37 = vmax.f32 %v1707_v41, 0.0  ;;  %v1659_v49 = vld [vmem:[#allocation2 + $0xd8] sm:$0xff]  ;;  %v1661_v16 = vld [vmem:[#allocation2 + $0x130] sm:$0xff] }
 0x248   : > { %v1796_v18 = vpack.c.bf16 %v1749_v60, %v1748_v59  ;;  %v1797_v43 = vpack.c.bf16 %v1750_v9, %v1750_v9  ;;  %v1708_v33 = vadd.f32 %v3234_v11, %v1652_v57  ;;  %v1709_v63 = vadd.f32 %v3230_v21, %v1653_v42  ;;  %v1662_v4 = vld [vmem:[#allocation2 + $0x138] sm:$0xff]  ;;  %v1663_v52 = vld [vmem:[#allocation2 + $0x120] sm:$0xff]  ;;  %v1665_v62 = vld [vmem:[#allocation2 + $0xa8] sm:$0xff] }
 0x249   : > { %v1798_v48 = vpack.c.bf16 %v1752_v26, %v1751_v40  ;;  %v1799_v55 = vpack.c.bf16 %v1753_v50, %v1753_v50  ;;  %v1800_v0 = vpack.c.bf16 %v1755_v37, %v1754_v22  ;;  %v1710_v39 = vadd.f32 %v3232_v27, %v1654_v25  ;;  %v1664_v54 = vld [vmem:[#allocation2 + $0xe0] sm:$0xff]  ;;  %v1666_v29 = vld [vmem:[#allocation2 + $0xb8] sm:$0xff]  ;;  %v1667_v30 = vld [vmem:[#allocation2 + $0x168] sm:$0xff] }
 0x24a   : > { %1828 = vst [vmem:[%s2825_s30] sm:$0xff] %v1796_v18  ;;  %v1756_v7 = vmax.f32 %v1708_v33, 0.0  ;;  %v1757_v44 = vmax.f32 %v1709_v63, 0.0  ;;  %v1711_v10 = vadd.f32 %v3234_v11, %v1655_v8  ;;  %v1712_v19 = vadd.f32 %v3230_v21, %v1656_v56  ;;  %v1668_v2 = vld [vmem:[#allocation2 + $0xe8] sm:$0xff]  ;;  %v1669_v53 = vld [vmem:[#allocation2 + $0xf8] sm:$0xff]  ;;  %v1670_v40 = vld [vmem:[#allocation2 + $0x20] sm:$0xff] }
 0x24b   : > { %1829 = vst [vmem:[%s2825_s30 + $0x8] sm:$0xf] %v1797_v43  ;;  %v1758_v17 = vmax.f32 %v1710_v39, 0.0  ;;  %v1713_v20 = vadd.f32 %v3232_v27, %v1657_v34  ;;  %v1714_v45 = vadd.f32 %v3234_v11, %v1658_v36  ;;  %v1715_v46 = vadd.f32 %v3230_v21, %v1659_v49  ;;  %v1671_v25 = vld [vmem:[#allocation2 + $0x88] sm:$0xff]  ;;  %v1672_v8 = vld [vmem:[#allocation2 + $0xa0] sm:$0xff]  ;;  %v1673_v56 = vld [vmem:[#allocation2 + $0x170] sm:$0xff] }
 0x24c   : > { %1830 = vst [vmem:[%s2825_s30 + $0xc] sm:$0xff] %v1798_v48  ;;  %v1801_v35 = vpack.c.bf16 %v1756_v7, %v1756_v7  ;;  %v1759_v3 = vmax.f32 %v1711_v10, 0.0  ;;  %v1760_v14 = vmax.f32 %v1712_v19, 0.0  ;;  %v1716_v51 = vadd.f32 %v3232_v27, %v1660_v5  ;;  %v1674_v34 = vld [vmem:[#allocation2 + $0xf0] sm:$0xff]  ;;  %v1676_v39 = vld [vmem:[#allocation2 + $0x60] sm:$0xff]  ;;  %v1677_v19 = vld [vmem:[#allocation2 + $0xc8] sm:$0xff] }
 0x24d   : > { %1831 = vst [vmem:[%s2825_s30 + $0x14] sm:$0xf] %v1799_v55  ;;  %v1802_v47 = vpack.c.bf16 %v1758_v17, %v1757_v44  ;;  %v1761_v13 = vmax.f32 %v1713_v20, 0.0  ;;  %v1762_v23 = vmax.f32 %v1714_v45, 0.0  ;;  %v1763_v61 = vmax.f32 %v1715_v46, 0.0  ;;  %v1678_v17 = vld [vmem:[#allocation2 + $0x28] sm:$0xff] }
 0x24e   : > { %1832 = vst [vmem:[%s2825_s30 + $0x18] sm:$0xff] %v1800_v0  ;;  %v1803_v12 = vpack.c.bf16 %v1759_v3, %v1759_v3  ;;  %v1764_v38 = vmax.f32 %v1716_v51, 0.0  ;;  %v1717_v28 = vadd.f32 %v3234_v11, %v1661_v16  ;;  %v1718_v58 = vadd.f32 %v3230_v21, %v1662_v4  ;;  %v1675_v0 = vld [vmem:[#allocation2 + $0x140] sm:$0xff]  ;;  %v1679_v51 = vld [vmem:[#allocation2 + $0x38] sm:$0xff] }
 0x24f   : > { %1833 = vst [vmem:[%s2825_s30 + $0x20] sm:$0xf] %v1801_v35  ;;  %v1804_v15 = vpack.c.bf16 %v1761_v13, %v1760_v14  ;;  %v1805_v31 = vpack.c.bf16 %v1762_v23, %v1762_v23  ;;  %v1719_v1 = vadd.f32 %v3232_v27, %v1663_v52  ;;  %v1720_v32 = vadd.f32 %v3234_v11, %v1664_v54  ;;  %v1680_v52 = vld [vmem:[#allocation2 + $0xc0] sm:$0xff] }
 0x250   : > { %1834 = vst [vmem:[%s2825_s30 + $0x24] sm:$0xff] %v1802_v47  ;;  %v1806_v6 = vpack.c.bf16 %v1764_v38, %v1763_v61  ;;  %v1765_v24 = vmax.f32 %v1717_v28, 0.0  ;;  %v1766_v41 = vmax.f32 %v1718_v58, 0.0  ;;  %v1721_v57 = vadd.f32 %v3230_v21, %v1665_v62  ;;  %v1681_v61 = vld [vmem:[#allocation2 + $0x18] sm:$0xff] }
 0x251   : > { %1835 = vst [vmem:[%s2825_s30 + $0x2c] sm:$0xf] %v1803_v12  ;;  %v1767_v42 = vmax.f32 %v1719_v1, 0.0  ;;  %v1768_v59 = vmax.f32 %v1720_v32, 0.0  ;;  %v1722_v60 = vadd.f32 %v3232_v27, %v1666_v29  ;;  %v1723_v9 = vadd.f32 %v3234_v11, %v1667_v30  ;;  %v1682_v62 = vld [vmem:[#allocation2 + $0x98] sm:$0xff]  ;;  %v1683_v29 = vld [vmem:[#allocation2 + $0x8] sm:$0xff] }
 0x252   : > { %1836 = vst [vmem:[%s2825_s30 + $0x30] sm:$0xff] %v1804_v15  ;;  %v1807_v26 = vpack.c.bf16 %v1765_v24, %v1765_v24  ;;  %v1769_v50 = vmax.f32 %v1721_v57, 0.0  ;;  %v1724_v22 = vadd.f32 %v3230_v21, %v1668_v2  ;;  %v1725_v37 = vadd.f32 %v3232_v27, %v1669_v53  ;;  %v1684_v32 = vld [vmem:[#allocation2] sm:$0xff]  ;;  %v1685_v2 = vld [vmem:[#allocation2 + $0x78] sm:$0xff]  ;;  %v1686_v57 = vld [vmem:[#allocation2 + $0x50] sm:$0xff] }
 0x253   : > { %1837 = vst [vmem:[%s2825_s30 + $0x38] sm:$0xf] %v1805_v31  ;;  %v1808_v18 = vpack.c.bf16 %v1767_v42, %v1766_v41  ;;  %v1809_v43 = vpack.c.bf16 %v1768_v59, %v1768_v59  ;;  %v1770_v33 = vmax.f32 %v1722_v60, 0.0  ;;  %v1771_v63 = vmax.f32 %v1723_v9, 0.0  ;;  %v1687_v42 = vld [vmem:[#allocation2 + $0x68] sm:$0xff] }
 0x254   : > { %1838 = vst [vmem:[%s2825_s30 + $0x3c] sm:$0xff] %v1806_v6  ;;  %v1772_v36 = vmax.f32 %v1724_v22, 0.0  ;;  %v1773_v49 = vmax.f32 %v1725_v37, 0.0  ;;  %v1726_v48 = vadd.f32 %v3234_v11, %v1670_v40  ;;  %v1727_v55 = vadd.f32 %v3230_v21, %v1671_v25  ;;  %v1688_v37 = vld [vmem:[#allocation2 + $0x70] sm:$0xff] }
 0x255   : > { %1839 = vst [vmem:[%s2825_s30 + $0x44] sm:$0xf] %v1807_v26  ;;  %v1810_v5 = vpack.c.bf16 %v1770_v33, %v1769_v50  ;;  %v1811_v7 = vpack.c.bf16 %v1771_v63, %v1771_v63  ;;  %v1728_v44 = vadd.f32 %v3232_v27, %v1672_v8  ;;  %v1729_v10 = vadd.f32 %v3234_v11, %v1673_v56  ;;  %v1689_v8 = vld [vmem:[#allocation2 + $0x30] sm:$0xff]  ;;  %v1690_v63 = vld [vmem:[#allocation2 + $0x158] sm:$0xff] }
 0x256   : > { %1840 = vst [vmem:[%s2825_s30 + $0x48] sm:$0xff] %v1808_v18  ;;  %v1812_v20 = vpack.c.bf16 %v1773_v49, %v1772_v36  ;;  %v1774_v45 = vmax.f32 %v1726_v48, 0.0  ;;  %v1775_v46 = vmax.f32 %v1727_v55, 0.0  ;;  %v1730_v16 = vadd.f32 %v3230_v21, %v1674_v34  ;;  %v1691_v34 = vld [vmem:[#allocation2 + $0x150] sm:$0xff] }
 0x257   : > { %1841 = vst [vmem:[%s2825_s30 + $0x50] sm:$0xf] %v1809_v43  ;;  %v1776_v4 = vmax.f32 %v1728_v44, 0.0  ;;  %v1777_v35 = vmax.f32 %v1729_v10, 0.0  ;;  %v1731_v3 = vadd.f32 %v3232_v27, %v1675_v0  ;;  %v1732_v14 = vadd.f32 %v3234_v11, %v1676_v39 }
 0x258   : > { %1842 = vst [vmem:[%s2825_s30 + $0x54] sm:$0xff] %v1810_v5  ;;  %v1813_v54 = vpack.c.bf16 %v1774_v45, %v1774_v45  ;;  %v1778_v47 = vmax.f32 %v1730_v16, 0.0  ;;  %v1733_v13 = vadd.f32 %v3230_v21, %v1677_v19  ;;  %v1734_v23 = vadd.f32 %v3232_v27, %v1678_v17 }
 0x259   : > { %1843 = vst [vmem:[%s2825_s30 + $0x5c] sm:$0xf] %v1811_v7  ;;  %v1814_v12 = vpack.c.bf16 %v1776_v4, %v1775_v46  ;;  %v1815_v38 = vpack.c.bf16 %v1777_v35, %v1777_v35  ;;  %v1779_v28 = vmax.f32 %v1731_v3, 0.0  ;;  %v1780_v58 = vmax.f32 %v1732_v14, 0.0 }
 0x25a   : > { %1844 = vst [vmem:[%s2825_s30 + $0x60] sm:$0xff] %v1812_v20  ;;  %v1781_v30 = vmax.f32 %v1733_v13, 0.0  ;;  %v1782_v15 = vmax.f32 %v1734_v23, 0.0  ;;  %v1735_v31 = vadd.f32 %v3234_v11, %v1679_v51  ;;  %v1736_v1 = vadd.f32 %v3230_v21, %v1680_v52 }
 0x25b   : > { %1845 = vst [vmem:[%s2825_s30 + $0x68] sm:$0xf] %v1813_v54  ;;  %v1816_v53 = vpack.c.bf16 %v1779_v28, %v1778_v47  ;;  %v1817_v6 = vpack.c.bf16 %v1780_v58, %v1780_v58  ;;  %v1737_v24 = vadd.f32 %v3232_v27, %v1681_v61  ;;  %v1738_v41 = vadd.f32 %v3234_v11, %v1682_v62 }
 0x25c   : > { %1846 = vst [vmem:[%s2825_s30 + $0x6c] sm:$0xff] %v1814_v12  ;;  %v1818_v59 = vpack.c.bf16 %v1782_v15, %v1781_v30  ;;  %v1783_v60 = vmax.f32 %v1735_v31, 0.0  ;;  %v1784_v9 = vmax.f32 %v1736_v1, 0.0  ;;  %v1739_v40 = vadd.f32 %v3230_v21, %v1683_v29 }
 0x25d   : > { %1847 = vst [vmem:[%s2825_s30 + $0x74] sm:$0xf] %v1815_v38  ;;  %v1785_v25 = vmax.f32 %v1737_v24, 0.0  ;;  %v1786_v26 = vmax.f32 %v1738_v41, 0.0  ;;  %v1740_v50 = vadd.f32 %v3232_v27, %v1684_v32  ;;  %v1741_v22 = vadd.f32 %v3234_v11, %v1685_v2 }
 0x25e   : > { %1848 = vst [vmem:[%s2825_s30 + $0x78] sm:$0xff] %v1816_v53  ;;  %v1819_v56 = vpack.c.bf16 %v1783_v60, %v1783_v60  ;;  %v1787_v18 = vmax.f32 %v1739_v40, 0.0  ;;  %v1742_v43 = vadd.f32 %v3230_v21, %v1686_v57  ;;  %v1743_v33 = vadd.f32 %v3232_v27, %v1687_v42 }
 0x25f   : > { %1849 = vst [vmem:[%s2825_s30 + $0x80] sm:$0xf] %v1817_v6  ;;  %v1820_v36 = vpack.c.bf16 %v1785_v25, %v1784_v9  ;;  %v1821_v49 = vpack.c.bf16 %v1786_v26, %v1786_v26  ;;  %v1788_v48 = vmax.f32 %v1740_v50, 0.0  ;;  %v1789_v55 = vmax.f32 %v1741_v22, 0.0 }
 0x260   : > { %1850 = vst [vmem:[%s2825_s30 + $0x84] sm:$0xff] %v1818_v59  ;;  %v1790_v0 = vmax.f32 %v1742_v43, 0.0  ;;  %v1791_v39 = vmax.f32 %v1743_v33, 0.0  ;;  %v1744_v5 = vadd.f32 %v3234_v11, %v1688_v37  ;;  %v1745_v7 = vadd.f32 %v3230_v21, %v1689_v8 }
 0x261   : > { %1851 = vst [vmem:[%s2825_s30 + $0x8c] sm:$0xf] %v1819_v56  ;;  %v1822_v44 = vpack.c.bf16 %v1788_v48, %v1787_v18  ;;  %v1823_v10 = vpack.c.bf16 %v1789_v55, %v1789_v55  ;;  %v1746_v19 = vadd.f32 %v3232_v27, %v1690_v63  ;;  %v1747_v17 = vadd.f32 %v3234_v11, %v1691_v34 }
 0x262   : > { %1852 = vst [vmem:[%s2825_s30 + $0x90] sm:$0xff] %v1820_v36  ;;  %v1824_v20 = vpack.c.bf16 %v1791_v39, %v1790_v0  ;;  %v1792_v45 = vmax.f32 %v1744_v5, 0.0  ;;  %v1793_v46 = vmax.f32 %v1745_v7, 0.0 }
 0x263   : > { %1853 = vst [vmem:[%s2825_s30 + $0x98] sm:$0xf] %v1821_v49  ;;  %v1794_v16 = vmax.f32 %v1746_v19, 0.0  ;;  %v1795_v4 = vmax.f32 %v1747_v17, 0.0 }
 0x264   : > { %1854 = vst [vmem:[%s2825_s30 + $0x9c] sm:$0xff] %v1822_v44  ;;  %v1825_v21 = vpack.c.bf16 %v1792_v45, %v1792_v45 }
 0x265   : > { %1855 = vst [vmem:[%s2825_s30 + $0xa4] sm:$0xf] %v1823_v10  ;;  %v1826_v35 = vpack.c.bf16 %v1794_v16, %v1793_v46  ;;  %v1827_v3 = vpack.c.bf16 %v1795_v4, %v1795_v4 }
 0x266   : > { %1856 = vst [vmem:[%s2825_s30 + $0xa8] sm:$0xff] %v1824_v20 }
 0x267   : > { %1857 = vst [vmem:[%s2825_s30 + $0xb0] sm:$0xf] %v1825_v21 }
 0x268   : > { %1858 = vst [vmem:[%s2825_s30 + $0xb4] sm:$0xff] %v1826_v35 }
 0x269   : > { %1859 = vst [vmem:[%s2825_s30 + $0xbc] sm:$0xf] %v1827_v3 }
 0x26a PF: > { %s13_s18 = sadd.s32 1, %s2661_s18   ;;  %s3341_s12 = smov %s2641_s13 }
 0x26b   : > { %p10_p0 = scmp.ge.s32.totalorder %s13_s18, 32   ;;  %s3342_s13 = smov %s2735_s25 }
 0x26c   : > { %s3343_s14 = smov %s2653_s16  ;;  %s3344_s15 = smov %s2657_s17 }
 0x26d   : > { %s3345_s16 = smov %s3348_s19  ;;  %s3346_s17 = smov %s3352_s20 }
 0x26e   :  { %12 = sbr.rel (!%p10_p0) target bundleno = 4 (0x4), region = 113 }

// kernel: _lambda_.11
= control target key start
LH: loop header
LB: loop body
LE: loop exit
PB: predicated region body
PF: predicated region fallthrough
CT: control target
= control target key end

     0   :  { %s2429_s0 = inlined_call_operand.vmem [shape: bf16[128,2688], index: 0, kind: input, shape index: {}]   ;;  %s2430_s1 = inlined_call_operand.vmem [shape: bf16[2688,384], index: 1, kind: input, shape index: {}]   ;;  %s2431_s2 = inlined_call_operand.vmem [shape: f32[1,384], index: 2, kind: input, shape index: {}]   ;;  %s2432_s3 = inlined_call_operand.vmem [shape: f32[128,384], index: 3, kind: output, shape index: {}]  }
   0x1   :  { %2434 = sst [smem:[#allocation7_spill]] %s2429_s0 }
   0x2   :  { %2435 = sst [smem:[#allocation8_spill]] %s2430_s1 }
   0x3   :  { %s1926_s12 = smov 0   ;;  %s1928_s13 = smov 0  }
   0x4   :  { %s1930_s14 = smov 0   ;;  %s1932_s15 = smov 0  }
   0x5   :  { %s1934_s16 = smov 0   ;;  %s1936_s17 = smov 0  }
   0x6   :  { %s1938_s18 = smov 0   ;;  %s1940_s19 = smov 0  }
   0x7   :  { %s1942_s20 = smov 0   ;;  %s1944_s21 = smov 0  }
   0x8   :  { %s1946_s22 = smov 0  }
   0x9 LB: > { %s1410_s23 = sadd.s32 4294967295, %s1903_s22   ;;  %s25_s24 = sadd.s32 1, %s1895_s20  ;;  %s1903_s22 = sphi %s1946_s22, %s13_s22   ;;  %s1899_s21 = sphi %s1944_s21, %s2452_s21   ;;  %s1895_s20 = sphi %s1942_s20, %s2451_s20   ;;  %s1891_s19 = sphi %s1940_s19, %s2450_s19   ;;  %s1887_s18 = sphi %s1938_s18, %s2449_s18   ;;  %s1883_s17 = sphi %s1936_s17, %s2448_s17   ;;  %s1879_s16 = sphi %s1934_s16, %s2447_s16   ;;  %s1875_s15 = sphi %s1932_s15, %s2446_s15   ;;  %s1871_s14 = sphi %s1930_s14, %s2445_s14   ;;  %s1867_s13 = sphi %s1928_s13, %s2444_s13   ;;  %s1863_s12 = sphi %s1926_s12, %s2443_s12  }
   0xa   : > { %p26_p0 = scmp.ge.s32.totalorder %s25_s24, 7  ;;  %s28_s25 = sadd.s32 1, %s1899_s21 }
   0xb   : > { %s41_s26 = sadd.s32 1, %s1883_s17  ;;  %p48_p1 = scmp.ne.s32.totalorder %s1883_s17, %s1879_s16 }
   0xc   : > { %s2454_s24 = smov (%p26_p0, %s25_s24), 0  ;;  %s2456_s25 = smov (!%p26_p0, %s28_s25), %s1899_s21 }
   0xd   : > { %s37_s27 = ssub.s32 %s1895_s20, %s2454_s24  ;;  %p49_p2 = scmp.eq.s32.totalorder %s1903_s22, 0 }
   0xe   : > { %p30_p3 = scmp.ge.s32.totalorder %s2456_s25, 3  ;;  %p39_p4 = scmp.eq.s32.totalorder %s37_s27, 0 }
   0xf   : > { %p1993_p5 = por %p49_p2, %p48_p1  ;;  %s69_s29 = sadd.s32 1, %s1875_s15 }
  0x10   : > { %s2458_s25 = smov (%p30_p3, %s2456_s25), 0  ;;  %p76_p6 = scmp.ne.s32.totalorder %s1875_s15, %s1871_s14 }
  0x11   : > { %2437 = sst [smem:[#allocation6_spill]] %s2458_s25  ;;  %s65_s4 = ssub.s32 %s1899_s21, %s2458_s25 }
  0x12   : > { %s2001_s30 = scalar_select %p39_p4, %s1883_s17, %s41_s26  }
  0x13   : > { %s66_s5 = sor.u32 %s65_s4, %s37_s27  ;;  %p121_p7 = scmp.eq.s32.totalorder %s65_s4, 0 }
  0x14   : > { %p67_p8 = scmp.eq.s32.totalorder %s66_s5, 0  ;;  %p2007_p9 = por %p76_p6, %p49_p2 }
  0x15   : > { %s123_s7 = sadd.s32 1, %s1867_s13  ;;  %p133_p10 = scmp.ne.s32.totalorder %s1867_s13, %s1863_s12 }
  0x16   : > { %s2015_s8 = scalar_select %p67_p8, %s1875_s15, %s69_s29  }
  0x17   : > { %s2018_s9 = scalar_select %p121_p7, %s1867_s13, %s123_s7  }
  0x18   : > { %p134_p11 = scmp.eq.s32.totalorder %s1410_s23, 20  ;;  %p1413_p13 = scmp.ge.s32.totalorder %s1903_s22, 21 }
  0x1a   : > { %p2020_p12 = por %p134_p11, %p133_p10  ;;  %156 = sbr.rel (%p1413_p13) target bundleno = 129 (0x81), region = 16 }
  0x1f   : > { %159 = sbr.rel (!%p1993_p5) target bundleno = 72 (0x48), region = 20  ;;  %s161_s11 = sand.u32 (%p1993_p5), 1, %s1883_s17  }
  0x20   : > { %s1648_s26 = smul.u32 (%p1993_p5), 12, %s1895_s20  ;;  %s2440_s0 = sld [smem:[#allocation7_spill]] (%p1993_p5) }
  0x21   : > { %s1721_s27 = smul.u32 (%p1993_p5), 192, %s161_s11 }
  0x23   : > { %s2037_s23 = scalar_lea.vmem (%p1993_p5), [#allocation3], %s1721_s27 }
  0x26   : > { %s2032_s5 = scalar_lea.vmem %s2440_s0, %s1648_s26 }
  0x27   : > { %v184_v0 = vld [vmem:[%s2032_s5] sm:$0xff]  ;;  %v186_v1 = vld [vmem:[%s2032_s5 + $0x54] sm:$0xff]  ;;  %v188_v2 = vld [vmem:[%s2032_s5 + $0xa8] sm:$0xff] }
  0x28   : > { %185 = vst [vmem:[%s2037_s23] sm:$0xff] %v184_v0  ;;  %v190_v3 = vld [vmem:[%s2032_s5 + $0xfc] sm:$0xff]  ;;  %v192_v4 = vld [vmem:[%s2032_s5 + $0x150] sm:$0xff]  ;;  %v194_v5 = vld [vmem:[%s2032_s5 + $0x1a4] sm:$0xff] }
  0x29   : > { %187 = vst [vmem:[%s2037_s23 + $0xc] sm:$0xff] %v186_v1  ;;  %v196_v6 = vld [vmem:[%s2032_s5 + $0x1f8] sm:$0xff]  ;;  %v198_v7 = vld [vmem:[%s2032_s5 + $0x24c] sm:$0xff]  ;;  %v200_v8 = vld [vmem:[%s2032_s5 + $0x2a0] sm:$0xff] }
  0x2a   : > { %189 = vst [vmem:[%s2037_s23 + $0x18] sm:$0xff] %v188_v2  ;;  %v202_v9 = vld [vmem:[%s2032_s5 + $0x2f4] sm:$0xff]  ;;  %v204_v10 = vld [vmem:[%s2032_s5 + $0x348] sm:$0xff]  ;;  %v206_v11 = vld [vmem:[%s2032_s5 + $0x39c] sm:$0xff] }
  0x2b   : > { %191 = vst [vmem:[%s2037_s23 + $0x24] sm:$0xff] %v190_v3  ;;  %v208_v12 = vld [vmem:[%s2032_s5 + $0x3f0] sm:$0xff]  ;;  %v210_v13 = vld [vmem:[%s2032_s5 + $0x444] sm:$0xff]  ;;  %v212_v14 = vld [vmem:[%s2032_s5 + $0x498] sm:$0xff] }
  0x2c   : > { %193 = vst [vmem:[%s2037_s23 + $0x30] sm:$0xff] %v192_v4  ;;  %v214_v15 = vld [vmem:[%s2032_s5 + $0x4ec] sm:$0xff]  ;;  %v1415_v16 = vld [vmem:[%s2032_s5 + $0x8] sm:$0xf]  ;;  %v1417_v17 = vld [vmem:[%s2032_s5 + $0x5c] sm:$0xf] }
  0x2d   : > { %195 = vst [vmem:[%s2037_s23 + $0x3c] sm:$0xff] %v194_v5  ;;  %v1419_v18 = vld [vmem:[%s2032_s5 + $0xb0] sm:$0xf]  ;;  %v1421_v19 = vld [vmem:[%s2032_s5 + $0x104] sm:$0xf] }
  0x2e   : > { %197 = vst [vmem:[%s2037_s23 + $0x48] sm:$0xff] %v196_v6  ;;  %v1423_v20 = vld [vmem:[%s2032_s5 + $0x158] sm:$0xf]  ;;  %v1425_v21 = vld [vmem:[%s2032_s5 + $0x1ac] sm:$0xf] }
  0x2f   : > { %199 = vst [vmem:[%s2037_s23 + $0x54] sm:$0xff] %v198_v7  ;;  %v1427_v22 = vld [vmem:[%s2032_s5 + $0x200] sm:$0xf]  ;;  %v1429_v23 = vld [vmem:[%s2032_s5 + $0x254] sm:$0xf] }
  0x30   : > { %201 = vst [vmem:[%s2037_s23 + $0x60] sm:$0xff] %v200_v8  ;;  %v1431_v24 = vld [vmem:[%s2032_s5 + $0x2a8] sm:$0xf]  ;;  %v1433_v25 = vld [vmem:[%s2032_s5 + $0x2fc] sm:$0xf] }
  0x31   : > { %203 = vst [vmem:[%s2037_s23 + $0x6c] sm:$0xff] %v202_v9  ;;  %v1435_v26 = vld [vmem:[%s2032_s5 + $0x350] sm:$0xf]  ;;  %v1437_v27 = vld [vmem:[%s2032_s5 + $0x3a4] sm:$0xf] }
  0x32   : > { %205 = vst [vmem:[%s2037_s23 + $0x78] sm:$0xff] %v204_v10  ;;  %v1439_v28 = vld [vmem:[%s2032_s5 + $0x3f8] sm:$0xf]  ;;  %v1441_v29 = vld [vmem:[%s2032_s5 + $0x44c] sm:$0xf] }
  0x33   : > { %207 = vst [vmem:[%s2037_s23 + $0x84] sm:$0xff] %v206_v11  ;;  %v1443_v30 = vld [vmem:[%s2032_s5 + $0x4a0] sm:$0xf]  ;;  %v1445_v31 = vld [vmem:[%s2032_s5 + $0x4f4] sm:$0xf] }
  0x34   : > { %209 = vst [vmem:[%s2037_s23 + $0x90] sm:$0xff] %v208_v12 }
  0x35   : > { %211 = vst [vmem:[%s2037_s23 + $0x9c] sm:$0xff] %v210_v13 }
  0x36   : > { %213 = vst [vmem:[%s2037_s23 + $0xa8] sm:$0xff] %v212_v14 }
  0x37   : > { %215 = vst [vmem:[%s2037_s23 + $0xb4] sm:$0xff] %v214_v15 }
  0x38   : > { %1416 = vst [vmem:[%s2037_s23 + $0x8] sm:$0xf] %v1415_v16 }
  0x39   : > { %1418 = vst [vmem:[%s2037_s23 + $0x14] sm:$0xf] %v1417_v17 }
  0x3a   : > { %1420 = vst [vmem:[%s2037_s23 + $0x20] sm:$0xf] %v1419_v18 }
  0x3b   : > { %1422 = vst [vmem:[%s2037_s23 + $0x2c] sm:$0xf] %v1421_v19 }
  0x3c   : > { %1424 = vst [vmem:[%s2037_s23 + $0x38] sm:$0xf] %v1423_v20 }
  0x3d   : > { %1426 = vst [vmem:[%s2037_s23 + $0x44] sm:$0xf] %v1425_v21 }
  0x3e   : > { %1428 = vst [vmem:[%s2037_s23 + $0x50] sm:$0xf] %v1427_v22 }
  0x3f   : > { %1430 = vst [vmem:[%s2037_s23 + $0x5c] sm:$0xf] %v1429_v23 }
  0x40   : > { %1432 = vst [vmem:[%s2037_s23 + $0x68] sm:$0xf] %v1431_v24 }
  0x41   : > { %1434 = vst [vmem:[%s2037_s23 + $0x74] sm:$0xf] %v1433_v25 }
  0x42   : > { %1436 = vst [vmem:[%s2037_s23 + $0x80] sm:$0xf] %v1435_v26 }
  0x43   : > { %1438 = vst [vmem:[%s2037_s23 + $0x8c] sm:$0xf] %v1437_v27 }
  0x44   : > { %1440 = vst [vmem:[%s2037_s23 + $0x98] sm:$0xf] %v1439_v28 }
  0x45   : > { %1442 = vst [vmem:[%s2037_s23 + $0xa4] sm:$0xf] %v1441_v29 }
  0x46   : > { %1444 = vst [vmem:[%s2037_s23 + $0xb0] sm:$0xf] %v1443_v30 }
  0x47   : > { %1446 = vst [vmem:[%s2037_s23 + $0xbc] sm:$0xf] %v1445_v31 }
  0x48 PF: > { %261 = sbr.rel (!%p2007_p9) target bundleno = 129 (0x81), region = 46  ;;  %s263_s28 = sand.u32 (%p2007_p9), 1, %s1875_s15  }
  0x49   : > { %s1722_s7 = smul.u32 (%p2007_p9), 192, %s263_s28  ;;  %s2441_s1 = sld [smem:[#allocation8_spill]] (%p2007_p9) }
  0x4a   : > { %s1726_s11 = smul.u32 (%p2007_p9), 144, %s1895_s20 }
  0x4b   : > { %s2113_s6 = scalar_lea.vmem (%p2007_p9), [#allocation4], %s1722_s7 }
  0x4c   : > { %s268_s26 = sadd.s32 (%p2007_p9), %s1899_s21, %s1726_s11 }
  0x4d   : > { %s1447_s27 = sshll.u32 %s268_s26, 2 }
  0x4f   : > { %s2108_s0 = scalar_lea.vmem %s2441_s1, %s1447_s27 }
  0x50   : > { %v287_v32 = vld [vmem:[%s2108_s0] sm:$0xf]  ;;  %v289_v33 = vld [vmem:[%s2108_s0 + $0xc] sm:$0xf]  ;;  %v291_v34 = vld [vmem:[%s2108_s0 + $0x18] sm:$0xf] }
  0x51   : > { %288 = vst [vmem:[%s2113_s6] sm:$0xf] %v287_v32  ;;  %v293_v35 = vld [vmem:[%s2108_s0 + $0x24] sm:$0xf]  ;;  %v295_v36 = vld [vmem:[%s2108_s0 + $0x30] sm:$0xf] }
  0x52   : > { %290 = vst [vmem:[%s2113_s6 + $0x4] sm:$0xf] %v289_v33  ;;  %v297_v37 = vld [vmem:[%s2108_s0 + $0x3c] sm:$0xf]  ;;  %v299_v38 = vld [vmem:[%s2108_s0 + $0x48] sm:$0xf] }
  0x53   : > { %292 = vst [vmem:[%s2113_s6 + $0x8] sm:$0xf] %v291_v34  ;;  %v301_v39 = vld [vmem:[%s2108_s0 + $0x54] sm:$0xf]  ;;  %v303_v40 = vld [vmem:[%s2108_s0 + $0x60] sm:$0xf] }
  0x54   : > { %294 = vst [vmem:[%s2113_s6 + $0xc] sm:$0xf] %v293_v35  ;;  %v305_v41 = vld [vmem:[%s2108_s0 + $0x6c] sm:$0xf]  ;;  %v307_v42 = vld [vmem:[%s2108_s0 + $0x78] sm:$0xf] }
  0x55   : > { %296 = vst [vmem:[%s2113_s6 + $0x10] sm:$0xf] %v295_v36  ;;  %v309_v43 = vld [vmem:[%s2108_s0 + $0x84] sm:$0xf]  ;;  %v311_v44 = vld [vmem:[%s2108_s0 + $0x90] sm:$0xf] }
  0x56   : > { %298 = vst [vmem:[%s2113_s6 + $0x14] sm:$0xf] %v297_v37  ;;  %v313_v45 = vld [vmem:[%s2108_s0 + $0x9c] sm:$0xf]  ;;  %v315_v46 = vld [vmem:[%s2108_s0 + $0xa8] sm:$0xf] }
  0x57   : > { %300 = vst [vmem:[%s2113_s6 + $0x18] sm:$0xf] %v299_v38  ;;  %v317_v47 = vld [vmem:[%s2108_s0 + $0xb4] sm:$0xf]  ;;  %v319_v48 = vld [vmem:[%s2108_s0 + $0xc0] sm:$0xf] }
  0x58   : > { %302 = vst [vmem:[%s2113_s6 + $0x1c] sm:$0xf] %v301_v39  ;;  %v321_v49 = vld [vmem:[%s2108_s0 + $0xcc] sm:$0xf]  ;;  %v323_v50 = vld [vmem:[%s2108_s0 + $0xd8] sm:$0xf] }
  0x59   : > { %304 = vst [vmem:[%s2113_s6 + $0x20] sm:$0xf] %v303_v40  ;;  %v325_v51 = vld [vmem:[%s2108_s0 + $0xe4] sm:$0xf]  ;;  %v327_v52 = vld [vmem:[%s2108_s0 + $0xf0] sm:$0xf] }
  0x5a   : > { %306 = vst [vmem:[%s2113_s6 + $0x24] sm:$0xf] %v305_v41  ;;  %v329_v53 = vld [vmem:[%s2108_s0 + $0xfc] sm:$0xf]  ;;  %v331_v54 = vld [vmem:[%s2108_s0 + $0x108] sm:$0xf] }
  0x5b   : > { %308 = vst [vmem:[%s2113_s6 + $0x28] sm:$0xf] %v307_v42  ;;  %v333_v55 = vld [vmem:[%s2108_s0 + $0x114] sm:$0xf]  ;;  %v335_v56 = vld [vmem:[%s2108_s0 + $0x120] sm:$0xf] }
  0x5c   : > { %310 = vst [vmem:[%s2113_s6 + $0x2c] sm:$0xf] %v309_v43  ;;  %v337_v57 = vld [vmem:[%s2108_s0 + $0x12c] sm:$0xf]  ;;  %v339_v58 = vld [vmem:[%s2108_s0 + $0x138] sm:$0xf] }
  0x5d   : > { %312 = vst [vmem:[%s2113_s6 + $0x30] sm:$0xf] %v311_v44  ;;  %v341_v59 = vld [vmem:[%s2108_s0 + $0x144] sm:$0xf]  ;;  %v343_v60 = vld [vmem:[%s2108_s0 + $0x150] sm:$0xf] }
  0x5e   : > { %314 = vst [vmem:[%s2113_s6 + $0x34] sm:$0xf] %v313_v45  ;;  %v345_v61 = vld [vmem:[%s2108_s0 + $0x15c] sm:$0xf]  ;;  %v347_v62 = vld [vmem:[%s2108_s0 + $0x168] sm:$0xf] }
  0x5f   : > { %316 = vst [vmem:[%s2113_s6 + $0x38] sm:$0xf] %v315_v46  ;;  %v349_v63 = vld [vmem:[%s2108_s0 + $0x174] sm:$0xf]  ;;  %v351_v0 = vld [vmem:[%s2108_s0 + $0x180] sm:$0xf] }
  0x60   : > { %318 = vst [vmem:[%s2113_s6 + $0x3c] sm:$0xf] %v317_v47  ;;  %v353_v1 = vld [vmem:[%s2108_s0 + $0x18c] sm:$0xf]  ;;  %v355_v2 = vld [vmem:[%s2108_s0 + $0x198] sm:$0xf] }
  0x61   : > { %320 = vst [vmem:[%s2113_s6 + $0x40] sm:$0xf] %v319_v48  ;;  %v357_v3 = vld [vmem:[%s2108_s0 + $0x1a4] sm:$0xf]  ;;  %v359_v4 = vld [vmem:[%s2108_s0 + $0x1b0] sm:$0xf] }
  0x62   : > { %322 = vst [vmem:[%s2113_s6 + $0x44] sm:$0xf] %v321_v49  ;;  %v361_v5 = vld [vmem:[%s2108_s0 + $0x1bc] sm:$0xf]  ;;  %v363_v6 = vld [vmem:[%s2108_s0 + $0x1c8] sm:$0xf] }
  0x63   : > { %324 = vst [vmem:[%s2113_s6 + $0x48] sm:$0xf] %v323_v50  ;;  %v365_v7 = vld [vmem:[%s2108_s0 + $0x1d4] sm:$0xf]  ;;  %v367_v8 = vld [vmem:[%s2108_s0 + $0x1e0] sm:$0xf] }
  0x64   : > { %326 = vst [vmem:[%s2113_s6 + $0x4c] sm:$0xf] %v325_v51  ;;  %v369_v9 = vld [vmem:[%s2108_s0 + $0x1ec] sm:$0xf]  ;;  %v371_v10 = vld [vmem:[%s2108_s0 + $0x1f8] sm:$0xf] }
  0x65   : > { %328 = vst [vmem:[%s2113_s6 + $0x50] sm:$0xf] %v327_v52  ;;  %v373_v11 = vld [vmem:[%s2108_s0 + $0x204] sm:$0xf]  ;;  %v375_v12 = vld [vmem:[%s2108_s0 + $0x210] sm:$0xf] }
  0x66   : > { %330 = vst [vmem:[%s2113_s6 + $0x54] sm:$0xf] %v329_v53  ;;  %v377_v13 = vld [vmem:[%s2108_s0 + $0x21c] sm:$0xf]  ;;  %v379_v14 = vld [vmem:[%s2108_s0 + $0x228] sm:$0xf] }
  0x67   : > { %332 = vst [vmem:[%s2113_s6 + $0x58] sm:$0xf] %v331_v54  ;;  %v381_v15 = vld [vmem:[%s2108_s0 + $0x234] sm:$0xf] }
  0x68   : > { %334 = vst [vmem:[%s2113_s6 + $0x5c] sm:$0xf] %v333_v55 }
  0x69   : > { %336 = vst [vmem:[%s2113_s6 + $0x60] sm:$0xf] %v335_v56 }
  0x6a   : > { %338 = vst [vmem:[%s2113_s6 + $0x64] sm:$0xf] %v337_v57 }
  0x6b   : > { %340 = vst [vmem:[%s2113_s6 + $0x68] sm:$0xf] %v339_v58 }
  0x6c   : > { %342 = vst [vmem:[%s2113_s6 + $0x6c] sm:$0xf] %v341_v59 }
  0x6d   : > { %344 = vst [vmem:[%s2113_s6 + $0x70] sm:$0xf] %v343_v60 }
  0x6e   : > { %346 = vst [vmem:[%s2113_s6 + $0x74] sm:$0xf] %v345_v61 }
  0x6f   : > { %348 = vst [vmem:[%s2113_s6 + $0x78] sm:$0xf] %v347_v62 }
  0x70   : > { %350 = vst [vmem:[%s2113_s6 + $0x7c] sm:$0xf] %v349_v63 }
  0x71   : > { %352 = vst [vmem:[%s2113_s6 + $0x80] sm:$0xf] %v351_v0 }
  0x72   : > { %354 = vst [vmem:[%s2113_s6 + $0x84] sm:$0xf] %v353_v1 }
  0x73   : > { %356 = vst [vmem:[%s2113_s6 + $0x88] sm:$0xf] %v355_v2 }
  0x74   : > { %358 = vst [vmem:[%s2113_s6 + $0x8c] sm:$0xf] %v357_v3 }
  0x75   : > { %360 = vst [vmem:[%s2113_s6 + $0x90] sm:$0xf] %v359_v4 }
  0x76   : > { %362 = vst [vmem:[%s2113_s6 + $0x94] sm:$0xf] %v361_v5 }
  0x77   : > { %364 = vst [vmem:[%s2113_s6 + $0x98] sm:$0xf] %v363_v6 }
  0x78   : > { %366 = vst [vmem:[%s2113_s6 + $0x9c] sm:$0xf] %v365_v7 }
  0x79   : > { %368 = vst [vmem:[%s2113_s6 + $0xa0] sm:$0xf] %v367_v8 }
  0x7a   : > { %370 = vst [vmem:[%s2113_s6 + $0xa4] sm:$0xf] %v369_v9 }
  0x7b   : > { %372 = vst [vmem:[%s2113_s6 + $0xa8] sm:$0xf] %v371_v10 }
  0x7c   : > { %374 = vst [vmem:[%s2113_s6 + $0xac] sm:$0xf] %v373_v11 }
  0x7d   : > { %376 = vst [vmem:[%s2113_s6 + $0xb0] sm:$0xf] %v375_v12 }
  0x7e   : > { %378 = vst [vmem:[%s2113_s6 + $0xb4] sm:$0xf] %v377_v13 }
  0x7f   : > { %380 = vst [vmem:[%s2113_s6 + $0xb8] sm:$0xf] %v379_v14 }
  0x80   : > { %382 = vst [vmem:[%s2113_s6 + $0xbc] sm:$0xf] %v381_v15 }
  0x81 PF: > { %p1448_p0 = scmp.ge.s32.totalorder %s1903_s22, 1  ;;  %p507_p1 = scmp.lt.s32.totalorder %s1903_s22, 22 }
  0x83   : > { %p508_p2 = pnand %p1448_p0, %p507_p1 }
  0x84   : > { %s514_s5 = sand.u32 (!%p508_p2), 1, %s1879_s16   ;;  %s521_s23 = sand.u32 (!%p508_p2), 1, %s1871_s14  }
  0x85   : > { %511 = sbr.rel (%p508_p2) target bundleno = 459 (0x1cb), region = 91  ;;  %s547_s0 = sand.u32 (!%p508_p2), 1, %s1863_s12  }
  0x86   : > { %s1724_s28 = smul.u32 (!%p508_p2), 192, %s514_s5  ;;  %s1449_s11 = sshll.u32 (!%p508_p2), %s547_s0, 7 }
  0x87   : > { %s1725_s7 = smul.u32 (!%p508_p2), 192, %s521_s23  ;;  %p553_p3 = scmp.lt.s32.totalorder (!%p508_p2), %s1891_s19, 2 }
  0x88   : > { %s2221_s6 = scalar_lea.vmem (!%p508_p2), [#allocation3], %s1724_s28  ;;  %s2225_s25 = scalar_lea.vmem (!%p508_p2), [#allocation5], %s1449_s11 }
  0x89   : > { %s2223_s1 = scalar_lea.vmem (!%p508_p2), [#allocation4], %s1725_s7  ;;  %p1450_p4 = scmp.ne.s32.totalorder (!%p508_p2), %s1887_s18, 0 }
  0x8a   : > { %s2215_s26 = scalar_select %p553_p3, %s1891_s19, 2 }
  0x8b   : > { %560 = sbr.rel (%p1450_p4) target bundleno = 161 (0xa1), region = 103 }
  0x8c   : > { %s555_s4 = scalar_lea.vmem %s2431_s2, %s2215_s26 }
  0x90   : > { %v1905_v16 = vmov 0.0  }
  0x91   : > { %561 = vst [vmem:[#allocation2 + $0x30] sm:$0xff] %v1905_v16 }
  0x92   : > { %562 = vst [vmem:[#allocation2] sm:$0xff] %v1905_v16 }
  0x93   : > { %563 = vst [vmem:[#allocation2 + $0x58] sm:$0xff] %v1905_v16 }
  0x94   : > { %564 = vst [vmem:[#allocation2 + $0x18] sm:$0xff] %v1905_v16 }
  0x95   : > { %565 = vst [vmem:[#allocation2 + $0x50] sm:$0xff] %v1905_v16 }
  0x96   : > { %566 = vst [vmem:[#allocation2 + $0x68] sm:$0xff] %v1905_v16 }
  0x97   : > { %567 = vst [vmem:[#allocation2 + $0x8] sm:$0xff] %v1905_v16 }
  0x98   : > { %568 = vst [vmem:[#allocation2 + $0x48] sm:$0xff] %v1905_v16 }
  0x99   : > { %569 = vst [vmem:[#allocation2 + $0x40] sm:$0xff] %v1905_v16 }
  0x9a   : > { %570 = vst [vmem:[#allocation2 + $0x20] sm:$0xff] %v1905_v16 }
  0x9b   : > { %571 = vst [vmem:[#allocation2 + $0x10] sm:$0xff] %v1905_v16 }
  0x9c   : > { %572 = vst [vmem:[#allocation2 + $0x38] sm:$0xff] %v1905_v16 }
  0x9d   : > { %573 = vst [vmem:[#allocation2 + $0x60] sm:$0xff] %v1905_v16 }
  0x9e   : > { %574 = vst [vmem:[#allocation2 + $0x70] sm:$0xff] %v1905_v16 }
  0x9f   : > { %575 = vst [vmem:[#allocation2 + $0x78] sm:$0xff] %v1905_v16 }
  0xa0   : > { %576 = vst [vmem:[#allocation2 + $0x28] sm:$0xff] %v1905_v16 }
  0xa1 PF: > { %v1680_v17 = vld [vmem:[%s2223_s1 + $0x38] sm:$0xff]  ;;  %v1679_v20 = vld [vmem:[%s2223_s1 + $0x30] sm:$0xff]  ;;  %v1678_v23 = vld [vmem:[%s2223_s1 + $0x28] sm:$0xff]  ;;  %p1643_p5 = scmp.ne.s32.totalorder %s1887_s18, 6 }
  0xa2   : > { %v2230_v18 = vld [vmem:[%s2223_s1 + $0x78] sm:$0xff]  ;;  %945 = vmatpush.bf16.msra.mxu0 %v1680_v17  ;;  %1697 = vmatpush.bf16.msra.mxu3 %v1680_v17  ;;  %v2239_v21 = vld [vmem:[%s2223_s1 + $0x70] sm:$0xff]  ;;  %v1686_v24 = vld [vmem:[%s2223_s1 + $0x68] sm:$0xff] }
  0xa3   : > { %v2233_v19 = vld [vmem:[%s2223_s1 + $0xb8] sm:$0xff]  ;;  %994 = vmatpush.bf16.msra.mxu1 %v2230_v18  ;;  %v2242_v22 = vld [vmem:[%s2223_s1 + $0xb0] sm:$0xff]  ;;  %v2249_v25 = vld [vmem:[%s2223_s1 + $0xa8] sm:$0xff] }
  0xa4   : > { %1043 = vmatpush.bf16.msra.mxu2 %v2233_v19  ;;  %v1677_v26 = vld [vmem:[%s2223_s1 + $0x20] sm:$0xff]  ;;  %v1676_v29 = vld [vmem:[%s2223_s1 + $0x18] sm:$0xff]  ;;  %v1675_v32 = vld [vmem:[%s2223_s1 + $0x10] sm:$0xff] }
  0xa5   : > { %v1685_v27 = vld [vmem:[%s2223_s1 + $0x60] sm:$0xff]  ;;  %v1684_v30 = vld [vmem:[%s2223_s1 + $0x58] sm:$0xff]  ;;  %v1683_v33 = vld [vmem:[%s2223_s1 + $0x50] sm:$0xff] }
  0xa6   : > { %946 = vmatpush.bf16.msra.mxu0 %v1679_v20  ;;  %1698 = vmatpush.bf16.msra.mxu3 %v1679_v20  ;;  %v2255_v28 = vld [vmem:[%s2223_s1 + $0xa0] sm:$0xff]  ;;  %v2261_v31 = vld [vmem:[%s2223_s1 + $0x98] sm:$0xff]  ;;  %v2267_v34 = vld [vmem:[%s2223_s1 + $0x90] sm:$0xff] }
  0xa7   : > { %995 = vmatpush.bf16.msra.mxu1 %v2239_v21  ;;  %v1674_v35 = vld [vmem:[%s2223_s1 + $0x8] sm:$0xff]  ;;  %v1673_v38 = vld [vmem:[%s2223_s1] sm:$0xff]  ;;  %v1525_v43 = vld [vmem:[%s2221_s6 + $0x90] sm:$0xf] }
  0xa8   : > { %1044 = vmatpush.bf16.msra.mxu2 %v2242_v22  ;;  %v1682_v36 = vld [vmem:[%s2223_s1 + $0x48] sm:$0xff]  ;;  %v1681_v39 = vld [vmem:[%s2223_s1 + $0x40] sm:$0xff]  ;;  %v1668_v44 = vld [vmem:[%s2221_s6 + $0x98] sm:$0xf0] }
  0xa9   : > { %v2273_v37 = vld [vmem:[%s2223_s1 + $0x88] sm:$0xff]  ;;  %v2278_v40 = vld [vmem:[%s2223_s1 + $0x80] sm:$0xff]  ;;  %v1455_v46 = vld [vmem:[%s2221_s6 + $0xc] sm:$0xf0]  ;;  %v1526_v50 = vor.u32 %v1668_v44, %v1525_v43 }
  0xaa   : > { %947 = vmatpush.bf16.msra.mxu0 %v1678_v23  ;;  %1699 = vmatpush.bf16.msra.mxu3 %v1678_v23  ;;  %v1453_v41 = vld [vmem:[%s2221_s6] sm:$0xf]  ;;  %v1650_v42 = vld [vmem:[%s2221_s6 + $0x8] sm:$0xf0]  ;;  %v1649_v45 = vld [vmem:[%s2221_s6 + $0x4] sm:$0xf] }
  0xab   : > { %996 = vmatpush.bf16.msra.mxu1 %v1686_v24  ;;  %v1461_v47 = vld [vmem:[%s2221_s6 + $0x8] sm:$0xf]  ;;  %v1651_v48 = vld [vmem:[%s2221_s6 + $0x10] sm:$0xf0]  ;;  %v1454_v49 = vor.u32 %v1650_v42, %v1453_v41  ;;  %v1458_v51 = vor.u32 %v1649_v45, %v1455_v46  ;;  %v1465_v53 = vld [vmem:[%s2221_s6 + $0x18] sm:$0xf] }
  0xac   : > { %1045 = vmatpush.bf16.msra.mxu2 %v2249_v25  ;;  %v1462_v52 = vor.u32 %v1651_v48, %v1461_v47  ;;  %v1653_v54 = vld [vmem:[%s2221_s6 + $0x20] sm:$0xf0]  ;;  %v1537_v55 = vld [vmem:[%s2221_s6 + $0xa8] sm:$0xf]  ;;  %v1671_v56 = vld [vmem:[%s2221_s6 + $0xb0] sm:$0xf0] }
  0xad   : > { %v1652_v57 = vld [vmem:[%s2221_s6 + $0x1c] sm:$0xf]  ;;  %v1467_v58 = vld [vmem:[%s2221_s6 + $0x24] sm:$0xf0]  ;;  %v1473_v59 = vld [vmem:[%s2221_s6 + $0x20] sm:$0xf]  ;;  %v1466_v61 = vor.u32 %v1653_v54, %v1465_v53  ;;  %v1538_v62 = vor.u32 %v1671_v56, %v1537_v55 }
  0xae   : > { %948 = vmatpush.bf16.msra.mxu0 %v1677_v26  ;;  %1700 = vmatpush.bf16.msra.mxu3 %v1677_v26  ;;  %v1654_v60 = vld [vmem:[%s2221_s6 + $0x28] sm:$0xf0]  ;;  %v1470_v63 = vor.u32 %v1652_v57, %v1467_v58  ;;  %v1477_v1 = vld [vmem:[%s2221_s6 + $0x30] sm:$0xf]  ;;  %v1656_v2 = vld [vmem:[%s2221_s6 + $0x38] sm:$0xf0] }
  0xaf   : > { %997 = vmatpush.bf16.msra.mxu1 %v1685_v27  ;;  %v1474_v0 = vor.u32 %v1654_v60, %v1473_v59  ;;  %v1655_v3 = vld [vmem:[%s2221_s6 + $0x34] sm:$0xf]  ;;  %v1527_v5 = vld [vmem:[%s2221_s6 + $0x9c] sm:$0xf0]  ;;  %v1485_v7 = vld [vmem:[%s2221_s6 + $0x38] sm:$0xf]  ;;  %v1478_v9 = vor.u32 %v1656_v2, %v1477_v1 }
  0xb0   : > { %1046 = vmatpush.bf16.msra.mxu2 %v2255_v28  ;;  %v1667_v4 = vld [vmem:[%s2221_s6 + $0x94] sm:$0xf]  ;;  %v1479_v6 = vld [vmem:[%s2221_s6 + $0x3c] sm:$0xf0]  ;;  %v1657_v8 = vld [vmem:[%s2221_s6 + $0x40] sm:$0xf0] }
  0xb1   : > { %v1530_v10 = vor.u32 %v1667_v4, %v1527_v5  ;;  %v1482_v11 = vor.u32 %v1655_v3, %v1479_v6  ;;  %v1486_v12 = vor.u32 %v1657_v8, %v1485_v7  ;;  %v1489_v13 = vld [vmem:[%s2221_s6 + $0x48] sm:$0xf]  ;;  %v1659_v14 = vld [vmem:[%s2221_s6 + $0x50] sm:$0xf0]  ;;  %v1658_v15 = vld [vmem:[%s2221_s6 + $0x4c] sm:$0xf] }
  0xb2   : > { %949 = vmatpush.bf16.msra.mxu0 %v1676_v29  ;;  %1701 = vmatpush.bf16.msra.mxu3 %v1676_v29  ;;  %v1670_v16 = vld [vmem:[%s2221_s6 + $0xac] sm:$0xf]  ;;  %v1539_v17 = vld [vmem:[%s2221_s6 + $0xb4] sm:$0xf0]  ;;  %v1660_v20 = vld [vmem:[%s2221_s6 + $0x58] sm:$0xf0] }
  0xb3   : > { %998 = vmatpush.bf16.msra.mxu1 %v1684_v30  ;;  %v1542_v23 = vor.u32 %v1670_v16, %v1539_v17  ;;  %v1662_v26 = vld [vmem:[%s2221_s6 + $0x68] sm:$0xf0]  ;;  %v1669_v29 = vld [vmem:[%s2221_s6 + $0xa0] sm:$0xf0]  ;;  %v1545_v41 = vld [vmem:[%s2221_s6 + $0xb0] sm:$0xf] }
  0xb4   : > { %1047 = vmatpush.bf16.msra.mxu2 %v2261_v31  ;;  %v1515_v42 = vld [vmem:[%s2221_s6 + $0x84] sm:$0xf0]  ;;  %v1521_v43 = vld [vmem:[%s2221_s6 + $0x80] sm:$0xf]  ;;  %v1666_v44 = vld [vmem:[%s2221_s6 + $0x88] sm:$0xf0] }
  0xb5   : > { %v1522_v48 = vor.u32 %v1666_v44, %v1521_v43  ;;  %v577_v53 = vld [vmem:[#allocation2 + $0x30] sm:$0xff]  ;;  %v579_v5 = vld [vmem:[#allocation2 + $0x58] sm:$0xff] }
  0xb6   : > { %950 = vmatpush.bf16.msra.mxu0 %v1675_v32  ;;  %1702 = vmatpush.bf16.msra.mxu3 %v1675_v32  ;;  %v1663_v32 = vld [vmem:[%s2221_s6 + $0x70] sm:$0xf0] }
  0xb7   : > { %999 = vmatpush.bf16.msra.mxu1 %v1683_v33 }
  0xb8   : > { %1048 = vmatpush.bf16.msra.mxu2 %v2267_v34 }
  0xba   : > { %951 = vmatpush.bf16.msra.mxu0 %v1674_v35  ;;  %1703 = vmatpush.bf16.msra.mxu3 %v1674_v35 }
  0xbb   : > { %1000 = vmatpush.bf16.msra.mxu1 %v1682_v36 }
  0xbc   : > { %1049 = vmatpush.bf16.msra.mxu2 %v2273_v37 }
  0xbe   : > { %952 = vmatpush.bf16.msra.mxu0 %v1673_v38  ;;  %1704 = vmatpush.bf16.msra.mxu3 %v1673_v38  ;;  %v1665_v38 = vld [vmem:[%s2221_s6 + $0x80] sm:$0xf0] }
  0xbf   : > { %1001 = vmatpush.bf16.msra.mxu1 %v1681_v39 }
  0xc0   : > { %1050 = vmatpush.bf16.msra.mxu2 %v2278_v40 }
  0xc1   : > { %953 = vmatmul.bf16.vlgmr.msra.gmra.mxu0 %v1454_v49  ;;  %983 = vmatmul.bf16.vlgmr.msra.gmra.mxu3 %v1526_v50 }
  0xc2   : > { %1705 = vmatpush.bf16.msrb.mxu3 %v2230_v18  ;;  %1002 = vmatmul.bf16.vlgmr.msra.gmra.mxu1 %v1458_v51  ;;  %v1491_v18 = vld [vmem:[%s2221_s6 + $0x54] sm:$0xf0] }
  0xc3   : > { %1051 = vmatmul.bf16.vlgmr.msra.gmra.mxu2 %v1462_v52 }
  0xc6   : > { %1706 = vmatpush.bf16.msrb.mxu3 %v2239_v21  ;;  %v1490_v21 = vor.u32 %v1659_v14, %v1489_v13  ;;  %v580_v13 = vld [vmem:[#allocation2 + $0x18] sm:$0xff] }
  0xca   : > { %1707 = vmatpush.bf16.msrb.mxu3 %v1686_v24 }
  0xce   : > { %1708 = vmatpush.bf16.msrb.mxu3 %v1685_v27  ;;  %v1661_v27 = vld [vmem:[%s2221_s6 + $0x64] sm:$0xf] }
  0xd1   : > { %958 = vmatmul.bf16.gmra.mxu0 %v1466_v61  ;;  %988 = vmatmul.bf16.gmra.mxu3 %v1538_v62  ;;  %v578_v61 = vld [vmem:[#allocation2] sm:$0xff] }
  0xd2   : > { %1709 = vmatpush.bf16.msrb.mxu3 %v1684_v30  ;;  %1007 = vmatmul.bf16.gmra.mxu1 %v1470_v63  ;;  %v1503_v30 = vld [vmem:[%s2221_s6 + $0x6c] sm:$0xf0] }
  0xd3   : > { %1056 = vmatmul.bf16.gmra.mxu2 %v1474_v0  ;;  %v1506_v35 = vor.u32 %v1661_v27, %v1503_v30 }
  0xd6   : > { %1710 = vmatpush.bf16.msrb.mxu3 %v1683_v33 }
  0xda   : > { %1711 = vmatpush.bf16.msrb.mxu3 %v1682_v36 }
  0xde   : > { %1712 = vmatpush.bf16.msrb.mxu3 %v1681_v39  ;;  %v1664_v39 = vld [vmem:[%s2221_s6 + $0x7c] sm:$0xf] }
  0xdf   : > { %v1518_v47 = vor.u32 %v1664_v39, %v1515_v42 }
  0xe1   : > { %963 = vmatmul.bf16.gmra.mxu0 %v1478_v9  ;;  %1032 = vmatmul.bf16.vlgmr.msrb.gmra.mxu3 %v1530_v10 }
  0xe2   : > { %1713 = vmatpush.bf16.msra.mxu3 %v2233_v19  ;;  %1012 = vmatmul.bf16.gmra.mxu1 %v1482_v11  ;;  %v1497_v19 = vld [vmem:[%s2221_s6 + $0x50] sm:$0xf] }
  0xe3   : > { %1061 = vmatmul.bf16.gmra.mxu2 %v1486_v12  ;;  %v1498_v24 = vor.u32 %v1660_v20, %v1497_v19 }
  0xe6   : > { %1714 = vmatpush.bf16.msra.mxu3 %v2242_v22  ;;  %v1494_v22 = vor.u32 %v1658_v15, %v1491_v18 }
  0xea   : > { %1715 = vmatpush.bf16.msra.mxu3 %v2249_v25  ;;  %v1501_v25 = vld [vmem:[%s2221_s6 + $0x60] sm:$0xf] }
  0xeb   : > { %v1502_v33 = vor.u32 %v1662_v26, %v1501_v25 }
  0xee   : > { %1716 = vmatpush.bf16.msra.mxu3 %v2255_v28  ;;  %v1533_v28 = vld [vmem:[%s2221_s6 + $0x98] sm:$0xf] }
  0xf1   : > { %968 = vmatmul.bf16.gmra.mxu0 %v1490_v21  ;;  %1037 = vmatmul.bf16.gmra.mxu3 %v1542_v23  ;;  %v581_v21 = vld [vmem:[#allocation2 + $0x50] sm:$0xff] }
  0xf2   : > { %1717 = vmatpush.bf16.msra.mxu3 %v2261_v31  ;;  %1017 = vmatmul.bf16.gmra.mxu1 %v1494_v22  ;;  %v1509_v31 = vld [vmem:[%s2221_s6 + $0x68] sm:$0xf] }
  0xf3   : > { %1066 = vmatmul.bf16.gmra.mxu2 %v1498_v24  ;;  %v1510_v36 = vor.u32 %v1663_v32, %v1509_v31 }
  0xf6   : > { %1718 = vmatpush.bf16.msra.mxu3 %v2267_v34  ;;  %v1534_v34 = vor.u32 %v1669_v29, %v1533_v28  ;;  %v582_v29 = vld [vmem:[#allocation2 + $0x68] sm:$0xff] }
  0xfa   : > { %1719 = vmatpush.bf16.msra.mxu3 %v2273_v37  ;;  %v1513_v37 = vld [vmem:[%s2221_s6 + $0x78] sm:$0xf] }
  0xfb   : > { %v1514_v45 = vor.u32 %v1665_v38, %v1513_v37  ;;  %v583_v37 = vld [vmem:[#allocation2 + $0x8] sm:$0xff] }
  0xfe   : > { %1720 = vmatpush.bf16.msra.mxu3 %v2278_v40  ;;  %v1672_v40 = vld [vmem:[%s2221_s6 + $0xb8] sm:$0xf0] }
  0xff   : > { %v1546_v46 = vor.u32 %v1672_v40, %v1545_v41 }
 0x101   : > { %973 = vmatmul.bf16.gmra.mxu0 %v1502_v33  ;;  %1081 = vmatmul.bf16.vlgmr.msra.gmra.mxu3 %v1534_v34 }
 0x102   : > { %1022 = vmatmul.bf16.gmra.mxu1 %v1506_v35 }
 0x103   : > { %1071 = vmatmul.bf16.gmra.mxu2 %v1510_v36 }
 0x111   : > { %978 = vmatmul.bf16.gmra.mxu0 %v1514_v45  ;;  %1086 = vmatmul.bf16.gmra.mxu3 %v1546_v46  ;;  %v584_v45 = vld [vmem:[#allocation2 + $0x48] sm:$0xff] }
 0x112   : > { %1027 = vmatmul.bf16.gmra.mxu1 %v1518_v47 }
 0x113   : > { %1076 = vmatmul.bf16.gmra.mxu2 %v1522_v48 }
 0x13e   : > { %v954_v49 = vpop.f32.mrf.mxu0 }
 0x13f   : > { %v1003_v50 = vpop.f32.mrf.mxu1 }
 0x140   : > { %v1004_v51 = vadd.f32 %v1003_v50, %v954_v49 }
 0x144   : > { %v2340_v52 = vpop.f32.mrf.mxu3 }
 0x146   : > { %v1052_v54 = vpop.f32.mrf.mxu2  ;;  %v956_v56 = vpop.f32.mrf.mxu0 }
 0x147   : > { %v1053_v55 = vadd.f32 %v1052_v54, %v1004_v51  ;;  %v1005_v57 = vpop.f32.mrf.mxu1  ;;  %v589_v54 = vld [vmem:[#allocation2 + $0x60] sm:$0xff] }
 0x148   : > { %v1006_v59 = vadd.f32 %v1005_v57, %v956_v56  ;;  %v585_v56 = vld [vmem:[#allocation2 + $0x40] sm:$0xff] }
 0x149   : > { %v1092_v58 = vadd.f32 %v1053_v55, %v577_v53 }
 0x14b   : > { %1108 = vst [vmem:[#allocation2 + $0x30] sm:$0xff] %v1092_v58 }
 0x14c   : > { %v2342_v60 = vpop.f32.mrf.mxu3 }
 0x14e   : > { %v1054_v62 = vpop.f32.mrf.mxu2  ;;  %v959_v0 = vpop.f32.mrf.mxu0 }
 0x14f   : > { %v1055_v63 = vadd.f32 %v1054_v62, %v1006_v59  ;;  %v1008_v1 = vpop.f32.mrf.mxu1 }
 0x150   : > { %v1009_v3 = vadd.f32 %v1008_v1, %v959_v0 }
 0x151   : > { %v1093_v2 = vadd.f32 %v1055_v63, %v578_v61 }
 0x153   : > { %1109 = vst [vmem:[#allocation2] sm:$0xff] %v1093_v2 }
 0x154   : > { %v2344_v4 = vpop.f32.mrf.mxu3 }
 0x156   : > { %v1057_v6 = vpop.f32.mrf.mxu2  ;;  %v961_v8 = vpop.f32.mrf.mxu0 }
 0x157   : > { %v1058_v7 = vadd.f32 %v1057_v6, %v1009_v3  ;;  %v1010_v9 = vpop.f32.mrf.mxu1  ;;  %v590_v3 = vld [vmem:[#allocation2 + $0x70] sm:$0xff]  ;;  %v586_v6 = vld [vmem:[#allocation2 + $0x20] sm:$0xff] }
 0x158   : > { %v1011_v11 = vadd.f32 %v1010_v9, %v961_v8 }
 0x159   : > { %v1094_v10 = vadd.f32 %v1058_v7, %v579_v5 }
 0x15b   : > { %1110 = vst [vmem:[#allocation2 + $0x58] sm:$0xff] %v1094_v10 }
 0x15c   : > { %v2346_v12 = vpop.f32.mrf.mxu3 }
 0x15e   : > { %v1059_v14 = vpop.f32.mrf.mxu2  ;;  %v964_v16 = vpop.f32.mrf.mxu0 }
 0x15f   : > { %v1060_v15 = vadd.f32 %v1059_v14, %v1011_v11  ;;  %v1013_v17 = vpop.f32.mrf.mxu1 }
 0x160   : > { %v1014_v19 = vadd.f32 %v1013_v17, %v964_v16  ;;  %v591_v16 = vld [vmem:[#allocation2 + $0x78] sm:$0xff] }
 0x161   : > { %v1095_v18 = vadd.f32 %v1060_v15, %v580_v13 }
 0x163   : > { %1111 = vst [vmem:[#allocation2 + $0x18] sm:$0xff] %v1095_v18  ;;  %v587_v18 = vld [vmem:[#allocation2 + $0x10] sm:$0xff] }
 0x164   : > { %v1033_v20 = vpop.f32.mrf.mxu3 }
 0x165   : > { %v1034_v53 = vadd.f32 %v1033_v20, %v2340_v52 }
 0x166   : > { %v1062_v23 = vpop.f32.mrf.mxu2  ;;  %v966_v24 = vpop.f32.mrf.mxu0 }
 0x167   : > { %v1063_v22 = vadd.f32 %v1062_v23, %v1014_v19  ;;  %v1015_v25 = vpop.f32.mrf.mxu1 }
 0x168   : > { %v1016_v27 = vadd.f32 %v1015_v25, %v966_v24 }
 0x169   : > { %v1096_v26 = vadd.f32 %v1063_v22, %v581_v21 }
 0x16b   : > { %1112 = vst [vmem:[#allocation2 + $0x50] sm:$0xff] %v1096_v26 }
 0x16c   : > { %v1035_v28 = vpop.f32.mrf.mxu3 }
 0x16d   : > { %v1036_v1 = vadd.f32 %v1035_v28, %v2342_v60 }
 0x16e   : > { %v1064_v30 = vpop.f32.mrf.mxu2  ;;  %v969_v32 = vpop.f32.mrf.mxu0 }
 0x16f   : > { %v1065_v31 = vadd.f32 %v1064_v30, %v1016_v27  ;;  %v1018_v33 = vpop.f32.mrf.mxu1  ;;  %v592_v27 = vld [vmem:[#allocation2 + $0x28] sm:$0xff] }
 0x170   : > { %v1019_v35 = vadd.f32 %v1018_v33, %v969_v32 }
 0x171   : > { %v1097_v34 = vadd.f32 %v1065_v31, %v582_v29  ;;  %v588_v29 = vld [vmem:[#allocation2 + $0x38] sm:$0xff] }
 0x173   : > { %1113 = vst [vmem:[#allocation2 + $0x68] sm:$0xff] %v1097_v34 }
 0x174   : > { %v1038_v36 = vpop.f32.mrf.mxu3 }
 0x175   : > { %v1039_v15 = vadd.f32 %v1038_v36, %v2344_v4 }
 0x176   : > { %v1067_v38 = vpop.f32.mrf.mxu2  ;;  %v971_v41 = vpop.f32.mrf.mxu0 }
 0x177   : > { %v1068_v39 = vadd.f32 %v1067_v38, %v1019_v35  ;;  %v1020_v40 = vpop.f32.mrf.mxu1 }
 0x178   : > { %v1021_v43 = vadd.f32 %v1020_v40, %v971_v41 }
 0x179   : > { %v1098_v42 = vadd.f32 %v1068_v39, %v583_v37 }
 0x17b   : > { %1114 = vst [vmem:[#allocation2 + $0x8] sm:$0xff] %v1098_v42 }
 0x17c   : > { %v1040_v44 = vpop.f32.mrf.mxu3 }
 0x17d   : > { %v1041_v25 = vadd.f32 %v1040_v44, %v2346_v12 }
 0x17e   : > { %v1069_v46 = vpop.f32.mrf.mxu2  ;;  %v974_v48 = vpop.f32.mrf.mxu0 }
 0x17f   : > { %v1070_v47 = vadd.f32 %v1069_v46, %v1021_v43  ;;  %v1023_v49 = vpop.f32.mrf.mxu1 }
 0x180   : > { %v1024_v51 = vadd.f32 %v1023_v49, %v974_v48 }
 0x181   : > { %v1099_v50 = vadd.f32 %v1070_v47, %v584_v45 }
 0x183   : > { %1115 = vst [vmem:[#allocation2 + $0x48] sm:$0xff] %v1099_v50 }
 0x184   : > { %v1082_v55 = vpop.f32.mrf.mxu3 }
 0x185   : > { %v1083_v58 = vadd.f32 %v1082_v55, %v1034_v53 }
 0x186   : > { %v1072_v57 = vpop.f32.mrf.mxu2  ;;  %v976_v61 = vpop.f32.mrf.mxu0 }
 0x187   : > { %v1073_v59 = vadd.f32 %v1072_v57, %v1024_v51  ;;  %v1104_v62 = vadd.f32 %v1083_v58, %v589_v54  ;;  %v1025_v63 = vpop.f32.mrf.mxu1 }
 0x188   : > { %v1026_v2 = vadd.f32 %v1025_v63, %v976_v61 }
 0x189   : > { %v1100_v0 = vadd.f32 %v1073_v59, %v585_v56  ;;  %1120 = vst [vmem:[#allocation2 + $0x60] sm:$0xff] %v1104_v62 }
 0x18b   : > { %1116 = vst [vmem:[#allocation2 + $0x40] sm:$0xff] %v1100_v0 }
 0x18c   : > { %v1084_v5 = vpop.f32.mrf.mxu3 }
 0x18d   : > { %v1085_v52 = vadd.f32 %v1084_v5, %v1036_v1 }
 0x18e   : > { %v1074_v7 = vpop.f32.mrf.mxu2  ;;  %v979_v10 = vpop.f32.mrf.mxu0 }
 0x18f   : > { %v1075_v8 = vadd.f32 %v1074_v7, %v1026_v2  ;;  %v1105_v9 = vadd.f32 %v1085_v52, %v590_v3  ;;  %v1028_v11 = vpop.f32.mrf.mxu1 }
 0x190   : > { %v1029_v14 = vadd.f32 %v1028_v11, %v979_v10 }
 0x191   : > { %v1101_v13 = vadd.f32 %v1075_v8, %v586_v6  ;;  %1121 = vst [vmem:[#allocation2 + $0x70] sm:$0xff] %v1105_v9 }
 0x193   : > { %1117 = vst [vmem:[#allocation2 + $0x20] sm:$0xff] %v1101_v13 }
 0x194   : > { %v1087_v17 = vpop.f32.mrf.mxu3 }
 0x195   : > { %v1088_v19 = vadd.f32 %v1087_v17, %v1039_v15 }
 0x196   : > { %v1077_v60 = vpop.f32.mrf.mxu2  ;;  %v981_v22 = vpop.f32.mrf.mxu0 }
 0x197   : > { %v1078_v20 = vadd.f32 %v1077_v60, %v1029_v14  ;;  %v1106_v21 = vadd.f32 %v1088_v19, %v591_v16  ;;  %v1030_v24 = vpop.f32.mrf.mxu1 }
 0x198   : > { %v1031_v26 = vadd.f32 %v1030_v24, %v981_v22 }
 0x199   : > { %v1102_v23 = vadd.f32 %v1078_v20, %v587_v18  ;;  %1122 = vst [vmem:[#allocation2 + $0x78] sm:$0xff] %v1106_v21 }
 0x19b   : > { %1118 = vst [vmem:[#allocation2 + $0x10] sm:$0xff] %v1102_v23 }
 0x19c   : > { %v1089_v28 = vpop.f32.mrf.mxu3 }
 0x19d   : > { %v1090_v4 = vadd.f32 %v1089_v28, %v1041_v25 }
 0x19e   : > { %v1079_v30 = vpop.f32.mrf.mxu2 }
 0x19f   : > { %v1080_v31 = vadd.f32 %v1079_v30, %v1031_v26  ;;  %v1107_v32 = vadd.f32 %v1090_v4, %v592_v27  ;;  %1127 = sbr.rel (%p1643_p5) target bundleno = 441 (0x1b9), region = 107 }
 0x1a1   : > { %v1103_v33 = vadd.f32 %v1080_v31, %v588_v29  ;;  %1123 = vst [vmem:[#allocation2 + $0x28] sm:$0xff] %v1107_v32 }
 0x1a3   : > { %1119 = vst [vmem:[#allocation2 + $0x38] sm:$0xff] %v1103_v33 }
 0x1a4   : > { %v1128_v34 = vld [vmem:[#allocation2 + $0x30] sm:$0xff]  ;;  %v1816_v12 = vld [vmem:[%s555_s4] ss:$0 sm:$0xff]  ;;  %v1130_v36 = vld [vmem:[#allocation2 + $0x58] sm:$0xff] }
 0x1a5   : > { %v1129_v35 = vld [vmem:[#allocation2] sm:$0xff]  ;;  %v1131_v37 = vld [vmem:[#allocation2 + $0x18] sm:$0xff]  ;;  %v1148_v38 = vadd.f32 %v1816_v12, %v1128_v34  ;;  %v1150_v41 = vadd.f32 %v1816_v12, %v1130_v36  ;;  %v1132_v42 = vld [vmem:[#allocation2 + $0x50] sm:$0xff] }
 0x1a6   : > { %v1149_v39 = vadd.f32 %v1816_v12, %v1129_v35  ;;  %v1151_v40 = vadd.f32 %v1816_v12, %v1131_v37  ;;  %v1133_v43 = vld [vmem:[#allocation2 + $0x68] sm:$0xff]  ;;  %v1152_v45 = vadd.f32 %v1816_v12, %v1132_v42  ;;  %v1136_v48 = vld [vmem:[#allocation2 + $0x40] sm:$0xff]  ;;  %v1138_v57 = vld [vmem:[#allocation2 + $0x10] sm:$0xff] }
 0x1a7   : > { %v1134_v44 = vld [vmem:[#allocation2 + $0x8] sm:$0xff]  ;;  %v1153_v46 = vadd.f32 %v1816_v12, %v1133_v43  ;;  %v1164_v49 = vmax.f32 %v1148_v38, 0.0  ;;  %v1166_v51 = vmax.f32 %v1150_v41, 0.0  ;;  %v1137_v54 = vld [vmem:[#allocation2 + $0x20] sm:$0xff]  ;;  %v1156_v59 = vadd.f32 %v1816_v12, %v1136_v48  ;;  %v1141_v3 = vld [vmem:[#allocation2 + $0x70] sm:$0xff] }
 0x1a8   : > { %v1135_v47 = vld [vmem:[#allocation2 + $0x48] sm:$0xff]  ;;  %v1165_v50 = vmax.f32 %v1149_v39, 0.0  ;;  %v1154_v53 = vadd.f32 %v1816_v12, %v1134_v44  ;;  %v1167_v55 = vmax.f32 %v1151_v40, 0.0  ;;  %v1168_v58 = vmax.f32 %v1152_v45, 0.0  ;;  %v1140_v0 = vld [vmem:[#allocation2 + $0x60] sm:$0xff]  ;;  %v1142_v7 = vld [vmem:[#allocation2 + $0x78] sm:$0xff] }
 0x1a9   : > { %v1155_v56 = vadd.f32 %v1816_v12, %v1135_v47  ;;  %1180 = vst [vmem:[%s2225_s25] sm:$0xff] %v1164_v49  ;;  %v1169_v62 = vmax.f32 %v1153_v46, 0.0  ;;  %v1157_v63 = vadd.f32 %v1816_v12, %v1137_v54  ;;  %v1158_v2 = vadd.f32 %v1816_v12, %v1138_v57  ;;  %v1143_v9 = vld [vmem:[#allocation2 + $0x28] sm:$0xff] }
 0x1aa   : > { %v1139_v61 = vld [vmem:[#allocation2 + $0x38] sm:$0xff]  ;;  %1181 = vst [vmem:[%s2225_s25 + $0x8] sm:$0xff] %v1165_v50  ;;  %v1170_v1 = vmax.f32 %v1154_v53, 0.0  ;;  %v1172_v52 = vmax.f32 %v1156_v59, 0.0  ;;  %v1160_v8 = vadd.f32 %v1816_v12, %v1140_v0  ;;  %v1161_v11 = vadd.f32 %v1816_v12, %v1141_v3 }
 0x1ab   : > { %1182 = vst [vmem:[%s2225_s25 + $0x10] sm:$0xff] %v1166_v51  ;;  %v1171_v5 = vmax.f32 %v1155_v56, 0.0  ;;  %v1159_v6 = vadd.f32 %v1816_v12, %v1139_v61  ;;  %v1173_v10 = vmax.f32 %v1157_v63, 0.0  ;;  %v1174_v13 = vmax.f32 %v1158_v2, 0.0 }
 0x1ac   : > { %1183 = vst [vmem:[%s2225_s25 + $0x18] sm:$0xff] %v1167_v55  ;;  %v1162_v14 = vadd.f32 %v1816_v12, %v1142_v7  ;;  %v1163_v16 = vadd.f32 %v1816_v12, %v1143_v9  ;;  %v1176_v17 = vmax.f32 %v1160_v8, 0.0  ;;  %v1177_v18 = vmax.f32 %v1161_v11, 0.0 }
 0x1ad   : > { %1184 = vst [vmem:[%s2225_s25 + $0x20] sm:$0xff] %v1168_v58  ;;  %v1175_v15 = vmax.f32 %v1159_v6, 0.0 }
 0x1ae   : > { %1185 = vst [vmem:[%s2225_s25 + $0x28] sm:$0xff] %v1169_v62  ;;  %v1178_v60 = vmax.f32 %v1162_v14, 0.0  ;;  %v1179_v19 = vmax.f32 %v1163_v16, 0.0 }
 0x1af   : > { %1186 = vst [vmem:[%s2225_s25 + $0x30] sm:$0xff] %v1170_v1 }
 0x1b0   : > { %1187 = vst [vmem:[%s2225_s25 + $0x38] sm:$0xff] %v1171_v5 }
 0x1b1   : > { %1188 = vst [vmem:[%s2225_s25 + $0x40] sm:$0xff] %v1172_v52 }
 0x1b2   : > { %1189 = vst [vmem:[%s2225_s25 + $0x48] sm:$0xff] %v1173_v10 }
 0x1b3   : > { %1190 = vst [vmem:[%s2225_s25 + $0x50] sm:$0xff] %v1174_v13 }
 0x1b4   : > { %1191 = vst [vmem:[%s2225_s25 + $0x58] sm:$0xff] %v1175_v15 }
 0x1b5   : > { %1192 = vst [vmem:[%s2225_s25 + $0x60] sm:$0xff] %v1176_v17 }
 0x1b6   : > { %1193 = vst [vmem:[%s2225_s25 + $0x68] sm:$0xff] %v1177_v18 }
 0x1b7   : > { %1194 = vst [vmem:[%s2225_s25 + $0x70] sm:$0xff] %v1178_v60 }
 0x1b8   : > { %1195 = vst [vmem:[%s2225_s25 + $0x78] sm:$0xff] %v1179_v19 }
 0x1b9 PF: > { %1202 = sbr.rel (!%p2020_p12) target bundleno = 459 (0x1cb), region = 111  ;;  %s1645_s14 = sshll.u32 (%p2020_p12), %s1891_s19, 3  ;;  %v1266_v20 = vld [vmem:[%s2225_s25] sm:$0xff] (%p2020_p12)  ;;  %v1268_v21 = vld [vmem:[%s2225_s25 + $0x8] sm:$0xff] (%p2020_p12)  ;;  %v1270_v23 = vld [vmem:[%s2225_s25 + $0x10] sm:$0xff] (%p2020_p12) }
 0x1ba   : > { %s1207_s5 = scalar_lea.vmem (%p2020_p12), %s2432_s3, %s1645_s14  ;;  %v1272_v22 = vld [vmem:[%s2225_s25 + $0x18] sm:$0xff] (%p2020_p12)  ;;  %v1274_v24 = vld [vmem:[%s2225_s25 + $0x20] sm:$0xff] (%p2020_p12)  ;;  %v1276_v25 = vld [vmem:[%s2225_s25 + $0x28] sm:$0xff] (%p2020_p12) }
 0x1bb   : > { %1267 = vst [vmem:[%s1207_s5] sm:$0xff] (%p2020_p12), %v1266_v20  ;;  %v1278_v26 = vld [vmem:[%s2225_s25 + $0x30] sm:$0xff] (%p2020_p12)  ;;  %v1280_v27 = vld [vmem:[%s2225_s25 + $0x38] sm:$0xff] (%p2020_p12)  ;;  %v1282_v28 = vld [vmem:[%s2225_s25 + $0x40] sm:$0xff] (%p2020_p12) }
 0x1bc   : > { %1269 = vst [vmem:[%s1207_s5 + $0x18] sm:$0xff] (%p2020_p12), %v1268_v21  ;;  %v1284_v29 = vld [vmem:[%s2225_s25 + $0x48] sm:$0xff] (%p2020_p12)  ;;  %v1286_v30 = vld [vmem:[%s2225_s25 + $0x50] sm:$0xff] (%p2020_p12)  ;;  %v1288_v4 = vld [vmem:[%s2225_s25 + $0x58] sm:$0xff] (%p2020_p12) }
 0x1bd   : > { %1271 = vst [vmem:[%s1207_s5 + $0x30] sm:$0xff] (%p2020_p12), %v1270_v23  ;;  %v1290_v31 = vld [vmem:[%s2225_s25 + $0x60] sm:$0xff] (%p2020_p12)  ;;  %v1292_v32 = vld [vmem:[%s2225_s25 + $0x68] sm:$0xff] (%p2020_p12) }
 0x1be   : > { %1273 = vst [vmem:[%s1207_s5 + $0x48] sm:$0xff] %v1272_v22  ;;  %v1294_v33 = vld [vmem:[%s2225_s25 + $0x70] sm:$0xff] }
 0x1bf   : > { %1275 = vst [vmem:[%s1207_s5 + $0x60] sm:$0xff] %v1274_v24  ;;  %v1296_v34 = vld [vmem:[%s2225_s25 + $0x78] sm:$0xff] }
 0x1c0   : > { %1277 = vst [vmem:[%s1207_s5 + $0x78] sm:$0xff] %v1276_v25 }
 0x1c1   : > { %1279 = vst [vmem:[%s1207_s5 + $0x90] sm:$0xff] %v1278_v26 }
 0x1c2   : > { %1281 = vst [vmem:[%s1207_s5 + $0xa8] sm:$0xff] %v1280_v27 }
 0x1c3   : > { %1283 = vst [vmem:[%s1207_s5 + $0xc0] sm:$0xff] %v1282_v28 }
 0x1c4   : > { %1285 = vst [vmem:[%s1207_s5 + $0xd8] sm:$0xff] %v1284_v29 }
 0x1c5   : > { %1287 = vst [vmem:[%s1207_s5 + $0xf0] sm:$0xff] %v1286_v30 }
 0x1c6   : > { %1289 = vst [vmem:[%s1207_s5 + $0x108] sm:$0xff] %v1288_v4 }
 0x1c7   : > { %1291 = vst [vmem:[%s1207_s5 + $0x120] sm:$0xff] %v1290_v31 }
 0x1c8   : > { %1293 = vst [vmem:[%s1207_s5 + $0x138] sm:$0xff] %v1292_v32 }
 0x1c9   : > { %1295 = vst [vmem:[%s1207_s5 + $0x150] sm:$0xff] %v1294_v33 }
 0x1ca   : > { %1297 = vst [vmem:[%s1207_s5 + $0x168] sm:$0xff] %v1296_v34 }
 0x1cb PF: > { %s13_s22 = sadd.s32 1, %s1903_s22   ;;  %s2442_s10 = sld [smem:[#allocation6_spill]] }
 0x1cc   : > { %p10_p6 = scmp.ge.s32.totalorder %s13_s22, 23   ;;  %s2443_s12 = smov %s1867_s13 }
 0x1cd   : > { %s2444_s13 = smov %s2018_s9  ;;  %s2445_s14 = smov %s1875_s15 }
 0x1ce   : > { %s2446_s15 = smov %s2015_s8  ;;  %s2447_s16 = smov %s1883_s17 }
 0x1cf   : > { %s2448_s17 = smov %s2001_s30  ;;  %s2449_s18 = smov %s1895_s20 }
 0x1d0   : > { %s2450_s19 = smov %s1899_s21  ;;  %s2451_s20 = smov %s2454_s24 }
 0x1d1   : > { %s2452_s21 = smov %s2442_s10  ;;  %12 = sbr.rel (!%p10_p6) target bundleno = 9 (0x9), region = 197 }

// kernel: _lambda_.9
= control target key start
LH: loop header
LB: loop body
LE: loop exit
PB: predicated region body
PF: predicated region fallthrough
CT: control target
= control target key end

     0   :  { %s2429_s0 = inlined_call_operand.vmem [shape: bf16[128,2304], index: 0, kind: input, shape index: {}]   ;;  %s2430_s1 = inlined_call_operand.vmem [shape: bf16[2304,384], index: 1, kind: input, shape index: {}]   ;;  %s2431_s2 = inlined_call_operand.vmem [shape: f32[1,384], index: 2, kind: input, shape index: {}]   ;;  %s2432_s3 = inlined_call_operand.vmem [shape: f32[128,384], index: 3, kind: output, shape index: {}]  }
   0x1   :  { %2434 = sst [smem:[#allocation7_spill]] %s2429_s0 }
   0x2   :  { %2435 = sst [smem:[#allocation8_spill]] %s2430_s1 }
   0x3   :  { %s1926_s12 = smov 0   ;;  %s1928_s13 = smov 0  }
   0x4   :  { %s1930_s14 = smov 0   ;;  %s1932_s15 = smov 0  }
   0x5   :  { %s1934_s16 = smov 0   ;;  %s1936_s17 = smov 0  }
   0x6   :  { %s1938_s18 = smov 0   ;;  %s1940_s19 = smov 0  }
   0x7   :  { %s1942_s20 = smov 0   ;;  %s1944_s21 = smov 0  }
   0x8   :  { %s1946_s22 = smov 0  }
   0x9 LB: > { %s1410_s23 = sadd.s32 4294967295, %s1903_s22   ;;  %s25_s24 = sadd.s32 1, %s1895_s20  ;;  %s1903_s22 = sphi %s1946_s22, %s13_s22   ;;  %s1899_s21 = sphi %s1944_s21, %s2452_s21   ;;  %s1895_s20 = sphi %s1942_s20, %s2451_s20   ;;  %s1891_s19 = sphi %s1940_s19, %s2450_s19   ;;  %s1887_s18 = sphi %s1938_s18, %s2449_s18   ;;  %s1883_s17 = sphi %s1936_s17, %s2448_s17   ;;  %s1879_s16 = sphi %s1934_s16, %s2447_s16   ;;  %s1875_s15 = sphi %s1932_s15, %s2446_s15   ;;  %s1871_s14 = sphi %s1930_s14, %s2445_s14   ;;  %s1867_s13 = sphi %s1928_s13, %s2444_s13   ;;  %s1863_s12 = sphi %s1926_s12, %s2443_s12  }
   0xa   : > { %p26_p0 = scmp.ge.s32.totalorder %s25_s24, 6  ;;  %s28_s25 = sadd.s32 1, %s1899_s21 }
   0xb   : > { %s41_s26 = sadd.s32 1, %s1883_s17  ;;  %p48_p1 = scmp.ne.s32.totalorder %s1883_s17, %s1879_s16 }
   0xc   : > { %s2454_s24 = smov (%p26_p0, %s25_s24), 0  ;;  %s2456_s25 = smov (!%p26_p0, %s28_s25), %s1899_s21 }
   0xd   : > { %s37_s27 = ssub.s32 %s1895_s20, %s2454_s24  ;;  %p49_p2 = scmp.eq.s32.totalorder %s1903_s22, 0 }
   0xe   : > { %p30_p3 = scmp.ge.s32.totalorder %s2456_s25, 3  ;;  %p39_p4 = scmp.eq.s32.totalorder %s37_s27, 0 }
   0xf   : > { %p1993_p5 = por %p49_p2, %p48_p1  ;;  %s69_s29 = sadd.s32 1, %s1875_s15 }
  0x10   : > { %s2458_s25 = smov (%p30_p3, %s2456_s25), 0  ;;  %p76_p6 = scmp.ne.s32.totalorder %s1875_s15, %s1871_s14 }
  0x11   : > { %2437 = sst [smem:[#allocation6_spill]] %s2458_s25  ;;  %s65_s4 = ssub.s32 %s1899_s21, %s2458_s25 }
  0x12   : > { %s2001_s30 = scalar_select %p39_p4, %s1883_s17, %s41_s26  }
  0x13   : > { %s66_s5 = sor.u32 %s65_s4, %s37_s27  ;;  %p121_p7 = scmp.eq.s32.totalorder %s65_s4, 0 }
  0x14   : > { %p67_p8 = scmp.eq.s32.totalorder %s66_s5, 0  ;;  %p2007_p9 = por %p76_p6, %p49_p2 }
  0x15   : > { %s123_s7 = sadd.s32 1, %s1867_s13  ;;  %p133_p10 = scmp.ne.s32.totalorder %s1867_s13, %s1863_s12 }
  0x16   : > { %s2015_s8 = scalar_select %p67_p8, %s1875_s15, %s69_s29  }
  0x17   : > { %s2018_s9 = scalar_select %p121_p7, %s1867_s13, %s123_s7  }
  0x18   : > { %p134_p11 = scmp.eq.s32.totalorder %s1410_s23, 17  ;;  %p1413_p13 = scmp.ge.s32.totalorder %s1903_s22, 18 }
  0x1a   : > { %p2020_p12 = por %p134_p11, %p133_p10  ;;  %156 = sbr.rel (%p1413_p13) target bundleno = 129 (0x81), region = 16 }
  0x1f   : > { %159 = sbr.rel (!%p1993_p5) target bundleno = 72 (0x48), region = 20  ;;  %s161_s11 = sand.u32 (%p1993_p5), 1, %s1883_s17  }
  0x20   : > { %s1648_s26 = smul.u32 (%p1993_p5), 12, %s1895_s20  ;;  %s2440_s0 = sld [smem:[#allocation7_spill]] (%p1993_p5) }
  0x21   : > { %s1721_s27 = smul.u32 (%p1993_p5), 192, %s161_s11 }
  0x23   : > { %s2037_s23 = scalar_lea.vmem (%p1993_p5), [#allocation3], %s1721_s27 }
  0x26   : > { %s2032_s5 = scalar_lea.vmem %s2440_s0, %s1648_s26 }
  0x27   : > { %v184_v0 = vld [vmem:[%s2032_s5] sm:$0xff]  ;;  %v186_v1 = vld [vmem:[%s2032_s5 + $0x48] sm:$0xff]  ;;  %v188_v2 = vld [vmem:[%s2032_s5 + $0x90] sm:$0xff] }
  0x28   : > { %185 = vst [vmem:[%s2037_s23] sm:$0xff] %v184_v0  ;;  %v190_v3 = vld [vmem:[%s2032_s5 + $0xd8] sm:$0xff]  ;;  %v192_v4 = vld [vmem:[%s2032_s5 + $0x120] sm:$0xff]  ;;  %v194_v5 = vld [vmem:[%s2032_s5 + $0x168] sm:$0xff] }
  0x29   : > { %187 = vst [vmem:[%s2037_s23 + $0xc] sm:$0xff] %v186_v1  ;;  %v196_v6 = vld [vmem:[%s2032_s5 + $0x1b0] sm:$0xff]  ;;  %v198_v7 = vld [vmem:[%s2032_s5 + $0x1f8] sm:$0xff]  ;;  %v200_v8 = vld [vmem:[%s2032_s5 + $0x240] sm:$0xff] }
  0x2a   : > { %189 = vst [vmem:[%s2037_s23 + $0x18] sm:$0xff] %v188_v2  ;;  %v202_v9 = vld [vmem:[%s2032_s5 + $0x288] sm:$0xff]  ;;  %v204_v10 = vld [vmem:[%s2032_s5 + $0x2d0] sm:$0xff]  ;;  %v206_v11 = vld [vmem:[%s2032_s5 + $0x318] sm:$0xff] }
  0x2b   : > { %191 = vst [vmem:[%s2037_s23 + $0x24] sm:$0xff] %v190_v3  ;;  %v208_v12 = vld [vmem:[%s2032_s5 + $0x360] sm:$0xff]  ;;  %v210_v13 = vld [vmem:[%s2032_s5 + $0x3a8] sm:$0xff]  ;;  %v212_v14 = vld [vmem:[%s2032_s5 + $0x3f0] sm:$0xff] }
  0x2c   : > { %193 = vst [vmem:[%s2037_s23 + $0x30] sm:$0xff] %v192_v4  ;;  %v214_v15 = vld [vmem:[%s2032_s5 + $0x438] sm:$0xff]  ;;  %v1415_v16 = vld [vmem:[%s2032_s5 + $0x8] sm:$0xf]  ;;  %v1417_v17 = vld [vmem:[%s2032_s5 + $0x50] sm:$0xf] }
  0x2d   : > { %195 = vst [vmem:[%s2037_s23 + $0x3c] sm:$0xff] %v194_v5  ;;  %v1419_v18 = vld [vmem:[%s2032_s5 + $0x98] sm:$0xf]  ;;  %v1421_v19 = vld [vmem:[%s2032_s5 + $0xe0] sm:$0xf] }
  0x2e   : > { %197 = vst [vmem:[%s2037_s23 + $0x48] sm:$0xff] %v196_v6  ;;  %v1423_v20 = vld [vmem:[%s2032_s5 + $0x128] sm:$0xf]  ;;  %v1425_v21 = vld [vmem:[%s2032_s5 + $0x170] sm:$0xf] }
  0x2f   : > { %199 = vst [vmem:[%s2037_s23 + $0x54] sm:$0xff] %v198_v7  ;;  %v1427_v22 = vld [vmem:[%s2032_s5 + $0x1b8] sm:$0xf]  ;;  %v1429_v23 = vld [vmem:[%s2032_s5 + $0x200] sm:$0xf] }
  0x30   : > { %201 = vst [vmem:[%s2037_s23 + $0x60] sm:$0xff] %v200_v8  ;;  %v1431_v24 = vld [vmem:[%s2032_s5 + $0x248] sm:$0xf]  ;;  %v1433_v25 = vld [vmem:[%s2032_s5 + $0x290] sm:$0xf] }
  0x31   : > { %203 = vst [vmem:[%s2037_s23 + $0x6c] sm:$0xff] %v202_v9  ;;  %v1435_v26 = vld [vmem:[%s2032_s5 + $0x2d8] sm:$0xf]  ;;  %v1437_v27 = vld [vmem:[%s2032_s5 + $0x320] sm:$0xf] }
  0x32   : > { %205 = vst [vmem:[%s2037_s23 + $0x78] sm:$0xff] %v204_v10  ;;  %v1439_v28 = vld [vmem:[%s2032_s5 + $0x368] sm:$0xf]  ;;  %v1441_v29 = vld [vmem:[%s2032_s5 + $0x3b0] sm:$0xf] }
  0x33   : > { %207 = vst [vmem:[%s2037_s23 + $0x84] sm:$0xff] %v206_v11  ;;  %v1443_v30 = vld [vmem:[%s2032_s5 + $0x3f8] sm:$0xf]  ;;  %v1445_v31 = vld [vmem:[%s2032_s5 + $0x440] sm:$0xf] }
  0x34   : > { %209 = vst [vmem:[%s2037_s23 + $0x90] sm:$0xff] %v208_v12 }
  0x35   : > { %211 = vst [vmem:[%s2037_s23 + $0x9c] sm:$0xff] %v210_v13 }
  0x36   : > { %213 = vst [vmem:[%s2037_s23 + $0xa8] sm:$0xff] %v212_v14 }
  0x37   : > { %215 = vst [vmem:[%s2037_s23 + $0xb4] sm:$0xff] %v214_v15 }
  0x38   : > { %1416 = vst [vmem:[%s2037_s23 + $0x8] sm:$0xf] %v1415_v16 }
  0x39   : > { %1418 = vst [vmem:[%s2037_s23 + $0x14] sm:$0xf] %v1417_v17 }
  0x3a   : > { %1420 = vst [vmem:[%s2037_s23 + $0x20] sm:$0xf] %v1419_v18 }
  0x3b   : > { %1422 = vst [vmem:[%s2037_s23 + $0x2c] sm:$0xf] %v1421_v19 }
  0x3c   : > { %1424 = vst [vmem:[%s2037_s23 + $0x38] sm:$0xf] %v1423_v20 }
  0x3d   : > { %1426 = vst [vmem:[%s2037_s23 + $0x44] sm:$0xf] %v1425_v21 }
  0x3e   : > { %1428 = vst [vmem:[%s2037_s23 + $0x50] sm:$0xf] %v1427_v22 }
  0x3f   : > { %1430 = vst [vmem:[%s2037_s23 + $0x5c] sm:$0xf] %v1429_v23 }
  0x40   : > { %1432 = vst [vmem:[%s2037_s23 + $0x68] sm:$0xf] %v1431_v24 }
  0x41   : > { %1434 = vst [vmem:[%s2037_s23 + $0x74] sm:$0xf] %v1433_v25 }
  0x42   : > { %1436 = vst [vmem:[%s2037_s23 + $0x80] sm:$0xf] %v1435_v26 }
  0x43   : > { %1438 = vst [vmem:[%s2037_s23 + $0x8c] sm:$0xf] %v1437_v27 }
  0x44   : > { %1440 = vst [vmem:[%s2037_s23 + $0x98] sm:$0xf] %v1439_v28 }
  0x45   : > { %1442 = vst [vmem:[%s2037_s23 + $0xa4] sm:$0xf] %v1441_v29 }
  0x46   : > { %1444 = vst [vmem:[%s2037_s23 + $0xb0] sm:$0xf] %v1443_v30 }
  0x47   : > { %1446 = vst [vmem:[%s2037_s23 + $0xbc] sm:$0xf] %v1445_v31 }
  0x48 PF: > { %261 = sbr.rel (!%p2007_p9) target bundleno = 129 (0x81), region = 46  ;;  %s263_s28 = sand.u32 (%p2007_p9), 1, %s1875_s15  }
  0x49   : > { %s1722_s7 = smul.u32 (%p2007_p9), 192, %s263_s28  ;;  %s2441_s1 = sld [smem:[#allocation8_spill]] (%p2007_p9) }
  0x4a   : > { %s1726_s11 = smul.u32 (%p2007_p9), 144, %s1895_s20 }
  0x4b   : > { %s2113_s6 = scalar_lea.vmem (%p2007_p9), [#allocation4], %s1722_s7 }
  0x4c   : > { %s268_s26 = sadd.s32 (%p2007_p9), %s1899_s21, %s1726_s11 }
  0x4d   : > { %s1447_s27 = sshll.u32 %s268_s26, 2 }
  0x4f   : > { %s2108_s0 = scalar_lea.vmem %s2441_s1, %s1447_s27 }
  0x50   : > { %v287_v32 = vld [vmem:[%s2108_s0] sm:$0xf]  ;;  %v289_v33 = vld [vmem:[%s2108_s0 + $0xc] sm:$0xf]  ;;  %v291_v34 = vld [vmem:[%s2108_s0 + $0x18] sm:$0xf] }
  0x51   : > { %288 = vst [vmem:[%s2113_s6] sm:$0xf] %v287_v32  ;;  %v293_v35 = vld [vmem:[%s2108_s0 + $0x24] sm:$0xf]  ;;  %v295_v36 = vld [vmem:[%s2108_s0 + $0x30] sm:$0xf] }
  0x52   : > { %290 = vst [vmem:[%s2113_s6 + $0x4] sm:$0xf] %v289_v33  ;;  %v297_v37 = vld [vmem:[%s2108_s0 + $0x3c] sm:$0xf]  ;;  %v299_v38 = vld [vmem:[%s2108_s0 + $0x48] sm:$0xf] }
  0x53   : > { %292 = vst [vmem:[%s2113_s6 + $0x8] sm:$0xf] %v291_v34  ;;  %v301_v39 = vld [vmem:[%s2108_s0 + $0x54] sm:$0xf]  ;;  %v303_v40 = vld [vmem:[%s2108_s0 + $0x60] sm:$0xf] }
  0x54   : > { %294 = vst [vmem:[%s2113_s6 + $0xc] sm:$0xf] %v293_v35  ;;  %v305_v41 = vld [vmem:[%s2108_s0 + $0x6c] sm:$0xf]  ;;  %v307_v42 = vld [vmem:[%s2108_s0 + $0x78] sm:$0xf] }
  0x55   : > { %296 = vst [vmem:[%s2113_s6 + $0x10] sm:$0xf] %v295_v36  ;;  %v309_v43 = vld [vmem:[%s2108_s0 + $0x84] sm:$0xf]  ;;  %v311_v44 = vld [vmem:[%s2108_s0 + $0x90] sm:$0xf] }
  0x56   : > { %298 = vst [vmem:[%s2113_s6 + $0x14] sm:$0xf] %v297_v37  ;;  %v313_v45 = vld [vmem:[%s2108_s0 + $0x9c] sm:$0xf]  ;;  %v315_v46 = vld [vmem:[%s2108_s0 + $0xa8] sm:$0xf] }
  0x57   : > { %300 = vst [vmem:[%s2113_s6 + $0x18] sm:$0xf] %v299_v38  ;;  %v317_v47 = vld [vmem:[%s2108_s0 + $0xb4] sm:$0xf]  ;;  %v319_v48 = vld [vmem:[%s2108_s0 + $0xc0] sm:$0xf] }
  0x58   : > { %302 = vst [vmem:[%s2113_s6 + $0x1c] sm:$0xf] %v301_v39  ;;  %v321_v49 = vld [vmem:[%s2108_s0 + $0xcc] sm:$0xf]  ;;  %v323_v50 = vld [vmem:[%s2108_s0 + $0xd8] sm:$0xf] }
  0x59   : > { %304 = vst [vmem:[%s2113_s6 + $0x20] sm:$0xf] %v303_v40  ;;  %v325_v51 = vld [vmem:[%s2108_s0 + $0xe4] sm:$0xf]  ;;  %v327_v52 = vld [vmem:[%s2108_s0 + $0xf0] sm:$0xf] }
  0x5a   : > { %306 = vst [vmem:[%s2113_s6 + $0x24] sm:$0xf] %v305_v41  ;;  %v329_v53 = vld [vmem:[%s2108_s0 + $0xfc] sm:$0xf]  ;;  %v331_v54 = vld [vmem:[%s2108_s0 + $0x108] sm:$0xf] }
  0x5b   : > { %308 = vst [vmem:[%s2113_s6 + $0x28] sm:$0xf] %v307_v42  ;;  %v333_v55 = vld [vmem:[%s2108_s0 + $0x114] sm:$0xf]  ;;  %v335_v56 = vld [vmem:[%s2108_s0 + $0x120] sm:$0xf] }
  0x5c   : > { %310 = vst [vmem:[%s2113_s6 + $0x2c] sm:$0xf] %v309_v43  ;;  %v337_v57 = vld [vmem:[%s2108_s0 + $0x12c] sm:$0xf]  ;;  %v339_v58 = vld [vmem:[%s2108_s0 + $0x138] sm:$0xf] }
  0x5d   : > { %312 = vst [vmem:[%s2113_s6 + $0x30] sm:$0xf] %v311_v44  ;;  %v341_v59 = vld [vmem:[%s2108_s0 + $0x144] sm:$0xf]  ;;  %v343_v60 = vld [vmem:[%s2108_s0 + $0x150] sm:$0xf] }
  0x5e   : > { %314 = vst [vmem:[%s2113_s6 + $0x34] sm:$0xf] %v313_v45  ;;  %v345_v61 = vld [vmem:[%s2108_s0 + $0x15c] sm:$0xf]  ;;  %v347_v62 = vld [vmem:[%s2108_s0 + $0x168] sm:$0xf] }
  0x5f   : > { %316 = vst [vmem:[%s2113_s6 + $0x38] sm:$0xf] %v315_v46  ;;  %v349_v63 = vld [vmem:[%s2108_s0 + $0x174] sm:$0xf]  ;;  %v351_v0 = vld [vmem:[%s2108_s0 + $0x180] sm:$0xf] }
  0x60   : > { %318 = vst [vmem:[%s2113_s6 + $0x3c] sm:$0xf] %v317_v47  ;;  %v353_v1 = vld [vmem:[%s2108_s0 + $0x18c] sm:$0xf]  ;;  %v355_v2 = vld [vmem:[%s2108_s0 + $0x198] sm:$0xf] }
  0x61   : > { %320 = vst [vmem:[%s2113_s6 + $0x40] sm:$0xf] %v319_v48  ;;  %v357_v3 = vld [vmem:[%s2108_s0 + $0x1a4] sm:$0xf]  ;;  %v359_v4 = vld [vmem:[%s2108_s0 + $0x1b0] sm:$0xf] }
  0x62   : > { %322 = vst [vmem:[%s2113_s6 + $0x44] sm:$0xf] %v321_v49  ;;  %v361_v5 = vld [vmem:[%s2108_s0 + $0x1bc] sm:$0xf]  ;;  %v363_v6 = vld [vmem:[%s2108_s0 + $0x1c8] sm:$0xf] }
  0x63   : > { %324 = vst [vmem:[%s2113_s6 + $0x48] sm:$0xf] %v323_v50  ;;  %v365_v7 = vld [vmem:[%s2108_s0 + $0x1d4] sm:$0xf]  ;;  %v367_v8 = vld [vmem:[%s2108_s0 + $0x1e0] sm:$0xf] }
  0x64   : > { %326 = vst [vmem:[%s2113_s6 + $0x4c] sm:$0xf] %v325_v51  ;;  %v369_v9 = vld [vmem:[%s2108_s0 + $0x1ec] sm:$0xf]  ;;  %v371_v10 = vld [vmem:[%s2108_s0 + $0x1f8] sm:$0xf] }
  0x65   : > { %328 = vst [vmem:[%s2113_s6 + $0x50] sm:$0xf] %v327_v52  ;;  %v373_v11 = vld [vmem:[%s2108_s0 + $0x204] sm:$0xf]  ;;  %v375_v12 = vld [vmem:[%s2108_s0 + $0x210] sm:$0xf] }
  0x66   : > { %330 = vst [vmem:[%s2113_s6 + $0x54] sm:$0xf] %v329_v53  ;;  %v377_v13 = vld [vmem:[%s2108_s0 + $0x21c] sm:$0xf]  ;;  %v379_v14 = vld [vmem:[%s2108_s0 + $0x228] sm:$0xf] }
  0x67   : > { %332 = vst [vmem:[%s2113_s6 + $0x58] sm:$0xf] %v331_v54  ;;  %v381_v15 = vld [vmem:[%s2108_s0 + $0x234] sm:$0xf] }
  0x68   : > { %334 = vst [vmem:[%s2113_s6 + $0x5c] sm:$0xf] %v333_v55 }
  0x69   : > { %336 = vst [vmem:[%s2113_s6 + $0x60] sm:$0xf] %v335_v56 }
  0x6a   : > { %338 = vst [vmem:[%s2113_s6 + $0x64] sm:$0xf] %v337_v57 }
  0x6b   : > { %340 = vst [vmem:[%s2113_s6 + $0x68] sm:$0xf] %v339_v58 }
  0x6c   : > { %342 = vst [vmem:[%s2113_s6 + $0x6c] sm:$0xf] %v341_v59 }
  0x6d   : > { %344 = vst [vmem:[%s2113_s6 + $0x70] sm:$0xf] %v343_v60 }
  0x6e   : > { %346 = vst [vmem:[%s2113_s6 + $0x74] sm:$0xf] %v345_v61 }
  0x6f   : > { %348 = vst [vmem:[%s2113_s6 + $0x78] sm:$0xf] %v347_v62 }
  0x70   : > { %350 = vst [vmem:[%s2113_s6 + $0x7c] sm:$0xf] %v349_v63 }
  0x71   : > { %352 = vst [vmem:[%s2113_s6 + $0x80] sm:$0xf] %v351_v0 }
  0x72   : > { %354 = vst [vmem:[%s2113_s6 + $0x84] sm:$0xf] %v353_v1 }
  0x73   : > { %356 = vst [vmem:[%s2113_s6 + $0x88] sm:$0xf] %v355_v2 }
  0x74   : > { %358 = vst [vmem:[%s2113_s6 + $0x8c] sm:$0xf] %v357_v3 }
  0x75   : > { %360 = vst [vmem:[%s2113_s6 + $0x90] sm:$0xf] %v359_v4 }
  0x76   : > { %362 = vst [vmem:[%s2113_s6 + $0x94] sm:$0xf] %v361_v5 }
  0x77   : > { %364 = vst [vmem:[%s2113_s6 + $0x98] sm:$0xf] %v363_v6 }
  0x78   : > { %366 = vst [vmem:[%s2113_s6 + $0x9c] sm:$0xf] %v365_v7 }
  0x79   : > { %368 = vst [vmem:[%s2113_s6 + $0xa0] sm:$0xf] %v367_v8 }
  0x7a   : > { %370 = vst [vmem:[%s2113_s6 + $0xa4] sm:$0xf] %v369_v9 }
  0x7b   : > { %372 = vst [vmem:[%s2113_s6 + $0xa8] sm:$0xf] %v371_v10 }
  0x7c   : > { %374 = vst [vmem:[%s2113_s6 + $0xac] sm:$0xf] %v373_v11 }
  0x7d   : > { %376 = vst [vmem:[%s2113_s6 + $0xb0] sm:$0xf] %v375_v12 }
  0x7e   : > { %378 = vst [vmem:[%s2113_s6 + $0xb4] sm:$0xf] %v377_v13 }
  0x7f   : > { %380 = vst [vmem:[%s2113_s6 + $0xb8] sm:$0xf] %v379_v14 }
  0x80   : > { %382 = vst [vmem:[%s2113_s6 + $0xbc] sm:$0xf] %v381_v15 }
  0x81 PF: > { %p1448_p0 = scmp.ge.s32.totalorder %s1903_s22, 1  ;;  %p507_p1 = scmp.lt.s32.totalorder %s1903_s22, 19 }
  0x83   : > { %p508_p2 = pnand %p1448_p0, %p507_p1 }
  0x84   : > { %s514_s5 = sand.u32 (!%p508_p2), 1, %s1879_s16   ;;  %s521_s23 = sand.u32 (!%p508_p2), 1, %s1871_s14  }
  0x85   : > { %511 = sbr.rel (%p508_p2) target bundleno = 459 (0x1cb), region = 91  ;;  %s547_s0 = sand.u32 (!%p508_p2), 1, %s1863_s12  }
  0x86   : > { %s1724_s28 = smul.u32 (!%p508_p2), 192, %s514_s5  ;;  %s1449_s11 = sshll.u32 (!%p508_p2), %s547_s0, 7 }
  0x87   : > { %s1725_s7 = smul.u32 (!%p508_p2), 192, %s521_s23  ;;  %p553_p3 = scmp.lt.s32.totalorder (!%p508_p2), %s1891_s19, 2 }
  0x88   : > { %s2221_s6 = scalar_lea.vmem (!%p508_p2), [#allocation3], %s1724_s28  ;;  %s2225_s25 = scalar_lea.vmem (!%p508_p2), [#allocation5], %s1449_s11 }
  0x89   : > { %s2223_s1 = scalar_lea.vmem (!%p508_p2), [#allocation4], %s1725_s7  ;;  %p1450_p4 = scmp.ne.s32.totalorder (!%p508_p2), %s1887_s18, 0 }
  0x8a   : > { %s2215_s26 = scalar_select %p553_p3, %s1891_s19, 2 }
  0x8b   : > { %560 = sbr.rel (%p1450_p4) target bundleno = 161 (0xa1), region = 103 }
  0x8c   : > { %s555_s4 = scalar_lea.vmem %s2431_s2, %s2215_s26 }
  0x90   : > { %v1905_v16 = vmov 0.0  }
  0x91   : > { %561 = vst [vmem:[#allocation2 + $0x30] sm:$0xff] %v1905_v16 }
  0x92   : > { %562 = vst [vmem:[#allocation2] sm:$0xff] %v1905_v16 }
  0x93   : > { %563 = vst [vmem:[#allocation2 + $0x58] sm:$0xff] %v1905_v16 }
  0x94   : > { %564 = vst [vmem:[#allocation2 + $0x18] sm:$0xff] %v1905_v16 }
  0x95   : > { %565 = vst [vmem:[#allocation2 + $0x50] sm:$0xff] %v1905_v16 }
  0x96   : > { %566 = vst [vmem:[#allocation2 + $0x68] sm:$0xff] %v1905_v16 }
  0x97   : > { %567 = vst [vmem:[#allocation2 + $0x8] sm:$0xff] %v1905_v16 }
  0x98   : > { %568 = vst [vmem:[#allocation2 + $0x48] sm:$0xff] %v1905_v16 }
  0x99   : > { %569 = vst [vmem:[#allocation2 + $0x40] sm:$0xff] %v1905_v16 }
  0x9a   : > { %570 = vst [vmem:[#allocation2 + $0x20] sm:$0xff] %v1905_v16 }
  0x9b   : > { %571 = vst [vmem:[#allocation2 + $0x10] sm:$0xff] %v1905_v16 }
  0x9c   : > { %572 = vst [vmem:[#allocation2 + $0x38] sm:$0xff] %v1905_v16 }
  0x9d   : > { %573 = vst [vmem:[#allocation2 + $0x60] sm:$0xff] %v1905_v16 }
  0x9e   : > { %574 = vst [vmem:[#allocation2 + $0x70] sm:$0xff] %v1905_v16 }
  0x9f   : > { %575 = vst [vmem:[#allocation2 + $0x78] sm:$0xff] %v1905_v16 }
  0xa0   : > { %576 = vst [vmem:[#allocation2 + $0x28] sm:$0xff] %v1905_v16 }
  0xa1 PF: > { %v1680_v17 = vld [vmem:[%s2223_s1 + $0x38] sm:$0xff]  ;;  %v1679_v20 = vld [vmem:[%s2223_s1 + $0x30] sm:$0xff]  ;;  %v1678_v23 = vld [vmem:[%s2223_s1 + $0x28] sm:$0xff]  ;;  %p1643_p5 = scmp.ne.s32.totalorder %s1887_s18, 5 }
  0xa2   : > { %v2230_v18 = vld [vmem:[%s2223_s1 + $0x78] sm:$0xff]  ;;  %945 = vmatpush.bf16.msra.mxu0 %v1680_v17  ;;  %1697 = vmatpush.bf16.msra.mxu3 %v1680_v17  ;;  %v2239_v21 = vld [vmem:[%s2223_s1 + $0x70] sm:$0xff]  ;;  %v1686_v24 = vld [vmem:[%s2223_s1 + $0x68] sm:$0xff] }
  0xa3   : > { %v2233_v19 = vld [vmem:[%s2223_s1 + $0xb8] sm:$0xff]  ;;  %994 = vmatpush.bf16.msra.mxu1 %v2230_v18  ;;  %v2242_v22 = vld [vmem:[%s2223_s1 + $0xb0] sm:$0xff]  ;;  %v2249_v25 = vld [vmem:[%s2223_s1 + $0xa8] sm:$0xff] }
  0xa4   : > { %1043 = vmatpush.bf16.msra.mxu2 %v2233_v19  ;;  %v1677_v26 = vld [vmem:[%s2223_s1 + $0x20] sm:$0xff]  ;;  %v1676_v29 = vld [vmem:[%s2223_s1 + $0x18] sm:$0xff]  ;;  %v1675_v32 = vld [vmem:[%s2223_s1 + $0x10] sm:$0xff] }
  0xa5   : > { %v1685_v27 = vld [vmem:[%s2223_s1 + $0x60] sm:$0xff]  ;;  %v1684_v30 = vld [vmem:[%s2223_s1 + $0x58] sm:$0xff]  ;;  %v1683_v33 = vld [vmem:[%s2223_s1 + $0x50] sm:$0xff] }
  0xa6   : > { %946 = vmatpush.bf16.msra.mxu0 %v1679_v20  ;;  %1698 = vmatpush.bf16.msra.mxu3 %v1679_v20  ;;  %v2255_v28 = vld [vmem:[%s2223_s1 + $0xa0] sm:$0xff]  ;;  %v2261_v31 = vld [vmem:[%s2223_s1 + $0x98] sm:$0xff]  ;;  %v2267_v34 = vld [vmem:[%s2223_s1 + $0x90] sm:$0xff] }
  0xa7   : > { %995 = vmatpush.bf16.msra.mxu1 %v2239_v21  ;;  %v1674_v35 = vld [vmem:[%s2223_s1 + $0x8] sm:$0xff]  ;;  %v1673_v38 = vld [vmem:[%s2223_s1] sm:$0xff]  ;;  %v1525_v43 = vld [vmem:[%s2221_s6 + $0x90] sm:$0xf] }
  0xa8   : > { %1044 = vmatpush.bf16.msra.mxu2 %v2242_v22  ;;  %v1682_v36 = vld [vmem:[%s2223_s1 + $0x48] sm:$0xff]  ;;  %v1681_v39 = vld [vmem:[%s2223_s1 + $0x40] sm:$0xff]  ;;  %v1668_v44 = vld [vmem:[%s2221_s6 + $0x98] sm:$0xf0] }
  0xa9   : > { %v2273_v37 = vld [vmem:[%s2223_s1 + $0x88] sm:$0xff]  ;;  %v2278_v40 = vld [vmem:[%s2223_s1 + $0x80] sm:$0xff]  ;;  %v1455_v46 = vld [vmem:[%s2221_s6 + $0xc] sm:$0xf0]  ;;  %v1526_v50 = vor.u32 %v1668_v44, %v1525_v43 }
  0xaa   : > { %947 = vmatpush.bf16.msra.mxu0 %v1678_v23  ;;  %1699 = vmatpush.bf16.msra.mxu3 %v1678_v23  ;;  %v1453_v41 = vld [vmem:[%s2221_s6] sm:$0xf]  ;;  %v1650_v42 = vld [vmem:[%s2221_s6 + $0x8] sm:$0xf0]  ;;  %v1649_v45 = vld [vmem:[%s2221_s6 + $0x4] sm:$0xf] }
  0xab   : > { %996 = vmatpush.bf16.msra.mxu1 %v1686_v24  ;;  %v1461_v47 = vld [vmem:[%s2221_s6 + $0x8] sm:$0xf]  ;;  %v1651_v48 = vld [vmem:[%s2221_s6 + $0x10] sm:$0xf0]  ;;  %v1454_v49 = vor.u32 %v1650_v42, %v1453_v41  ;;  %v1458_v51 = vor.u32 %v1649_v45, %v1455_v46  ;;  %v1465_v53 = vld [vmem:[%s2221_s6 + $0x18] sm:$0xf] }
  0xac   : > { %1045 = vmatpush.bf16.msra.mxu2 %v2249_v25  ;;  %v1462_v52 = vor.u32 %v1651_v48, %v1461_v47  ;;  %v1653_v54 = vld [vmem:[%s2221_s6 + $0x20] sm:$0xf0]  ;;  %v1537_v55 = vld [vmem:[%s2221_s6 + $0xa8] sm:$0xf]  ;;  %v1671_v56 = vld [vmem:[%s2221_s6 + $0xb0] sm:$0xf0] }
  0xad   : > { %v1652_v57 = vld [vmem:[%s2221_s6 + $0x1c] sm:$0xf]  ;;  %v1467_v58 = vld [vmem:[%s2221_s6 + $0x24] sm:$0xf0]  ;;  %v1473_v59 = vld [vmem:[%s2221_s6 + $0x20] sm:$0xf]  ;;  %v1466_v61 = vor.u32 %v1653_v54, %v1465_v53  ;;  %v1538_v62 = vor.u32 %v1671_v56, %v1537_v55 }
  0xae   : > { %948 = vmatpush.bf16.msra.mxu0 %v1677_v26  ;;  %1700 = vmatpush.bf16.msra.mxu3 %v1677_v26  ;;  %v1654_v60 = vld [vmem:[%s2221_s6 + $0x28] sm:$0xf0]  ;;  %v1470_v63 = vor.u32 %v1652_v57, %v1467_v58  ;;  %v1477_v1 = vld [vmem:[%s2221_s6 + $0x30] sm:$0xf]  ;;  %v1656_v2 = vld [vmem:[%s2221_s6 + $0x38] sm:$0xf0] }
  0xaf   : > { %997 = vmatpush.bf16.msra.mxu1 %v1685_v27  ;;  %v1474_v0 = vor.u32 %v1654_v60, %v1473_v59  ;;  %v1655_v3 = vld [vmem:[%s2221_s6 + $0x34] sm:$0xf]  ;;  %v1527_v5 = vld [vmem:[%s2221_s6 + $0x9c] sm:$0xf0]  ;;  %v1485_v7 = vld [vmem:[%s2221_s6 + $0x38] sm:$0xf]  ;;  %v1478_v9 = vor.u32 %v1656_v2, %v1477_v1 }
  0xb0   : > { %1046 = vmatpush.bf16.msra.mxu2 %v2255_v28  ;;  %v1667_v4 = vld [vmem:[%s2221_s6 + $0x94] sm:$0xf]  ;;  %v1479_v6 = vld [vmem:[%s2221_s6 + $0x3c] sm:$0xf0]  ;;  %v1657_v8 = vld [vmem:[%s2221_s6 + $0x40] sm:$0xf0] }
  0xb1   : > { %v1530_v10 = vor.u32 %v1667_v4, %v1527_v5  ;;  %v1482_v11 = vor.u32 %v1655_v3, %v1479_v6  ;;  %v1486_v12 = vor.u32 %v1657_v8, %v1485_v7  ;;  %v1489_v13 = vld [vmem:[%s2221_s6 + $0x48] sm:$0xf]  ;;  %v1659_v14 = vld [vmem:[%s2221_s6 + $0x50] sm:$0xf0]  ;;  %v1658_v15 = vld [vmem:[%s2221_s6 + $0x4c] sm:$0xf] }
  0xb2   : > { %949 = vmatpush.bf16.msra.mxu0 %v1676_v29  ;;  %1701 = vmatpush.bf16.msra.mxu3 %v1676_v29  ;;  %v1670_v16 = vld [vmem:[%s2221_s6 + $0xac] sm:$0xf]  ;;  %v1539_v17 = vld [vmem:[%s2221_s6 + $0xb4] sm:$0xf0]  ;;  %v1660_v20 = vld [vmem:[%s2221_s6 + $0x58] sm:$0xf0] }
  0xb3   : > { %998 = vmatpush.bf16.msra.mxu1 %v1684_v30  ;;  %v1542_v23 = vor.u32 %v1670_v16, %v1539_v17  ;;  %v1662_v26 = vld [vmem:[%s2221_s6 + $0x68] sm:$0xf0]  ;;  %v1669_v29 = vld [vmem:[%s2221_s6 + $0xa0] sm:$0xf0]  ;;  %v1545_v41 = vld [vmem:[%s2221_s6 + $0xb0] sm:$0xf] }
  0xb4   : > { %1047 = vmatpush.bf16.msra.mxu2 %v2261_v31  ;;  %v1515_v42 = vld [vmem:[%s2221_s6 + $0x84] sm:$0xf0]  ;;  %v1521_v43 = vld [vmem:[%s2221_s6 + $0x80] sm:$0xf]  ;;  %v1666_v44 = vld [vmem:[%s2221_s6 + $0x88] sm:$0xf0] }
  0xb5   : > { %v1522_v48 = vor.u32 %v1666_v44, %v1521_v43  ;;  %v577_v53 = vld [vmem:[#allocation2 + $0x30] sm:$0xff]  ;;  %v579_v5 = vld [vmem:[#allocation2 + $0x58] sm:$0xff] }
  0xb6   : > { %950 = vmatpush.bf16.msra.mxu0 %v1675_v32  ;;  %1702 = vmatpush.bf16.msra.mxu3 %v1675_v32  ;;  %v1663_v32 = vld [vmem:[%s2221_s6 + $0x70] sm:$0xf0] }
  0xb7   : > { %999 = vmatpush.bf16.msra.mxu1 %v1683_v33 }
  0xb8   : > { %1048 = vmatpush.bf16.msra.mxu2 %v2267_v34 }
  0xba   : > { %951 = vmatpush.bf16.msra.mxu0 %v1674_v35  ;;  %1703 = vmatpush.bf16.msra.mxu3 %v1674_v35 }
  0xbb   : > { %1000 = vmatpush.bf16.msra.mxu1 %v1682_v36 }
  0xbc   : > { %1049 = vmatpush.bf16.msra.mxu2 %v2273_v37 }
  0xbe   : > { %952 = vmatpush.bf16.msra.mxu0 %v1673_v38  ;;  %1704 = vmatpush.bf16.msra.mxu3 %v1673_v38  ;;  %v1665_v38 = vld [vmem:[%s2221_s6 + $0x80] sm:$0xf0] }
  0xbf   : > { %1001 = vmatpush.bf16.msra.mxu1 %v1681_v39 }
  0xc0   : > { %1050 = vmatpush.bf16.msra.mxu2 %v2278_v40 }
  0xc1   : > { %953 = vmatmul.bf16.vlgmr.msra.gmra.mxu0 %v1454_v49  ;;  %983 = vmatmul.bf16.vlgmr.msra.gmra.mxu3 %v1526_v50 }
  0xc2   : > { %1705 = vmatpush.bf16.msrb.mxu3 %v2230_v18  ;;  %1002 = vmatmul.bf16.vlgmr.msra.gmra.mxu1 %v1458_v51  ;;  %v1491_v18 = vld [vmem:[%s2221_s6 + $0x54] sm:$0xf0] }
  0xc3   : > { %1051 = vmatmul.bf16.vlgmr.msra.gmra.mxu2 %v1462_v52 }
  0xc6   : > { %1706 = vmatpush.bf16.msrb.mxu3 %v2239_v21  ;;  %v1490_v21 = vor.u32 %v1659_v14, %v1489_v13  ;;  %v580_v13 = vld [vmem:[#allocation2 + $0x18] sm:$0xff] }
  0xca   : > { %1707 = vmatpush.bf16.msrb.mxu3 %v1686_v24 }
  0xce   : > { %1708 = vmatpush.bf16.msrb.mxu3 %v1685_v27  ;;  %v1661_v27 = vld [vmem:[%s2221_s6 + $0x64] sm:$0xf] }
  0xd1   : > { %958 = vmatmul.bf16.gmra.mxu0 %v1466_v61  ;;  %988 = vmatmul.bf16.gmra.mxu3 %v1538_v62  ;;  %v578_v61 = vld [vmem:[#allocation2] sm:$0xff] }
  0xd2   : > { %1709 = vmatpush.bf16.msrb.mxu3 %v1684_v30  ;;  %1007 = vmatmul.bf16.gmra.mxu1 %v1470_v63  ;;  %v1503_v30 = vld [vmem:[%s2221_s6 + $0x6c] sm:$0xf0] }
  0xd3   : > { %1056 = vmatmul.bf16.gmra.mxu2 %v1474_v0  ;;  %v1506_v35 = vor.u32 %v1661_v27, %v1503_v30 }
  0xd6   : > { %1710 = vmatpush.bf16.msrb.mxu3 %v1683_v33 }
  0xda   : > { %1711 = vmatpush.bf16.msrb.mxu3 %v1682_v36 }
  0xde   : > { %1712 = vmatpush.bf16.msrb.mxu3 %v1681_v39  ;;  %v1664_v39 = vld [vmem:[%s2221_s6 + $0x7c] sm:$0xf] }
  0xdf   : > { %v1518_v47 = vor.u32 %v1664_v39, %v1515_v42 }
  0xe1   : > { %963 = vmatmul.bf16.gmra.mxu0 %v1478_v9  ;;  %1032 = vmatmul.bf16.vlgmr.msrb.gmra.mxu3 %v1530_v10 }
  0xe2   : > { %1713 = vmatpush.bf16.msra.mxu3 %v2233_v19  ;;  %1012 = vmatmul.bf16.gmra.mxu1 %v1482_v11  ;;  %v1497_v19 = vld [vmem:[%s2221_s6 + $0x50] sm:$0xf] }
  0xe3   : > { %1061 = vmatmul.bf16.gmra.mxu2 %v1486_v12  ;;  %v1498_v24 = vor.u32 %v1660_v20, %v1497_v19 }
  0xe6   : > { %1714 = vmatpush.bf16.msra.mxu3 %v2242_v22  ;;  %v1494_v22 = vor.u32 %v1658_v15, %v1491_v18 }
  0xea   : > { %1715 = vmatpush.bf16.msra.mxu3 %v2249_v25  ;;  %v1501_v25 = vld [vmem:[%s2221_s6 + $0x60] sm:$0xf] }
  0xeb   : > { %v1502_v33 = vor.u32 %v1662_v26, %v1501_v25 }
  0xee   : > { %1716 = vmatpush.bf16.msra.mxu3 %v2255_v28  ;;  %v1533_v28 = vld [vmem:[%s2221_s6 + $0x98] sm:$0xf] }
  0xf1   : > { %968 = vmatmul.bf16.gmra.mxu0 %v1490_v21  ;;  %1037 = vmatmul.bf16.gmra.mxu3 %v1542_v23  ;;  %v581_v21 = vld [vmem:[#allocation2 + $0x50] sm:$0xff] }
  0xf2   : > { %1717 = vmatpush.bf16.msra.mxu3 %v2261_v31  ;;  %1017 = vmatmul.bf16.gmra.mxu1 %v1494_v22  ;;  %v1509_v31 = vld [vmem:[%s2221_s6 + $0x68] sm:$0xf] }
  0xf3   : > { %1066 = vmatmul.bf16.gmra.mxu2 %v1498_v24  ;;  %v1510_v36 = vor.u32 %v1663_v32, %v1509_v31 }
  0xf6   : > { %1718 = vmatpush.bf16.msra.mxu3 %v2267_v34  ;;  %v1534_v34 = vor.u32 %v1669_v29, %v1533_v28  ;;  %v582_v29 = vld [vmem:[#allocation2 + $0x68] sm:$0xff] }
  0xfa   : > { %1719 = vmatpush.bf16.msra.mxu3 %v2273_v37  ;;  %v1513_v37 = vld [vmem:[%s2221_s6 + $0x78] sm:$0xf] }
  0xfb   : > { %v1514_v45 = vor.u32 %v1665_v38, %v1513_v37  ;;  %v583_v37 = vld [vmem:[#allocation2 + $0x8] sm:$0xff] }
  0xfe   : > { %1720 = vmatpush.bf16.msra.mxu3 %v2278_v40  ;;  %v1672_v40 = vld [vmem:[%s2221_s6 + $0xb8] sm:$0xf0] }
  0xff   : > { %v1546_v46 = vor.u32 %v1672_v40, %v1545_v41 }
 0x101   : > { %973 = vmatmul.bf16.gmra.mxu0 %v1502_v33  ;;  %1081 = vmatmul.bf16.vlgmr.msra.gmra.mxu3 %v1534_v34 }
 0x102   : > { %1022 = vmatmul.bf16.gmra.mxu1 %v1506_v35 }
 0x103   : > { %1071 = vmatmul.bf16.gmra.mxu2 %v1510_v36 }
 0x111   : > { %978 = vmatmul.bf16.gmra.mxu0 %v1514_v45  ;;  %1086 = vmatmul.bf16.gmra.mxu3 %v1546_v46  ;;  %v584_v45 = vld [vmem:[#allocation2 + $0x48] sm:$0xff] }
 0x112   : > { %1027 = vmatmul.bf16.gmra.mxu1 %v1518_v47 }
 0x113   : > { %1076 = vmatmul.bf16.gmra.mxu2 %v1522_v48 }
 0x13e   : > { %v954_v49 = vpop.f32.mrf.mxu0 }
 0x13f   : > { %v1003_v50 = vpop.f32.mrf.mxu1 }
 0x140   : > { %v1004_v51 = vadd.f32 %v1003_v50, %v954_v49 }
 0x144   : > { %v2340_v52 = vpop.f32.mrf.mxu3 }
 0x146   : > { %v1052_v54 = vpop.f32.mrf.mxu2  ;;  %v956_v56 = vpop.f32.mrf.mxu0 }
 0x147   : > { %v1053_v55 = vadd.f32 %v1052_v54, %v1004_v51  ;;  %v1005_v57 = vpop.f32.mrf.mxu1  ;;  %v589_v54 = vld [vmem:[#allocation2 + $0x60] sm:$0xff] }
 0x148   : > { %v1006_v59 = vadd.f32 %v1005_v57, %v956_v56  ;;  %v585_v56 = vld [vmem:[#allocation2 + $0x40] sm:$0xff] }
 0x149   : > { %v1092_v58 = vadd.f32 %v1053_v55, %v577_v53 }
 0x14b   : > { %1108 = vst [vmem:[#allocation2 + $0x30] sm:$0xff] %v1092_v58 }
 0x14c   : > { %v2342_v60 = vpop.f32.mrf.mxu3 }
 0x14e   : > { %v1054_v62 = vpop.f32.mrf.mxu2  ;;  %v959_v0 = vpop.f32.mrf.mxu0 }
 0x14f   : > { %v1055_v63 = vadd.f32 %v1054_v62, %v1006_v59  ;;  %v1008_v1 = vpop.f32.mrf.mxu1 }
 0x150   : > { %v1009_v3 = vadd.f32 %v1008_v1, %v959_v0 }
 0x151   : > { %v1093_v2 = vadd.f32 %v1055_v63, %v578_v61 }
 0x153   : > { %1109 = vst [vmem:[#allocation2] sm:$0xff] %v1093_v2 }
 0x154   : > { %v2344_v4 = vpop.f32.mrf.mxu3 }
 0x156   : > { %v1057_v6 = vpop.f32.mrf.mxu2  ;;  %v961_v8 = vpop.f32.mrf.mxu0 }
 0x157   : > { %v1058_v7 = vadd.f32 %v1057_v6, %v1009_v3  ;;  %v1010_v9 = vpop.f32.mrf.mxu1  ;;  %v590_v3 = vld [vmem:[#allocation2 + $0x70] sm:$0xff]  ;;  %v586_v6 = vld [vmem:[#allocation2 + $0x20] sm:$0xff] }
 0x158   : > { %v1011_v11 = vadd.f32 %v1010_v9, %v961_v8 }
 0x159   : > { %v1094_v10 = vadd.f32 %v1058_v7, %v579_v5 }
 0x15b   : > { %1110 = vst [vmem:[#allocation2 + $0x58] sm:$0xff] %v1094_v10 }
 0x15c   : > { %v2346_v12 = vpop.f32.mrf.mxu3 }
 0x15e   : > { %v1059_v14 = vpop.f32.mrf.mxu2  ;;  %v964_v16 = vpop.f32.mrf.mxu0 }
 0x15f   : > { %v1060_v15 = vadd.f32 %v1059_v14, %v1011_v11  ;;  %v1013_v17 = vpop.f32.mrf.mxu1 }
 0x160   : > { %v1014_v19 = vadd.f32 %v1013_v17, %v964_v16  ;;  %v591_v16 = vld [vmem:[#allocation2 + $0x78] sm:$0xff] }
 0x161   : > { %v1095_v18 = vadd.f32 %v1060_v15, %v580_v13 }
 0x163   : > { %1111 = vst [vmem:[#allocation2 + $0x18] sm:$0xff] %v1095_v18  ;;  %v587_v18 = vld [vmem:[#allocation2 + $0x10] sm:$0xff] }
 0x164   : > { %v1033_v20 = vpop.f32.mrf.mxu3 }
 0x165   : > { %v1034_v53 = vadd.f32 %v1033_v20, %v2340_v52 }
 0x166   : > { %v1062_v23 = vpop.f32.mrf.mxu2  ;;  %v966_v24 = vpop.f32.mrf.mxu0 }
 0x167   : > { %v1063_v22 = vadd.f32 %v1062_v23, %v1014_v19  ;;  %v1015_v25 = vpop.f32.mrf.mxu1 }
 0x168   : > { %v1016_v27 = vadd.f32 %v1015_v25, %v966_v24 }
 0x169   : > { %v1096_v26 = vadd.f32 %v1063_v22, %v581_v21 }
 0x16b   : > { %1112 = vst [vmem:[#allocation2 + $0x50] sm:$0xff] %v1096_v26 }
 0x16c   : > { %v1035_v28 = vpop.f32.mrf.mxu3 }
 0x16d   : > { %v1036_v1 = vadd.f32 %v1035_v28, %v2342_v60 }
 0x16e   : > { %v1064_v30 = vpop.f32.mrf.mxu2  ;;  %v969_v32 = vpop.f32.mrf.mxu0 }
 0x16f   : > { %v1065_v31 = vadd.f32 %v1064_v30, %v1016_v27  ;;  %v1018_v33 = vpop.f32.mrf.mxu1  ;;  %v592_v27 = vld [vmem:[#allocation2 + $0x28] sm:$0xff] }
 0x170   : > { %v1019_v35 = vadd.f32 %v1018_v33, %v969_v32 }
 0x171   : > { %v1097_v34 = vadd.f32 %v1065_v31, %v582_v29  ;;  %v588_v29 = vld [vmem:[#allocation2 + $0x38] sm:$0xff] }
 0x173   : > { %1113 = vst [vmem:[#allocation2 + $0x68] sm:$0xff] %v1097_v34 }
 0x174   : > { %v1038_v36 = vpop.f32.mrf.mxu3 }
 0x175   : > { %v1039_v15 = vadd.f32 %v1038_v36, %v2344_v4 }
 0x176   : > { %v1067_v38 = vpop.f32.mrf.mxu2  ;;  %v971_v41 = vpop.f32.mrf.mxu0 }
 0x177   : > { %v1068_v39 = vadd.f32 %v1067_v38, %v1019_v35  ;;  %v1020_v40 = vpop.f32.mrf.mxu1 }
 0x178   : > { %v1021_v43 = vadd.f32 %v1020_v40, %v971_v41 }
 0x179   : > { %v1098_v42 = vadd.f32 %v1068_v39, %v583_v37 }
 0x17b   : > { %1114 = vst [vmem:[#allocation2 + $0x8] sm:$0xff] %v1098_v42 }
 0x17c   : > { %v1040_v44 = vpop.f32.mrf.mxu3 }
 0x17d   : > { %v1041_v25 = vadd.f32 %v1040_v44, %v2346_v12 }
 0x17e   : > { %v1069_v46 = vpop.f32.mrf.mxu2  ;;  %v974_v48 = vpop.f32.mrf.mxu0 }
 0x17f   : > { %v1070_v47 = vadd.f32 %v1069_v46, %v1021_v43  ;;  %v1023_v49 = vpop.f32.mrf.mxu1 }
 0x180   : > { %v1024_v51 = vadd.f32 %v1023_v49, %v974_v48 }
 0x181   : > { %v1099_v50 = vadd.f32 %v1070_v47, %v584_v45 }
 0x183   : > { %1115 = vst [vmem:[#allocation2 + $0x48] sm:$0xff] %v1099_v50 }
 0x184   : > { %v1082_v55 = vpop.f32.mrf.mxu3 }
 0x185   : > { %v1083_v58 = vadd.f32 %v1082_v55, %v1034_v53 }
 0x186   : > { %v1072_v57 = vpop.f32.mrf.mxu2  ;;  %v976_v61 = vpop.f32.mrf.mxu0 }
 0x187   : > { %v1073_v59 = vadd.f32 %v1072_v57, %v1024_v51  ;;  %v1104_v62 = vadd.f32 %v1083_v58, %v589_v54  ;;  %v1025_v63 = vpop.f32.mrf.mxu1 }
 0x188   : > { %v1026_v2 = vadd.f32 %v1025_v63, %v976_v61 }
 0x189   : > { %v1100_v0 = vadd.f32 %v1073_v59, %v585_v56  ;;  %1120 = vst [vmem:[#allocation2 + $0x60] sm:$0xff] %v1104_v62 }
 0x18b   : > { %1116 = vst [vmem:[#allocation2 + $0x40] sm:$0xff] %v1100_v0 }
 0x18c   : > { %v1084_v5 = vpop.f32.mrf.mxu3 }
 0x18d   : > { %v1085_v52 = vadd.f32 %v1084_v5, %v1036_v1 }
 0x18e   : > { %v1074_v7 = vpop.f32.mrf.mxu2  ;;  %v979_v10 = vpop.f32.mrf.mxu0 }
 0x18f   : > { %v1075_v8 = vadd.f32 %v1074_v7, %v1026_v2  ;;  %v1105_v9 = vadd.f32 %v1085_v52, %v590_v3  ;;  %v1028_v11 = vpop.f32.mrf.mxu1 }
 0x190   : > { %v1029_v14 = vadd.f32 %v1028_v11, %v979_v10 }
 0x191   : > { %v1101_v13 = vadd.f32 %v1075_v8, %v586_v6  ;;  %1121 = vst [vmem:[#allocation2 + $0x70] sm:$0xff] %v1105_v9 }
 0x193   : > { %1117 = vst [vmem:[#allocation2 + $0x20] sm:$0xff] %v1101_v13 }
 0x194   : > { %v1087_v17 = vpop.f32.mrf.mxu3 }
 0x195   : > { %v1088_v19 = vadd.f32 %v1087_v17, %v1039_v15 }
 0x196   : > { %v1077_v60 = vpop.f32.mrf.mxu2  ;;  %v981_v22 = vpop.f32.mrf.mxu0 }
 0x197   : > { %v1078_v20 = vadd.f32 %v1077_v60, %v1029_v14  ;;  %v1106_v21 = vadd.f32 %v1088_v19, %v591_v16  ;;  %v1030_v24 = vpop.f32.mrf.mxu1 }
 0x198   : > { %v1031_v26 = vadd.f32 %v1030_v24, %v981_v22 }
 0x199   : > { %v1102_v23 = vadd.f32 %v1078_v20, %v587_v18  ;;  %1122 = vst [vmem:[#allocation2 + $0x78] sm:$0xff] %v1106_v21 }
 0x19b   : > { %1118 = vst [vmem:[#allocation2 + $0x10] sm:$0xff] %v1102_v23 }
 0x19c   : > { %v1089_v28 = vpop.f32.mrf.mxu3 }
 0x19d   : > { %v1090_v4 = vadd.f32 %v1089_v28, %v1041_v25 }
 0x19e   : > { %v1079_v30 = vpop.f32.mrf.mxu2 }
 0x19f   : > { %v1080_v31 = vadd.f32 %v1079_v30, %v1031_v26  ;;  %v1107_v32 = vadd.f32 %v1090_v4, %v592_v27  ;;  %1127 = sbr.rel (%p1643_p5) target bundleno = 441 (0x1b9), region = 107 }
 0x1a1   : > { %v1103_v33 = vadd.f32 %v1080_v31, %v588_v29  ;;  %1123 = vst [vmem:[#allocation2 + $0x28] sm:$0xff] %v1107_v32 }
 0x1a3   : > { %1119 = vst [vmem:[#allocation2 + $0x38] sm:$0xff] %v1103_v33 }
 0x1a4   : > { %v1128_v34 = vld [vmem:[#allocation2 + $0x30] sm:$0xff]  ;;  %v1816_v12 = vld [vmem:[%s555_s4] ss:$0 sm:$0xff]  ;;  %v1130_v36 = vld [vmem:[#allocation2 + $0x58] sm:$0xff] }
 0x1a5   : > { %v1129_v35 = vld [vmem:[#allocation2] sm:$0xff]  ;;  %v1131_v37 = vld [vmem:[#allocation2 + $0x18] sm:$0xff]  ;;  %v1148_v38 = vadd.f32 %v1816_v12, %v1128_v34  ;;  %v1150_v41 = vadd.f32 %v1816_v12, %v1130_v36  ;;  %v1132_v42 = vld [vmem:[#allocation2 + $0x50] sm:$0xff] }
 0x1a6   : > { %v1149_v39 = vadd.f32 %v1816_v12, %v1129_v35  ;;  %v1151_v40 = vadd.f32 %v1816_v12, %v1131_v37  ;;  %v1133_v43 = vld [vmem:[#allocation2 + $0x68] sm:$0xff]  ;;  %v1152_v45 = vadd.f32 %v1816_v12, %v1132_v42  ;;  %v1136_v48 = vld [vmem:[#allocation2 + $0x40] sm:$0xff]  ;;  %v1138_v57 = vld [vmem:[#allocation2 + $0x10] sm:$0xff] }
 0x1a7   : > { %v1134_v44 = vld [vmem:[#allocation2 + $0x8] sm:$0xff]  ;;  %v1153_v46 = vadd.f32 %v1816_v12, %v1133_v43  ;;  %v1164_v49 = vmax.f32 %v1148_v38, 0.0  ;;  %v1166_v51 = vmax.f32 %v1150_v41, 0.0  ;;  %v1137_v54 = vld [vmem:[#allocation2 + $0x20] sm:$0xff]  ;;  %v1156_v59 = vadd.f32 %v1816_v12, %v1136_v48  ;;  %v1141_v3 = vld [vmem:[#allocation2 + $0x70] sm:$0xff] }
 0x1a8   : > { %v1135_v47 = vld [vmem:[#allocation2 + $0x48] sm:$0xff]  ;;  %v1165_v50 = vmax.f32 %v1149_v39, 0.0  ;;  %v1154_v53 = vadd.f32 %v1816_v12, %v1134_v44  ;;  %v1167_v55 = vmax.f32 %v1151_v40, 0.0  ;;  %v1168_v58 = vmax.f32 %v1152_v45, 0.0  ;;  %v1140_v0 = vld [vmem:[#allocation2 + $0x60] sm:$0xff]  ;;  %v1142_v7 = vld [vmem:[#allocation2 + $0x78] sm:$0xff] }
 0x1a9   : > { %v1155_v56 = vadd.f32 %v1816_v12, %v1135_v47  ;;  %1180 = vst [vmem:[%s2225_s25] sm:$0xff] %v1164_v49  ;;  %v1169_v62 = vmax.f32 %v1153_v46, 0.0  ;;  %v1157_v63 = vadd.f32 %v1816_v12, %v1137_v54  ;;  %v1158_v2 = vadd.f32 %v1816_v12, %v1138_v57  ;;  %v1143_v9 = vld [vmem:[#allocation2 + $0x28] sm:$0xff] }
 0x1aa   : > { %v1139_v61 = vld [vmem:[#allocation2 + $0x38] sm:$0xff]  ;;  %1181 = vst [vmem:[%s2225_s25 + $0x8] sm:$0xff] %v1165_v50  ;;  %v1170_v1 = vmax.f32 %v1154_v53, 0.0  ;;  %v1172_v52 = vmax.f32 %v1156_v59, 0.0  ;;  %v1160_v8 = vadd.f32 %v1816_v12, %v1140_v0  ;;  %v1161_v11 = vadd.f32 %v1816_v12, %v1141_v3 }
 0x1ab   : > { %1182 = vst [vmem:[%s2225_s25 + $0x10] sm:$0xff] %v1166_v51  ;;  %v1171_v5 = vmax.f32 %v1155_v56, 0.0  ;;  %v1159_v6 = vadd.f32 %v1816_v12, %v1139_v61  ;;  %v1173_v10 = vmax.f32 %v1157_v63, 0.0  ;;  %v1174_v13 = vmax.f32 %v1158_v2, 0.0 }
 0x1ac   : > { %1183 = vst [vmem:[%s2225_s25 + $0x18] sm:$0xff] %v1167_v55  ;;  %v1162_v14 = vadd.f32 %v1816_v12, %v1142_v7  ;;  %v1163_v16 = vadd.f32 %v1816_v12, %v1143_v9  ;;  %v1176_v17 = vmax.f32 %v1160_v8, 0.0  ;;  %v1177_v18 = vmax.f32 %v1161_v11, 0.0 }
 0x1ad   : > { %1184 = vst [vmem:[%s2225_s25 + $0x20] sm:$0xff] %v1168_v58  ;;  %v1175_v15 = vmax.f32 %v1159_v6, 0.0 }
 0x1ae   : > { %1185 = vst [vmem:[%s2225_s25 + $0x28] sm:$0xff] %v1169_v62  ;;  %v1178_v60 = vmax.f32 %v1162_v14, 0.0  ;;  %v1179_v19 = vmax.f32 %v1163_v16, 0.0 }
 0x1af   : > { %1186 = vst [vmem:[%s2225_s25 + $0x30] sm:$0xff] %v1170_v1 }
 0x1b0   : > { %1187 = vst [vmem:[%s2225_s25 + $0x38] sm:$0xff] %v1171_v5 }
 0x1b1   : > { %1188 = vst [vmem:[%s2225_s25 + $0x40] sm:$0xff] %v1172_v52 }
 0x1b2   : > { %1189 = vst [vmem:[%s2225_s25 + $0x48] sm:$0xff] %v1173_v10 }
 0x1b3   : > { %1190 = vst [vmem:[%s2225_s25 + $0x50] sm:$0xff] %v1174_v13 }
 0x1b4   : > { %1191 = vst [vmem:[%s2225_s25 + $0x58] sm:$0xff] %v1175_v15 }
 0x1b5   : > { %1192 = vst [vmem:[%s2225_s25 + $0x60] sm:$0xff] %v1176_v17 }
 0x1b6   : > { %1193 = vst [vmem:[%s2225_s25 + $0x68] sm:$0xff] %v1177_v18 }
 0x1b7   : > { %1194 = vst [vmem:[%s2225_s25 + $0x70] sm:$0xff] %v1178_v60 }
 0x1b8   : > { %1195 = vst [vmem:[%s2225_s25 + $0x78] sm:$0xff] %v1179_v19 }
 0x1b9 PF: > { %1202 = sbr.rel (!%p2020_p12) target bundleno = 459 (0x1cb), region = 111  ;;  %s1645_s14 = sshll.u32 (%p2020_p12), %s1891_s19, 3  ;;  %v1266_v20 = vld [vmem:[%s2225_s25] sm:$0xff] (%p2020_p12)  ;;  %v1268_v21 = vld [vmem:[%s2225_s25 + $0x8] sm:$0xff] (%p2020_p12)  ;;  %v1270_v23 = vld [vmem:[%s2225_s25 + $0x10] sm:$0xff] (%p2020_p12) }
 0x1ba   : > { %s1207_s5 = scalar_lea.vmem (%p2020_p12), %s2432_s3, %s1645_s14  ;;  %v1272_v22 = vld [vmem:[%s2225_s25 + $0x18] sm:$0xff] (%p2020_p12)  ;;  %v1274_v24 = vld [vmem:[%s2225_s25 + $0x20] sm:$0xff] (%p2020_p12)  ;;  %v1276_v25 = vld [vmem:[%s2225_s25 + $0x28] sm:$0xff] (%p2020_p12) }
 0x1bb   : > { %1267 = vst [vmem:[%s1207_s5] sm:$0xff] (%p2020_p12), %v1266_v20  ;;  %v1278_v26 = vld [vmem:[%s2225_s25 + $0x30] sm:$0xff] (%p2020_p12)  ;;  %v1280_v27 = vld [vmem:[%s2225_s25 + $0x38] sm:$0xff] (%p2020_p12)  ;;  %v1282_v28 = vld [vmem:[%s2225_s25 + $0x40] sm:$0xff] (%p2020_p12) }
 0x1bc   : > { %1269 = vst [vmem:[%s1207_s5 + $0x18] sm:$0xff] (%p2020_p12), %v1268_v21  ;;  %v1284_v29 = vld [vmem:[%s2225_s25 + $0x48] sm:$0xff] (%p2020_p12)  ;;  %v1286_v30 = vld [vmem:[%s2225_s25 + $0x50] sm:$0xff] (%p2020_p12)  ;;  %v1288_v4 = vld [vmem:[%s2225_s25 + $0x58] sm:$0xff] (%p2020_p12) }
 0x1bd   : > { %1271 = vst [vmem:[%s1207_s5 + $0x30] sm:$0xff] (%p2020_p12), %v1270_v23  ;;  %v1290_v31 = vld [vmem:[%s2225_s25 + $0x60] sm:$0xff] (%p2020_p12)  ;;  %v1292_v32 = vld [vmem:[%s2225_s25 + $0x68] sm:$0xff] (%p2020_p12) }
 0x1be   : > { %1273 = vst [vmem:[%s1207_s5 + $0x48] sm:$0xff] %v1272_v22  ;;  %v1294_v33 = vld [vmem:[%s2225_s25 + $0x70] sm:$0xff] }
 0x1bf   : > { %1275 = vst [vmem:[%s1207_s5 + $0x60] sm:$0xff] %v1274_v24  ;;  %v1296_v34 = vld [vmem:[%s2225_s25 + $0x78] sm:$0xff] }
 0x1c0   : > { %1277 = vst [vmem:[%s1207_s5 + $0x78] sm:$0xff] %v1276_v25 }
 0x1c1   : > { %1279 = vst [vmem:[%s1207_s5 + $0x90] sm:$0xff] %v1278_v26 }
 0x1c2   : > { %1281 = vst [vmem:[%s1207_s5 + $0xa8] sm:$0xff] %v1280_v27 }
 0x1c3   : > { %1283 = vst [vmem:[%s1207_s5 + $0xc0] sm:$0xff] %v1282_v28 }
 0x1c4   : > { %1285 = vst [vmem:[%s1207_s5 + $0xd8] sm:$0xff] %v1284_v29 }
 0x1c5   : > { %1287 = vst [vmem:[%s1207_s5 + $0xf0] sm:$0xff] %v1286_v30 }
 0x1c6   : > { %1289 = vst [vmem:[%s1207_s5 + $0x108] sm:$0xff] %v1288_v4 }
 0x1c7   : > { %1291 = vst [vmem:[%s1207_s5 + $0x120] sm:$0xff] %v1290_v31 }
 0x1c8   : > { %1293 = vst [vmem:[%s1207_s5 + $0x138] sm:$0xff] %v1292_v32 }
 0x1c9   : > { %1295 = vst [vmem:[%s1207_s5 + $0x150] sm:$0xff] %v1294_v33 }
 0x1ca   : > { %1297 = vst [vmem:[%s1207_s5 + $0x168] sm:$0xff] %v1296_v34 }
 0x1cb PF: > { %s13_s22 = sadd.s32 1, %s1903_s22   ;;  %s2442_s10 = sld [smem:[#allocation6_spill]] }
 0x1cc   : > { %p10_p6 = scmp.ge.s32.totalorder %s13_s22, 20   ;;  %s2443_s12 = smov %s1867_s13 }
 0x1cd   : > { %s2444_s13 = smov %s2018_s9  ;;  %s2445_s14 = smov %s1875_s15 }
 0x1ce   : > { %s2446_s15 = smov %s2015_s8  ;;  %s2447_s16 = smov %s1883_s17 }
 0x1cf   : > { %s2448_s17 = smov %s2001_s30  ;;  %s2449_s18 = smov %s1895_s20 }
 0x1d0   : > { %s2450_s19 = smov %s1899_s21  ;;  %s2451_s20 = smov %s2454_s24 }
 0x1d1   : > { %s2452_s21 = smov %s2442_s10  ;;  %12 = sbr.rel (!%p10_p6) target bundleno = 9 (0x9), region = 197 }

// kernel: _lambda_.6
= control target key start
LH: loop header
LB: loop body
LE: loop exit
PB: predicated region body
PF: predicated region fallthrough
CT: control target
= control target key end

     0   :  { %s790_s0 = inlined_call_operand.vmem [shape: f32[9,128,128], index: 0, kind: input, shape index: {}]   ;;  %s791_s1 = inlined_call_operand.vmem [shape: f32[128,128], index: 1, kind: output, shape index: {}]  }
   0x1   :  { %v8_v0 = vld [vmem:[%s790_s0] sm:$0xff]  ;;  %v9_v6 = vld [vmem:[%s790_s0 + $0x8] sm:$0xff]  ;;  %v10_v15 = vld [vmem:[%s790_s0 + $0x10] sm:$0xff] }
   0x2   :  { %v24_v1 = vld [vmem:[%s790_s0 + $0x80] sm:$0xff]  ;;  %v25_v7 = vld [vmem:[%s790_s0 + $0x88] sm:$0xff]  ;;  %v26_v16 = vld [vmem:[%s790_s0 + $0x90] sm:$0xff] }
   0x3   :  { %v40_v2 = vld [vmem:[%s790_s0 + $0x100] sm:$0xff]  ;;  %v152_v3 = vmax.f32 %v8_v0, %v24_v1  ;;  %v41_v8 = vld [vmem:[%s790_s0 + $0x108] sm:$0xff]  ;;  %v160_v10 = vmax.f32 %v9_v6, %v25_v7  ;;  %v42_v17 = vld [vmem:[%s790_s0 + $0x110] sm:$0xff]  ;;  %v168_v20 = vmax.f32 %v10_v15, %v26_v16 }
   0x4   :  { %v56_v4 = vld [vmem:[%s790_s0 + $0x180] sm:$0xff]  ;;  %v57_v13 = vld [vmem:[%s790_s0 + $0x188] sm:$0xff]  ;;  %v58_v24 = vld [vmem:[%s790_s0 + $0x190] sm:$0xff] }
   0x5   :  { %v153_v5 = vmax.f32 %v152_v3, %v40_v2  ;;  %v72_v9 = vld [vmem:[%s790_s0 + $0x200] sm:$0xff]  ;;  %v161_v14 = vmax.f32 %v160_v10, %v41_v8  ;;  %v73_v19 = vld [vmem:[%s790_s0 + $0x208] sm:$0xff]  ;;  %v169_v26 = vmax.f32 %v168_v20, %v42_v17  ;;  %v11_v27 = vld [vmem:[%s790_s0 + $0x18] sm:$0xff] }
   0x6   :  { %v88_v11 = vld [vmem:[%s790_s0 + $0x280] sm:$0xff]  ;;  %v89_v22 = vld [vmem:[%s790_s0 + $0x288] sm:$0xff]  ;;  %v27_v28 = vld [vmem:[%s790_s0 + $0x98] sm:$0xff] }
   0x7   :  { %v154_v12 = vmax.f32 %v153_v5, %v56_v4  ;;  %v104_v21 = vld [vmem:[%s790_s0 + $0x300] sm:$0xff]  ;;  %v162_v23 = vmax.f32 %v161_v14, %v57_v13  ;;  %v43_v29 = vld [vmem:[%s790_s0 + $0x118] sm:$0xff]  ;;  %v74_v33 = vld [vmem:[%s790_s0 + $0x210] sm:$0xff]  ;;  %v176_v34 = vmax.f32 %v11_v27, %v27_v28  ;;  %v170_v38 = vmax.f32 %v169_v26, %v58_v24 }
   0x8   :  { %v120_v30 = vld [vmem:[%s790_s0 + $0x380] sm:$0xff]  ;;  %v105_v36 = vld [vmem:[%s790_s0 + $0x308] sm:$0xff]  ;;  %v90_v37 = vld [vmem:[%s790_s0 + $0x290] sm:$0xff] }
   0x9   :  { %v155_v18 = vmax.f32 %v154_v12, %v72_v9  ;;  %v136_v31 = vld [vmem:[%s790_s0 + $0x400] sm:$0xff]  ;;  %v163_v32 = vmax.f32 %v162_v23, %v73_v19  ;;  %v59_v39 = vld [vmem:[%s790_s0 + $0x198] sm:$0xff]  ;;  %v177_v41 = vmax.f32 %v176_v34, %v43_v29  ;;  %v121_v46 = vld [vmem:[%s790_s0 + $0x388] sm:$0xff]  ;;  %v171_v48 = vmax.f32 %v170_v38, %v74_v33 }
   0xa   :  { %v12_v42 = vld [vmem:[%s790_s0 + $0x20] sm:$0xff]  ;;  %v137_v47 = vld [vmem:[%s790_s0 + $0x408] sm:$0xff]  ;;  %v75_v49 = vld [vmem:[%s790_s0 + $0x218] sm:$0xff] }
   0xb   :  { %v156_v25 = vmax.f32 %v155_v18, %v88_v11  ;;  %v164_v40 = vmax.f32 %v163_v32, %v89_v22  ;;  %v28_v43 = vld [vmem:[%s790_s0 + $0xa0] sm:$0xff]  ;;  %v106_v52 = vld [vmem:[%s790_s0 + $0x310] sm:$0xff]  ;;  %v91_v53 = vld [vmem:[%s790_s0 + $0x298] sm:$0xff]  ;;  %v178_v54 = vmax.f32 %v177_v41, %v59_v39  ;;  %v172_v57 = vmax.f32 %v171_v48, %v90_v37 }
   0xc   :  { %v44_v44 = vld [vmem:[%s790_s0 + $0x120] sm:$0xff]  ;;  %v184_v50 = vmax.f32 %v12_v42, %v28_v43  ;;  %v13_v59 = vld [vmem:[%s790_s0 + $0x28] sm:$0xff]  ;;  %v122_v63 = vld [vmem:[%s790_s0 + $0x390] sm:$0xff] }
   0xd   :  { %v157_v35 = vmax.f32 %v156_v25, %v104_v21  ;;  %v165_v51 = vmax.f32 %v164_v40, %v105_v36  ;;  %v60_v55 = vld [vmem:[%s790_s0 + $0x1a0] sm:$0xff]  ;;  %v29_v60 = vld [vmem:[%s790_s0 + $0xa8] sm:$0xff]  ;;  %v138_v0 = vld [vmem:[%s790_s0 + $0x410] sm:$0xff]  ;;  %v179_v1 = vmax.f32 %v178_v54, %v75_v49  ;;  %v173_v4 = vmax.f32 %v172_v57, %v106_v52 }
   0xe   :  { %v185_v58 = vmax.f32 %v184_v50, %v44_v44  ;;  %v45_v61 = vld [vmem:[%s790_s0 + $0x128] sm:$0xff]  ;;  %v76_v2 = vld [vmem:[%s790_s0 + $0x220] sm:$0xff]  ;;  %v192_v3 = vmax.f32 %v13_v59, %v29_v60  ;;  %v107_v5 = vld [vmem:[%s790_s0 + $0x318] sm:$0xff] }
   0xf   :  { %v158_v45 = vmax.f32 %v157_v35, %v120_v30  ;;  %v166_v62 = vmax.f32 %v165_v51, %v121_v46  ;;  %v92_v6 = vld [vmem:[%s790_s0 + $0x2a0] sm:$0xff]  ;;  %v61_v8 = vld [vmem:[%s790_s0 + $0x1a8] sm:$0xff]  ;;  %v180_v10 = vmax.f32 %v179_v1, %v91_v53  ;;  %v14_v12 = vld [vmem:[%s790_s0 + $0x30] sm:$0xff]  ;;  %v174_v15 = vmax.f32 %v173_v4, %v122_v63 }
  0x10   :  { %v186_v7 = vmax.f32 %v185_v58, %v60_v55  ;;  %v193_v11 = vmax.f32 %v192_v3, %v45_v61  ;;  %v30_v13 = vld [vmem:[%s790_s0 + $0xb0] sm:$0xff]  ;;  %v123_v16 = vld [vmem:[%s790_s0 + $0x398] sm:$0xff]  ;;  %v77_v19 = vld [vmem:[%s790_s0 + $0x228] sm:$0xff] }
  0x11   :  { %v159_v56 = vmax.f32 %v158_v45, %v136_v31  ;;  %v167_v9 = vmax.f32 %v166_v62, %v137_v47  ;;  %v46_v14 = vld [vmem:[%s790_s0 + $0x130] sm:$0xff]  ;;  %v139_v17 = vld [vmem:[%s790_s0 + $0x418] sm:$0xff]  ;;  %v200_v20 = vmax.f32 %v14_v12, %v30_v13  ;;  %v181_v21 = vmax.f32 %v180_v10, %v107_v5  ;;  %v108_v22 = vld [vmem:[%s790_s0 + $0x320] sm:$0xff] }
  0x12   :  { %v187_v18 = vmax.f32 %v186_v7, %v76_v2  ;;  %v93_v23 = vld [vmem:[%s790_s0 + $0x2a8] sm:$0xff]  ;;  %v194_v24 = vmax.f32 %v193_v11, %v61_v8  ;;  %v62_v25 = vld [vmem:[%s790_s0 + $0x1b0] sm:$0xff]  ;;  %v175_v26 = vmax.f32 %v174_v15, %v138_v0  ;;  %v15_v29 = vld [vmem:[%s790_s0 + $0x38] sm:$0xff] }
  0x13   :  { %280 = vst [vmem:[%s791_s1] sm:$0xff] %v159_v56  ;;  %v201_v28 = vmax.f32 %v200_v20, %v46_v14  ;;  %v31_v30 = vld [vmem:[%s790_s0 + $0xb8] sm:$0xff]  ;;  %v182_v32 = vmax.f32 %v181_v21, %v123_v16  ;;  %v124_v33 = vld [vmem:[%s790_s0 + $0x3a0] sm:$0xff]  ;;  %v78_v36 = vld [vmem:[%s790_s0 + $0x230] sm:$0xff] }
  0x14   :  { %281 = vst [vmem:[%s791_s1 + $0x8] sm:$0xff] %v167_v9  ;;  %v188_v27 = vmax.f32 %v187_v18, %v92_v6  ;;  %v47_v31 = vld [vmem:[%s790_s0 + $0x138] sm:$0xff]  ;;  %v140_v34 = vld [vmem:[%s790_s0 + $0x420] sm:$0xff]  ;;  %v195_v35 = vmax.f32 %v194_v24, %v77_v19  ;;  %v208_v37 = vmax.f32 %v15_v29, %v31_v30  ;;  %v109_v39 = vld [vmem:[%s790_s0 + $0x328] sm:$0xff] }
  0x15   :  { %282 = vst [vmem:[%s791_s1 + $0x10] sm:$0xff] %v175_v26  ;;  %v94_v40 = vld [vmem:[%s790_s0 + $0x2b0] sm:$0xff]  ;;  %v202_v41 = vmax.f32 %v201_v28, %v62_v25  ;;  %v63_v42 = vld [vmem:[%s790_s0 + $0x1b8] sm:$0xff]  ;;  %v183_v43 = vmax.f32 %v182_v32, %v139_v17  ;;  %v16_v46 = vld [vmem:[%s790_s0 + $0x40] sm:$0xff] }
  0x16   :  { %v189_v38 = vmax.f32 %v188_v27, %v108_v22  ;;  %v196_v44 = vmax.f32 %v195_v35, %v93_v23  ;;  %v209_v45 = vmax.f32 %v208_v37, %v47_v31  ;;  %v32_v47 = vld [vmem:[%s790_s0 + $0xc0] sm:$0xff]  ;;  %v125_v50 = vld [vmem:[%s790_s0 + $0x3a8] sm:$0xff]  ;;  %v79_v53 = vld [vmem:[%s790_s0 + $0x238] sm:$0xff] }
  0x17   :  { %v48_v48 = vld [vmem:[%s790_s0 + $0x140] sm:$0xff]  ;;  %v141_v51 = vld [vmem:[%s790_s0 + $0x428] sm:$0xff]  ;;  %v203_v52 = vmax.f32 %v202_v41, %v78_v36  ;;  %v216_v54 = vmax.f32 %v16_v46, %v32_v47  ;;  %283 = vst [vmem:[%s791_s1 + $0x18] sm:$0xff] %v183_v43  ;;  %v110_v56 = vld [vmem:[%s790_s0 + $0x330] sm:$0xff] }
  0x18   :  { %v190_v49 = vmax.f32 %v189_v38, %v124_v33  ;;  %v197_v55 = vmax.f32 %v196_v44, %v109_v39  ;;  %v95_v57 = vld [vmem:[%s790_s0 + $0x2b8] sm:$0xff]  ;;  %v210_v58 = vmax.f32 %v209_v45, %v63_v42  ;;  %v64_v59 = vld [vmem:[%s790_s0 + $0x1c0] sm:$0xff]  ;;  %v17_v63 = vld [vmem:[%s790_s0 + $0x48] sm:$0xff] }
  0x19   :  { %v204_v61 = vmax.f32 %v203_v52, %v94_v40  ;;  %v217_v62 = vmax.f32 %v216_v54, %v48_v48  ;;  %v33_v0 = vld [vmem:[%s790_s0 + $0xc8] sm:$0xff]  ;;  %v126_v3 = vld [vmem:[%s790_s0 + $0x3b0] sm:$0xff]  ;;  %v80_v6 = vld [vmem:[%s790_s0 + $0x240] sm:$0xff] }
  0x1a   :  { %v191_v60 = vmax.f32 %v190_v49, %v140_v34  ;;  %v49_v1 = vld [vmem:[%s790_s0 + $0x148] sm:$0xff]  ;;  %v198_v2 = vmax.f32 %v197_v55, %v125_v50  ;;  %v142_v4 = vld [vmem:[%s790_s0 + $0x430] sm:$0xff]  ;;  %v211_v5 = vmax.f32 %v210_v58, %v79_v53  ;;  %v224_v7 = vmax.f32 %v17_v63, %v33_v0  ;;  %v111_v9 = vld [vmem:[%s790_s0 + $0x338] sm:$0xff] }
  0x1b   :  { %v205_v8 = vmax.f32 %v204_v61, %v110_v56  ;;  %v96_v10 = vld [vmem:[%s790_s0 + $0x2c0] sm:$0xff]  ;;  %v218_v11 = vmax.f32 %v217_v62, %v64_v59  ;;  %v65_v12 = vld [vmem:[%s790_s0 + $0x1c8] sm:$0xff]  ;;  %v18_v16 = vld [vmem:[%s790_s0 + $0x50] sm:$0xff] }
  0x1c   :  { %284 = vst [vmem:[%s791_s1 + $0x20] sm:$0xff] %v191_v60  ;;  %v199_v13 = vmax.f32 %v198_v2, %v141_v51  ;;  %v212_v14 = vmax.f32 %v211_v5, %v95_v57  ;;  %v225_v15 = vmax.f32 %v224_v7, %v49_v1  ;;  %v34_v17 = vld [vmem:[%s790_s0 + $0xd0] sm:$0xff]  ;;  %v127_v20 = vld [vmem:[%s790_s0 + $0x3b8] sm:$0xff]  ;;  %v81_v23 = vld [vmem:[%s790_s0 + $0x248] sm:$0xff] }
  0x1d   :  { %v50_v18 = vld [vmem:[%s790_s0 + $0x150] sm:$0xff]  ;;  %v206_v19 = vmax.f32 %v205_v8, %v126_v3  ;;  %v143_v21 = vld [vmem:[%s790_s0 + $0x438] sm:$0xff]  ;;  %v219_v22 = vmax.f32 %v218_v11, %v80_v6  ;;  %v232_v24 = vmax.f32 %v18_v16, %v34_v17  ;;  %v112_v26 = vld [vmem:[%s790_s0 + $0x340] sm:$0xff] }
  0x1e   :  { %285 = vst [vmem:[%s791_s1 + $0x28] sm:$0xff] %v199_v13  ;;  %v213_v25 = vmax.f32 %v212_v14, %v111_v9  ;;  %v97_v27 = vld [vmem:[%s790_s0 + $0x2c8] sm:$0xff]  ;;  %v226_v28 = vmax.f32 %v225_v15, %v65_v12  ;;  %v66_v29 = vld [vmem:[%s790_s0 + $0x1d0] sm:$0xff]  ;;  %v19_v33 = vld [vmem:[%s790_s0 + $0x58] sm:$0xff] }
  0x1f   :  { %v207_v30 = vmax.f32 %v206_v19, %v142_v4  ;;  %v220_v31 = vmax.f32 %v219_v22, %v96_v10  ;;  %v233_v32 = vmax.f32 %v232_v24, %v50_v18  ;;  %v35_v34 = vld [vmem:[%s790_s0 + $0xd8] sm:$0xff]  ;;  %v128_v37 = vld [vmem:[%s790_s0 + $0x3c0] sm:$0xff]  ;;  %v82_v40 = vld [vmem:[%s790_s0 + $0x250] sm:$0xff] }
  0x20   :  { %v51_v35 = vld [vmem:[%s790_s0 + $0x158] sm:$0xff]  ;;  %v214_v36 = vmax.f32 %v213_v25, %v127_v20  ;;  %v144_v38 = vld [vmem:[%s790_s0 + $0x440] sm:$0xff]  ;;  %v227_v39 = vmax.f32 %v226_v28, %v81_v23  ;;  %v240_v41 = vmax.f32 %v19_v33, %v35_v34  ;;  %v113_v43 = vld [vmem:[%s790_s0 + $0x348] sm:$0xff] }
  0x21   :  { %286 = vst [vmem:[%s791_s1 + $0x30] sm:$0xff] %v207_v30  ;;  %v221_v42 = vmax.f32 %v220_v31, %v112_v26  ;;  %v98_v44 = vld [vmem:[%s790_s0 + $0x2d0] sm:$0xff]  ;;  %v234_v45 = vmax.f32 %v233_v32, %v66_v29  ;;  %v67_v46 = vld [vmem:[%s790_s0 + $0x1d8] sm:$0xff]  ;;  %v20_v50 = vld [vmem:[%s790_s0 + $0x60] sm:$0xff] }
  0x22   :  { %v215_v47 = vmax.f32 %v214_v36, %v143_v21  ;;  %v228_v48 = vmax.f32 %v227_v39, %v97_v27  ;;  %v241_v49 = vmax.f32 %v240_v41, %v51_v35  ;;  %v36_v51 = vld [vmem:[%s790_s0 + $0xe0] sm:$0xff]  ;;  %v129_v54 = vld [vmem:[%s790_s0 + $0x3c8] sm:$0xff]  ;;  %v83_v57 = vld [vmem:[%s790_s0 + $0x258] sm:$0xff] }
  0x23   :  { %v52_v52 = vld [vmem:[%s790_s0 + $0x160] sm:$0xff]  ;;  %v222_v53 = vmax.f32 %v221_v42, %v128_v37  ;;  %v145_v55 = vld [vmem:[%s790_s0 + $0x448] sm:$0xff]  ;;  %v235_v56 = vmax.f32 %v234_v45, %v82_v40  ;;  %v248_v58 = vmax.f32 %v20_v50, %v36_v51  ;;  %v114_v60 = vld [vmem:[%s790_s0 + $0x350] sm:$0xff] }
  0x24   :  { %287 = vst [vmem:[%s791_s1 + $0x38] sm:$0xff] %v215_v47  ;;  %v229_v59 = vmax.f32 %v228_v48, %v113_v43  ;;  %v99_v61 = vld [vmem:[%s790_s0 + $0x2d8] sm:$0xff]  ;;  %v242_v62 = vmax.f32 %v241_v49, %v67_v46  ;;  %v68_v63 = vld [vmem:[%s790_s0 + $0x1e0] sm:$0xff]  ;;  %v21_v3 = vld [vmem:[%s790_s0 + $0x68] sm:$0xff] }
  0x25   :  { %v223_v0 = vmax.f32 %v222_v53, %v144_v38  ;;  %v236_v1 = vmax.f32 %v235_v56, %v98_v44  ;;  %v249_v2 = vmax.f32 %v248_v58, %v52_v52  ;;  %v37_v4 = vld [vmem:[%s790_s0 + $0xe8] sm:$0xff]  ;;  %v130_v7 = vld [vmem:[%s790_s0 + $0x3d0] sm:$0xff]  ;;  %v84_v10 = vld [vmem:[%s790_s0 + $0x260] sm:$0xff] }
  0x26   :  { %v53_v5 = vld [vmem:[%s790_s0 + $0x168] sm:$0xff]  ;;  %v230_v6 = vmax.f32 %v229_v59, %v129_v54  ;;  %v146_v8 = vld [vmem:[%s790_s0 + $0x450] sm:$0xff]  ;;  %v243_v9 = vmax.f32 %v242_v62, %v83_v57  ;;  %v256_v11 = vmax.f32 %v21_v3, %v37_v4  ;;  %v115_v13 = vld [vmem:[%s790_s0 + $0x358] sm:$0xff] }
  0x27   :  { %288 = vst [vmem:[%s791_s1 + $0x40] sm:$0xff] %v223_v0  ;;  %v237_v12 = vmax.f32 %v236_v1, %v114_v60  ;;  %v100_v14 = vld [vmem:[%s790_s0 + $0x2e0] sm:$0xff]  ;;  %v250_v15 = vmax.f32 %v249_v2, %v68_v63  ;;  %v69_v16 = vld [vmem:[%s790_s0 + $0x1e8] sm:$0xff]  ;;  %v22_v20 = vld [vmem:[%s790_s0 + $0x70] sm:$0xff] }
  0x28   :  { %v231_v17 = vmax.f32 %v230_v6, %v145_v55  ;;  %v244_v18 = vmax.f32 %v243_v9, %v99_v61  ;;  %v257_v19 = vmax.f32 %v256_v11, %v53_v5  ;;  %v38_v21 = vld [vmem:[%s790_s0 + $0xf0] sm:$0xff]  ;;  %v131_v24 = vld [vmem:[%s790_s0 + $0x3d8] sm:$0xff]  ;;  %v85_v27 = vld [vmem:[%s790_s0 + $0x268] sm:$0xff] }
  0x29   :  { %v54_v22 = vld [vmem:[%s790_s0 + $0x170] sm:$0xff]  ;;  %v238_v23 = vmax.f32 %v237_v12, %v130_v7  ;;  %v147_v25 = vld [vmem:[%s790_s0 + $0x458] sm:$0xff]  ;;  %v251_v26 = vmax.f32 %v250_v15, %v84_v10  ;;  %v264_v28 = vmax.f32 %v22_v20, %v38_v21  ;;  %v116_v30 = vld [vmem:[%s790_s0 + $0x360] sm:$0xff] }
  0x2a   :  { %289 = vst [vmem:[%s791_s1 + $0x48] sm:$0xff] %v231_v17  ;;  %v245_v29 = vmax.f32 %v244_v18, %v115_v13  ;;  %v101_v31 = vld [vmem:[%s790_s0 + $0x2e8] sm:$0xff]  ;;  %v258_v32 = vmax.f32 %v257_v19, %v69_v16  ;;  %v70_v33 = vld [vmem:[%s790_s0 + $0x1f0] sm:$0xff]  ;;  %v23_v37 = vld [vmem:[%s790_s0 + $0x78] sm:$0xff] }
  0x2b   :  { %v239_v34 = vmax.f32 %v238_v23, %v146_v8  ;;  %v252_v35 = vmax.f32 %v251_v26, %v100_v14  ;;  %v265_v36 = vmax.f32 %v264_v28, %v54_v22  ;;  %v39_v38 = vld [vmem:[%s790_s0 + $0xf8] sm:$0xff]  ;;  %v132_v41 = vld [vmem:[%s790_s0 + $0x3e0] sm:$0xff]  ;;  %v86_v43 = vld [vmem:[%s790_s0 + $0x270] sm:$0xff] }
  0x2c   :  { %v55_v39 = vld [vmem:[%s790_s0 + $0x178] sm:$0xff]  ;;  %v246_v40 = vmax.f32 %v245_v29, %v131_v24  ;;  %v259_v42 = vmax.f32 %v258_v32, %v85_v27  ;;  %v272_v44 = vmax.f32 %v23_v37, %v39_v38  ;;  %v117_v46 = vld [vmem:[%s790_s0 + $0x368] sm:$0xff]  ;;  %v148_v50 = vld [vmem:[%s790_s0 + $0x460] sm:$0xff] }
  0x2d   :  { %290 = vst [vmem:[%s791_s1 + $0x50] sm:$0xff] %v239_v34  ;;  %v253_v45 = vmax.f32 %v252_v35, %v116_v30  ;;  %v266_v47 = vmax.f32 %v265_v36, %v70_v33  ;;  %v71_v48 = vld [vmem:[%s790_s0 + $0x1f8] sm:$0xff]  ;;  %v102_v52 = vld [vmem:[%s790_s0 + $0x2f0] sm:$0xff]  ;;  %v133_v55 = vld [vmem:[%s790_s0 + $0x3e8] sm:$0xff] }
  0x2e   :  { %v247_v49 = vmax.f32 %v246_v40, %v147_v25  ;;  %v260_v51 = vmax.f32 %v259_v42, %v101_v31  ;;  %v273_v53 = vmax.f32 %v272_v44, %v55_v39  ;;  %v87_v57 = vld [vmem:[%s790_s0 + $0x278] sm:$0xff]  ;;  %v118_v59 = vld [vmem:[%s790_s0 + $0x370] sm:$0xff]  ;;  %v149_v62 = vld [vmem:[%s790_s0 + $0x468] sm:$0xff] }
  0x2f   :  { %v254_v54 = vmax.f32 %v253_v45, %v132_v41  ;;  %v267_v56 = vmax.f32 %v266_v47, %v86_v43  ;;  %v103_v0 = vld [vmem:[%s790_s0 + $0x2f8] sm:$0xff]  ;;  %v134_v2 = vld [vmem:[%s790_s0 + $0x3f0] sm:$0xff] }
  0x30   :  { %291 = vst [vmem:[%s791_s1 + $0x58] sm:$0xff] %v247_v49  ;;  %v261_v58 = vmax.f32 %v260_v51, %v117_v46  ;;  %v274_v60 = vmax.f32 %v273_v53, %v71_v48  ;;  %v119_v5 = vld [vmem:[%s790_s0 + $0x378] sm:$0xff]  ;;  %v150_v7 = vld [vmem:[%s790_s0 + $0x470] sm:$0xff] }
  0x31   :  { %v255_v61 = vmax.f32 %v254_v54, %v148_v50  ;;  %v268_v63 = vmax.f32 %v267_v56, %v102_v52  ;;  %v135_v10 = vld [vmem:[%s790_s0 + $0x3f8] sm:$0xff] }
  0x32   :  { %v262_v1 = vmax.f32 %v261_v58, %v133_v55  ;;  %v275_v3 = vmax.f32 %v274_v60, %v87_v57  ;;  %v151_v13 = vld [vmem:[%s790_s0 + $0x478] sm:$0xff] }
  0x33   :  { %292 = vst [vmem:[%s791_s1 + $0x60] sm:$0xff] %v255_v61  ;;  %v269_v4 = vmax.f32 %v268_v63, %v118_v59 }
  0x34   :  { %v263_v6 = vmax.f32 %v262_v1, %v149_v62  ;;  %v276_v8 = vmax.f32 %v275_v3, %v103_v0 }
  0x35   :  { %v270_v9 = vmax.f32 %v269_v4, %v134_v2 }
  0x36   :  { %293 = vst [vmem:[%s791_s1 + $0x68] sm:$0xff] %v263_v6  ;;  %v277_v11 = vmax.f32 %v276_v8, %v119_v5 }
  0x37   :  { %v271_v12 = vmax.f32 %v270_v9, %v150_v7 }
  0x38   :  { %v278_v14 = vmax.f32 %v277_v11, %v135_v10 }
  0x39   :  { %294 = vst [vmem:[%s791_s1 + $0x70] sm:$0xff] %v271_v12 }
  0x3a   :  { %v279_v15 = vmax.f32 %v278_v14, %v151_v13 }
  0x3c   :  { %295 = vst [vmem:[%s791_s1 + $0x78] sm:$0xff] %v279_v15 }

</bundles_post_ra>
